<compile_context>
chip_gen: v5e
topology: v5e:2x2
jax: 0.10.0
libtpu: 0.0.40
codegen_flags: <defaults>
</compile_context>

<pallas_src>
import functools

import numpy as np
import jax
import jax.numpy as jnp
from jax.experimental import pallas as pl
from jax.experimental.pallas import tpu as pltpu


# ----------------------------- shared math helpers -----------------------------

def _layer_norm(x, gamma, beta, eps=1e-5):
    mu = jnp.mean(x, axis=-1, keepdims=True)
    var = jnp.mean((x - mu) ** 2, axis=-1, keepdims=True)
    return (x - mu) * jax.lax.rsqrt(var + eps) * gamma + beta


# --------------------- feature probe: single-buffered weights --------------------

_PIPELINE_MODE_OK = None


def _probe_copy_kernel(x_ref, o_ref):
    o_ref[...] = x_ref[...]


def _pipeline_mode_supported():
    """Probe pl.Buffered(1) single-buffering (resident weights never change block)."""
    global _PIPELINE_MODE_OK
    if _PIPELINE_MODE_OK is None:
        try:
            spec = pl.BlockSpec((8, 128), lambda i: (0, 0),
                                pipeline_mode=pl.Buffered(1))
            y = pl.pallas_call(
                _probe_copy_kernel,
                out_shape=jax.ShapeDtypeStruct((8, 128), jnp.float32),
                grid=(1,),
                in_specs=[spec],
                out_specs=pl.BlockSpec((8, 128), lambda i: (0, 0)),
            )(jnp.ones((8, 128), jnp.float32))
            jax.block_until_ready(y)
            _PIPELINE_MODE_OK = bool(jnp.allclose(y, 1.0))
        except Exception:
            _PIPELINE_MODE_OK = False
    return _PIPELINE_MODE_OK


def _weight_spec(shape, single_buffer):
    idx = lambda b, r, nd=len(shape): (0,) * nd
    if single_buffer:
        return pl.BlockSpec(shape, idx, pipeline_mode=pl.Buffered(1))
    return pl.BlockSpec(shape, idx)


# ------------------------------- Pallas kernel ----------------------------------

def encoder_layer_kernel(src_ref, pos_ref,
                         wqkv_ref, bqkv_ref, wprojh_ref, bproj_ref,
                         w1_ref, b1_ref, w2_ref, b2_ref,
                         g1_ref, be1_ref, g2_ref, be2_ref,
                         gf_ref, bf_ref,
                         out_ref, *, nhead, apply_final_norm):
    # Block = one horizontal strip of nW windows: (1, 1, win_h, nW, win_w, C).
    _, _, win_h, nW, win_w, C = src_ref.shape
    hd = C // nhead
    L = win_h * win_w
    M = nW * L

    xs = src_ref[0, 0, :, :, :, :] + pos_ref[0, 0, :, :, :, :]   # with_pos_embed, f32

    # Window-major token gather: (nW, L, C).  Token order inside a window is
    # (row i, col j) -> i*win_w + j; attention is permutation-invariant and the
    # write-back below uses exactly the same order.  Sublane-aligned when win_w % 8
    # == 0 (true for typical PET windows); other sizes are correct but relayout.
    x_win = jnp.concatenate([xs[i] for i in range(win_h)], axis=1)
    x2 = x_win.reshape(M, C)                         # residual base, kept in f32
    xb = x2.astype(jnp.bfloat16)

    # ---------------- window multi-head self-attention ----------------
    # One wide QKV matmul; q-scale already folded into W / bias on the host.
    qkv = jnp.dot(xb, wqkv_ref[...],
                  preferred_element_type=jnp.float32) + bqkv_ref[...]   # (M, 3C) f32

    # Heads via static lane slices; output projection accumulated per head in the
    # MXU (f32), fusing the head-concat reduction.
    acc = jnp.zeros((M, C), jnp.float32)
    for h in range(nhead):
        q = qkv[:, h * hd:(h + 1) * hd].astype(jnp.bfloat16).reshape(nW, L, hd)
        k = qkv[:, C + h * hd:C + (h + 1) * hd].astype(jnp.bfloat16).reshape(nW, L, hd)
        v = qkv[:, 2 * C + h * hd:2 * C + (h + 1) * hd].astype(jnp.bfloat16).reshape(nW, L, hd)

        s = jnp.einsum('bqd,bkd->bqk', q, k,
                       preferred_element_type=jnp.float32)              # (nW, L, L)
        e = jnp.exp(s - jnp.max(s, axis=-1, keepdims=True))
        r = jnp.sum(e, axis=-1, keepdims=True)
        # Un-normalized PV matmul; normalization applied afterwards on (L, hd).
        o = jnp.einsum('bqk,bkd->bqd', e.astype(jnp.bfloat16), v,
                       preferred_element_type=jnp.float32)              # (nW, L, hd)
        o = o * pl.reciprocal(r, approx=True)
        acc = acc + jnp.dot(o.reshape(M, hd).astype(jnp.bfloat16), wprojh_ref[h],
                            preferred_element_type=jnp.float32)
    attn = acc + bproj_ref[...]                                         # (M, C)

    # ---------------- residual + norm1 ----------------
    y = _layer_norm(x2 + attn, g1_ref[...], be1_ref[...])

    # ---------------- feed-forward (relu) + residual + norm2 ----------------
    h1 = jnp.dot(y.astype(jnp.bfloat16), w1_ref[...],
                 preferred_element_type=jnp.float32) + b1_ref[...]
    h1 = jnp.maximum(h1, 0.0)
    ff = jnp.dot(h1.astype(jnp.bfloat16), w2_ref[...],
                 preferred_element_type=jnp.float32) + b2_ref[...]
    y = _layer_norm(y + ff, g2_ref[...], be2_ref[...])

    if apply_final_norm:                       # encoder-level LayerNorm, fused
        y = _layer_norm(y, gf_ref[...], bf_ref[...])

    # Scatter windows back into the strip layout (inverse of the gather above).
    y3 = y.reshape(nW, L, C)
    for i in range(win_h):
        out_ref[0, 0, i, :, :, :] = y3[:, i * win_w:(i + 1) * win_w, :]


# ---------------------------- wrapper / budgeting --------------------------------

def _pad_tile(rows, cols, itemsize):
    return (-(-rows // 8) * 8) * (-(-cols // 128) * 128) * itemsize


def _vmem_budget_bytes(win_h, nW, win_w, C, F, nhead, weight_bytes, single_buf_w):
    """Heuristic per-step live set with 2x headroom, clamped to [32 MiB, 64 MiB]
    (64 MiB <= physical VMEM on v5e / v6e / v7x)."""
    L = win_h * win_w
    M = nW * L
    hd = C // nhead
    act_blk = win_h * nW * _pad_tile(win_w, C, 4)
    acts = 2 * 3 * act_blk                                  # double-buffered src/pos/out
    inter = (6 * _pad_tile(M, C, 4)                         # x2 / residuals / acc / y
             + 2 * _pad_tile(M, 3 * C, 4)                   # qkv f32 + bf16 slices
             + 3 * nW * _pad_tile(L, L, 4)                  # s / e / e_bf16 (one head)
             + 4 * nW * _pad_tile(L, hd, 4)                 # q / k / v / o (one head)
             + 2 * _pad_tile(M, F, 4))                      # ffn hidden f32 + bf16
    est = acts + inter + weight_bytes * (1 if single_buf_w else 2)
    return int(min(64 << 20, max(32 << 20, 2 * est)))


def run_encoder_layer(x_nhwc, pos_nhwc, lp, fin, apply_final_norm, nhead,
                      win_h, win_w):
    """One encoder layer over the NHWC activation via pallas_call.

    Window partition / reverse are folded into the BlockSpec: the host only does a
    FREE reshape (B, H, W, C) -> (B, nH, win_h, nW, win_w, C); no HBM transposes."""
    B, H, W, C = x_nhwc.shape
    nH, nW = H // win_h, W // win_w
    L = win_h * win_w
    M = nW * L
    hd = C // nhead
    F = lp['w1'].shape[1]

    x6 = x_nhwc.reshape(B, nH, win_h, nW, win_w, C)
    p6 = pos_nhwc.reshape(B, nH, win_h, nW, win_w, C)

    weights = [lp['wqkv'], lp['bqkv'], lp['wproj_h'], lp['bproj'],
               lp['w1'], lp['b1'], lp['w2'], lp['b2'],
               lp['g1'], lp['be1'], lp['g2'], lp['be2'],
               fin['g'], fin['b']]

    blk = (1, 1, win_h, nW, win_w, C)
    act_idx = lambda b, r: (b, r, 0, 0, 0, 0)
    act_spec = pl.BlockSpec(blk, act_idx)

    single_buf = _pipeline_mode_supported()
    w_specs = [_weight_spec(w.shape, single_buf) for w in weights]

    weight_bytes = sum(int(w.size) * w.dtype.itemsize for w in weights)
    steps = B * nH
    attn_mm = 2 * (2 * nW * L * L * hd)                    # scores + PV, one head
    flops_step = (2 * M * C * (3 * C)                      # qkv projection
                  + nhead * attn_mm
                  + nhead * (2 * M * hd * C)               # output projection
                  + 2 * M * C * F + 2 * M * F * C)         # ffn
    cost = pl.CostEstimate(flops=steps * flops_step,
                           transcendentals=steps * nhead * nW * L * L,
                           bytes_accessed=int(3 * x6.size * 4 + weight_bytes))

    kernel = functools.partial(encoder_layer_kernel, nhead=nhead,
                               apply_final_norm=apply_final_norm)

    out6 = pl.pallas_call(
        kernel,
        out_shape=jax.ShapeDtypeStruct(x6.shape, jnp.float32),
        grid_spec=pltpu.PrefetchScalarGridSpec(
            num_scalar_prefetch=0,
            grid=(B, nH),
            in_specs=[act_spec, act_spec] + w_specs,
            out_specs=pl.BlockSpec(blk, act_idx),
        ),
        compiler_params=pltpu.CompilerParams(
            dimension_semantics=("parallel", "parallel"),
            vmem_limit_bytes=_vmem_budget_bytes(win_h, nW, win_w, C, F, nhead,
                                                weight_bytes, single_buf)),
        cost_estimate=cost,
    )(x6, p6, *weights)

    return out6.reshape(B, H, W, C)


def win_encoder_forward(src, src_pos, kparams, enc_win_list, nhead):
    """WinEncoderTransformer.forward: NCHW in, NCHW out (channels-last internally)."""
    x = jnp.transpose(src, (0, 2, 3, 1))                   # NCHW -> NHWC, once
    pos = jnp.transpose(src_pos, (0, 2, 3, 1))
    n_layers = len(kparams['layers'])
    for idx, (lp, enc_win) in enumerate(zip(kparams['layers'], enc_win_list)):
        win_w, win_h = enc_win                              # enc_win_size = (w, h)
        apply_final = (idx + 1 == n_layers)                 # encoder-level LayerNorm
        x = run_encoder_layer(x, pos, lp, kparams['final_norm'], apply_final,
                              nhead, win_h, win_w)
    return jnp.transpose(x, (0, 3, 1, 2))                   # NHWC -> NCHW, once


# ----------------------- reference (pure JAX f32, for checking) ------------------

def window_partition(x, win_h, win_w):
    B, H, W, C = x.shape
    x = x.reshape(B, H // win_h, win_h, W // win_w, win_w, C)
    x = jnp.transpose(x, (0, 1, 3, 2, 4, 5))
    return x.reshape(-1, win_h * win_w, C)


def window_reverse(windows, win_h, win_w, H, W):
    nH, nW = H // win_h, W // win_w
    B = windows.shape[0] // (nH * nW)
    C = windows.shape[2]
    x = windows.reshape(B, nH, nW, win_h, win_w, C)
    x = jnp.transpose(x, (0, 1, 3, 2, 4, 5))
    return x.reshape(B, H, W, C)


def ref_encoder_layer(x_win, pos_win, lp, fin, apply_final_norm, nhead):
    x = x_win + pos_win
    nw, L, C = x.shape
    hd = C // nhead
    scale = hd ** -0.5
    qkv = jnp.einsum('nlc,dc->nld', x, lp['wqkv']) + lp['bqkv'][0]
    q = qkv[..., :C].reshape(nw, L, nhead, hd).transpose(0, 2, 1, 3) * scale
    k = qkv[..., C:2 * C].reshape(nw, L, nhead, hd).transpose(0, 2, 1, 3)
    v = qkv[..., 2 * C:].reshape(nw, L, nhead, hd).transpose(0, 2, 1, 3)
    a = jax.nn.softmax(jnp.einsum('nhqd,nhkd->nhqk', q, k), axis=-1)
    o = jnp.einsum('nhqk,nhkd->nhqd', a, v).transpose(0, 2, 1, 3).reshape(nw, L, C)
    o = jnp.einsum('nlc,dc->nld', o, lp['wproj']) + lp['bproj'][0]
    x = _layer_norm(x + o, lp['g1'][0], lp['be1'][0])
    h = jax.nn.relu(jnp.einsum('nlc,fc->nlf', x, lp['w1']) + lp['b1'][0])
    f = jnp.einsum('nlf,cf->nlc', h, lp['w2']) + lp['b2'][0]
    x = _layer_norm(x + f, lp['g2'][0], lp['be2'][0])
    if apply_final_norm:
        x = _layer_norm(x, fin['g'][0], fin['b'][0])
    return x


def win_encoder_forward_ref(src, src_pos, params, enc_win_list, nhead):
    B, C, H, W = src.shape
    x = jnp.transpose(src, (0, 2, 3, 1))
    pos = jnp.transpose(src_pos, (0, 2, 3, 1))
    n_layers = len(params['layers'])
    for idx, (lp, enc_win) in enumerate(zip(params['layers'], enc_win_list)):
        win_w, win_h = enc_win
        src_win = window_partition(x, win_h, win_w)
        pos_win = window_partition(pos, win_h, win_w)
        out_win = ref_encoder_layer(src_win, pos_win, lp, params['final_norm'],
                                    idx + 1 == n_layers, nhead)
        x = window_reverse(out_win, win_h, win_w, H, W)
    return jnp.transpose(x, (0, 3, 1, 2))


# ------------------------------- params -----------------------------------------

def init_params(key, d_model, nhead, dim_ff, num_layers):
    """PyTorch-layout parameters (nn.Linear weights are (out, in))."""
    def w(k, shape, s=0.05):
        return jax.random.normal(k, shape, jnp.float32) * s

    layers = []
    for _ in range(num_layers):
        key, *ks = jax.random.split(key, 9)
        layers.append(dict(
            wqkv=w(ks[0], (3 * d_model, d_model)),
            bqkv=w(ks[1], (1, 3 * d_model), 0.01),
            wproj=w(ks[2], (d_model, d_model)),
            bproj=w(ks[3], (1, d_model), 0.01),
            w1=w(ks[4], (dim_ff, d_model)),
            b1=w(ks[5], (1, dim_ff), 0.01),
            w2=w(ks[6], (d_model, dim_ff)),
            b2=w(ks[7], (1, d_model), 0.01),
            g1=jnp.ones((1, d_model), jnp.float32),
            be1=jnp.zeros((1, d_model), jnp.float32),
            g2=jnp.ones((1, d_model), jnp.float32),
            be2=jnp.zeros((1, d_model), jnp.float32),
        ))
    fin = dict(g=jnp.ones((1, d_model), jnp.float32),
               b=jnp.zeros((1, d_model), jnp.float32))
    return dict(layers=layers, final_norm=fin)


def prepare_params(params, nhead, compute_dtype=jnp.bfloat16):
    """Host-side weight prep: pre-transpose to x@W form, fold the q scale into the
    q columns / bias, keep the proj weight head-split for the fused head reduction,
    and cast all matmul weights to bf16."""
    kl = []
    for lp in params['layers']:
        C = lp['wproj'].shape[0]
        hd = C // nhead
        scale = hd ** -0.5

        wqkv_t = lp['wqkv'].T                               # (C, 3C): [q | k | v] cols
        bqkv = lp['bqkv'][0]                                # (3C,)
        col_scale = jnp.concatenate([jnp.full((C,), scale, jnp.float32),
                                     jnp.ones((2 * C,), jnp.float32)])
        wqkv_t = wqkv_t * col_scale[None, :]
        bqkv = bqkv * col_scale

        kl.append(dict(
            wqkv=wqkv_t.astype(compute_dtype),                               # (C, 3C)
            bqkv=bqkv.reshape(1, 3 * C).astype(jnp.float32),                 # (1, 3C)
            wproj_h=lp['wproj'].T.reshape(nhead, hd, C).astype(compute_dtype),  # (nh, hd, C)
            bproj=lp['bproj'].astype(jnp.float32),                           # (1, C)
            w1=lp['w1'].T.astype(compute_dtype),                             # (C, F)
            b1=lp['b1'].astype(jnp.float32),                                 # (1, F)
            w2=lp['w2'].T.astype(compute_dtype),                             # (F, C)
            b2=lp['b2'].astype(jnp.float32),                                 # (1, C)
            g1=lp['g1'], be1=lp['be1'], g2=lp['g2'], be2=lp['be2'],
        ))
    return dict(layers=kl, final_norm=params['final_norm'])


# --------------------------------- main ------------------------------------------

if __name__ == "__main__":
    key = jax.random.PRNGKey(0)
    B, d_model, H, W = 2, 32, 16, 16
    nhead, dim_ff, num_layers = 4, 64, 2
    # progressive rectangle windows, (win_w, win_h) per layer
    enc_win_list = [(8, 4), (16, 8)]

    k1, k2, k3 = jax.random.split(key, 3)
    src = jax.random.normal(k1, (B, d_model, H, W), jnp.float32)
    src_pos = jax.random.normal(k2, (B, d_model, H, W), jnp.float32) * 0.1
    params = init_params(k3, d_model, nhead, dim_ff, num_layers)
    kparams = prepare_params(params, nhead)

    out = win_encoder_forward(src, src_pos, kparams, enc_win_list, nhead)
    out = jax.block_until_ready(out)

    ref = win_encoder_forward_ref(src, src_pos, params, enc_win_list, nhead)
    ref = jax.block_until_ready(ref)

    np.testing.assert_allclose(np.asarray(out), np.asarray(ref),
                               atol=2e-2, rtol=2e-2)
    print("KERNEL_OK")
</pallas_src>

<mosaic_0001>
module attributes {stable_mosaic.version = 11 : i64} {
  func.func @_probe_copy_kernel(%arg0: i32, %arg1: memref<8x128xf32, #tpu.memory_space<vmem>>, %arg2: memref<8x128xf32, #tpu.memory_space<vmem>>) attributes {dimension_semantics = [#tpu.dimension_semantics<arbitrary>], iteration_bounds = array<i64: 1>, scalar_prefetch = 0 : i64, scratch_operands = 0 : i64, tpu.core_type = #tpu.core_type<tc>, window_params = [{pipeline_mode = #tpu.pipeline_mode<synchronous>, transform_indices = @transform_0, window_bounds = array<i64: 8, 128>}, {pipeline_mode = #tpu.pipeline_mode<synchronous>, transform_indices = @transform_1, window_bounds = array<i64: 8, 128>}]} {
    %c0 = arith.constant 0 : index
    %c0_0 = arith.constant 0 : index
    %0 = vector.load %arg1[%c0, %c0_0] : memref<8x128xf32, #tpu.memory_space<vmem>>, vector<8x128xf32>
    %c0_1 = arith.constant 0 : index
    %c0_2 = arith.constant 0 : index
    %1 = vector.load %arg2[%c0_1, %c0_2] : memref<8x128xf32, #tpu.memory_space<vmem>>, vector<8x128xf32>
    tpu.vector_store %arg2[%c0_1, %c0_2], %0 {strides = array<i32>} : memref<8x128xf32, #tpu.memory_space<vmem>>, vector<8x128xf32>,
    return
  }
  func.func @transform_0(%arg0: i32) -> (i32, i32) {
    %c0_i32 = arith.constant 0 : i32
    %c0_i32_0 = arith.constant 0 : i32
    %c0_i32_1 = arith.constant 0 : i32
    return %c0_i32, %c0_i32_0 : i32, i32
  }
  func.func @transform_1(%arg0: i32) -> (i32, i32) {
    %c0_i32 = arith.constant 0 : i32
    %c0_i32_0 = arith.constant 0 : i32
    %c0_i32_1 = arith.constant 0 : i32
    return %c0_i32, %c0_i32_0 : i32, i32
  }
}

module attributes {stable_mosaic.version = 11 : i64} {
  func.func @encoder_layer_kernel(%arg0: i32, %arg1: i32, %arg2: memref<1x1x4x2x8x32xf32, #tpu.memory_space<vmem>>, %arg3: memref<1x1x4x2x8x32xf32, #tpu.memory_space<vmem>>, %arg4: memref<32x96xbf16, #tpu.memory_space<vmem>>, %arg5: memref<1x96xf32, #tpu.memory_space<vmem>>, %arg6: memref<4x8x32xbf16, #tpu.memory_space<vmem>>, %arg7: memref<1x32xf32, #tpu.memory_space<vmem>>, %arg8: memref<32x64xbf16, #tpu.memory_space<vmem>>, %arg9: memref<1x64xf32, #tpu.memory_space<vmem>>, %arg10: memref<64x32xbf16, #tpu.memory_space<vmem>>, %arg11: memref<1x32xf32, #tpu.memory_space<vmem>>, %arg12: memref<1x32xf32, #tpu.memory_space<vmem>>, %arg13: memref<1x32xf32, #tpu.memory_space<vmem>>, %arg14: memref<1x32xf32, #tpu.memory_space<vmem>>, %arg15: memref<1x32xf32, #tpu.memory_space<vmem>>, %arg16: memref<1x32xf32, #tpu.memory_space<vmem>>, %arg17: memref<1x32xf32, #tpu.memory_space<vmem>>, %arg18: memref<1x1x4x2x8x32xf32, #tpu.memory_space<vmem>>) attributes {dimension_semantics = [#tpu.dimension_semantics<parallel>, #tpu.dimension_semantics<parallel>], iteration_bounds = array<i64: 2, 4>, scalar_prefetch = 0 : i64, scratch_operands = 0 : i64, tpu.core_type = #tpu.core_type<tc>, window_params = [{transform_indices = @transform_0, window_bounds = array<i64: 1, 1, 4, 2, 8, 32>}, {transform_indices = @transform_1, window_bounds = array<i64: 1, 1, 4, 2, 8, 32>}, {pipeline_mode = #tpu.pipeline_mode<synchronous>, transform_indices = @transform_2, window_bounds = array<i64: 32, 96>}, {pipeline_mode = #tpu.pipeline_mode<synchronous>, transform_indices = @transform_3, window_bounds = array<i64: 1, 96>}, {pipeline_mode = #tpu.pipeline_mode<synchronous>, transform_indices = @transform_4, window_bounds = array<i64: 4, 8, 32>}, {pipeline_mode = #tpu.pipeline_mode<synchronous>, transform_indices = @transform_5, window_bounds = array<i64: 1, 32>}, {pipeline_mode = #tpu.pipeline_mode<synchronous>, transform_indices = @transform_6, window_bounds = array<i64: 32, 64>}, {pipeline_mode = #tpu.pipeline_mode<synchronous>, transform_indices = @transform_7, window_bounds = array<i64: 1, 64>}, {pipeline_mode = #tpu.pipeline_mode<synchronous>, transform_indices = @transform_8, window_bounds = array<i64: 64, 32>}, {pipeline_mode = #tpu.pipeline_mode<synchronous>, transform_indices = @transform_9, window_bounds = array<i64: 1, 32>}, {pipeline_mode = #tpu.pipeline_mode<synchronous>, transform_indices = @transform_10, window_bounds = array<i64: 1, 32>}, {pipeline_mode = #tpu.pipeline_mode<synchronous>, transform_indices = @transform_11, window_bounds = array<i64: 1, 32>}, {pipeline_mode = #tpu.pipeline_mode<synchronous>, transform_indices = @transform_12, window_bounds = array<i64: 1, 32>}, {pipeline_mode = #tpu.pipeline_mode<synchronous>, transform_indices = @transform_13, window_bounds = array<i64: 1, 32>}, {pipeline_mode = #tpu.pipeline_mode<synchronous>, transform_indices = @transform_14, window_bounds = array<i64: 1, 32>}, {pipeline_mode = #tpu.pipeline_mode<synchronous>, transform_indices = @transform_15, window_bounds = array<i64: 1, 32>}, {transform_indices = @transform_16, window_bounds = array<i64: 1, 1, 4, 2, 8, 32>}]} {
    %c0 = arith.constant 0 : index
    %c0_0 = arith.constant 0 : index
    %c0_1 = arith.constant 0 : index
    %c0_2 = arith.constant 0 : index
    %c0_3 = arith.constant 0 : index
    %c0_4 = arith.constant 0 : index
    %0 = vector.load %arg2[%c0, %c0_0, %c0_1, %c0_2, %c0_3, %c0_4] : memref<1x1x4x2x8x32xf32, #tpu.memory_space<vmem>>, vector<1x1x4x2x8x32xf32>
    %1 = vector.shape_cast %0 : vector<1x1x4x2x8x32xf32> to vector<4x2x8x32xf32>
    %c0_5 = arith.constant 0 : index
    %c0_6 = arith.constant 0 : index
    %c0_7 = arith.constant 0 : index
    %c0_8 = arith.constant 0 : index
    %c0_9 = arith.constant 0 : index
    %c0_10 = arith.constant 0 : index
    %2 = vector.load %arg3[%c0_5, %c0_6, %c0_7, %c0_8, %c0_9, %c0_10] : memref<1x1x4x2x8x32xf32, #tpu.memory_space<vmem>>, vector<1x1x4x2x8x32xf32>
    %3 = vector.shape_cast %2 : vector<1x1x4x2x8x32xf32> to vector<4x2x8x32xf32>
    %4 = arith.addf %1, %3 : vector<4x2x8x32xf32>
    %5 = vector.extract_strided_slice %4 {offsets = [0, 0, 0, 0], sizes = [1, 2, 8, 32], strides = [1, 1, 1, 1]} : vector<4x2x8x32xf32> to vector<1x2x8x32xf32>
    %6 = vector.shape_cast %5 : vector<1x2x8x32xf32> to vector<2x8x32xf32>
    %7 = vector.extract_strided_slice %4 {offsets = [1, 0, 0, 0], sizes = [1, 2, 8, 32], strides = [1, 1, 1, 1]} : vector<4x2x8x32xf32> to vector<1x2x8x32xf32>
    %8 = vector.shape_cast %7 : vector<1x2x8x32xf32> to vector<2x8x32xf32>
    %9 = vector.extract_strided_slice %4 {offsets = [2, 0, 0, 0], sizes = [1, 2, 8, 32], strides = [1, 1, 1, 1]} : vector<4x2x8x32xf32> to vector<1x2x8x32xf32>
    %10 = vector.shape_cast %9 : vector<1x2x8x32xf32> to vector<2x8x32xf32>
    %11 = vector.extract_strided_slice %4 {offsets = [3, 0, 0, 0], sizes = [1, 2, 8, 32], strides = [1, 1, 1, 1]} : vector<4x2x8x32xf32> to vector<1x2x8x32xf32>
    %12 = vector.shape_cast %11 : vector<1x2x8x32xf32> to vector<2x8x32xf32>
    %13 = tpu.concatenate %6, %8, %10, %12 in 1 : vector<2x8x32xf32>, vector<2x8x32xf32>, vector<2x8x32xf32>, vector<2x8x32xf32> -> vector<2x32x32xf32>
    %14 = vector.shape_cast %13 : vector<2x32x32xf32> to vector<64x32xf32>
    %15 = arith.truncf %14 : vector<64x32xf32> to vector<64x32xbf16>
    %c0_11 = arith.constant 0 : index
    %c0_12 = arith.constant 0 : index
    %16 = vector.load %arg4[%c0_11, %c0_12] : memref<32x96xbf16, #tpu.memory_space<vmem>>, vector<32x96xbf16>
    %cst = arith.constant dense<0.000000e+00> : vector<64x96xf32>
    %17 = tpu.matmul %15, %16, %cst {dimension_numbers = #tpu.dot_dimension_numbers<[1], [0], [0], [1], [0, 0, 1, 1], [], []>} : vector<64x32xbf16>, vector<32x96xbf16>, vector<64x96xf32> -> vector<64x96xf32>
    %c0_13 = arith.constant 0 : index
    %c0_14 = arith.constant 0 : index
    %18 = vector.load %arg5[%c0_13, %c0_14] : memref<1x96xf32, #tpu.memory_space<vmem>>, vector<1x96xf32>
    %19 = vector.broadcast %18 : vector<1x96xf32> to vector<64x96xf32>
    %20 = arith.addf %17, %19 : vector<64x96xf32>
    %cst_15 = arith.constant 0.000000e+00 : f32
    %21 = vector.broadcast %cst_15 : f32 to vector<64x32xf32>
    %22 = vector.extract_strided_slice %20 {offsets = [0, 0], sizes = [64, 8], strides = [1, 1]} : vector<64x96xf32> to vector<64x8xf32>
    %23 = arith.truncf %22 : vector<64x8xf32> to vector<64x8xbf16>
    %24 = vector.shape_cast %23 : vector<64x8xbf16> to vector<2x32x8xbf16>
    %25 = vector.extract_strided_slice %20 {offsets = [0, 32], sizes = [64, 8], strides = [1, 1]} : vector<64x96xf32> to vector<64x8xf32>
    %26 = arith.truncf %25 : vector<64x8xf32> to vector<64x8xbf16>
    %27 = vector.shape_cast %26 : vector<64x8xbf16> to vector<2x32x8xbf16>
    %28 = vector.extract_strided_slice %20 {offsets = [0, 64], sizes = [64, 8], strides = [1, 1]} : vector<64x96xf32> to vector<64x8xf32>
    %29 = arith.truncf %28 : vector<64x8xf32> to vector<64x8xbf16>
    %30 = vector.shape_cast %29 : vector<64x8xbf16> to vector<2x32x8xbf16>
    "tpu.trace_start"() <{level = 10 : i32, message = "bqd,bkd->bqk"}> : () -> ()
    %cst_16 = arith.constant dense<0.000000e+00> : vector<2x32x32xf32>
    %31 = tpu.matmul %24, %27, %cst_16 {dimension_numbers = #tpu.dot_dimension_numbers<[2], [2], [1], [1], [0, 0, 0, 1, 1, 1], [0], [0]>} : vector<2x32x8xbf16>, vector<2x32x8xbf16>, vector<2x32x32xf32> -> vector<2x32x32xf32>
    "tpu.trace_stop"() : () -> ()
    %cst_17 = arith.constant dense<0xFF800000> : vector<2x32xf32>
    %32 = vector.multi_reduction <maximumf>, %31, %cst_17 [2] : vector<2x32x32xf32> to vector<2x32xf32>
    %33 = vector.shape_cast %32 : vector<2x32xf32> to vector<2x32x1xf32>
    %34 = vector.broadcast %33 : vector<2x32x1xf32> to vector<2x32x32xf32>
    %35 = arith.subf %31, %34 : vector<2x32x32xf32>
    %36 = math.exp %35 : vector<2x32x32xf32>
    %cst_18 = arith.constant dense<0.000000e+00> : vector<2x32xf32>
    %37 = vector.multi_reduction <add>, %36, %cst_18 [2] : vector<2x32x32xf32> to vector<2x32xf32>
    %38 = vector.shape_cast %37 : vector<2x32xf32> to vector<2x32x1xf32>
    %39 = arith.truncf %36 : vector<2x32x32xf32> to vector<2x32x32xbf16>
    "tpu.trace_start"() <{level = 10 : i32, message = "bqk,bkd->bqd"}> : () -> ()
    %cst_19 = arith.constant dense<0.000000e+00> : vector<2x32x8xf32>
    %40 = tpu.matmul %39, %30, %cst_19 {dimension_numbers = #tpu.dot_dimension_numbers<[2], [1], [1], [2], [0, 0, 0, 1, 1, 2], [0], [0]>} : vector<2x32x32xbf16>, vector<2x32x8xbf16>, vector<2x32x8xf32> -> vector<2x32x8xf32>
    "tpu.trace_stop"() : () -> ()
    %41 = tpu.reciprocal %38 {approx = true} : vector<2x32x1xf32> -> vector<2x32x1xf32>
    %42 = vector.broadcast %41 : vector<2x32x1xf32> to vector<2x32x8xf32>
    %43 = arith.mulf %40, %42 : vector<2x32x8xf32>
    %44 = vector.shape_cast %43 : vector<2x32x8xf32> to vector<64x8xf32>
    %45 = arith.truncf %44 : vector<64x8xf32> to vector<64x8xbf16>
    %c0_20 = arith.constant 0 : index
    %c0_21 = arith.constant 0 : index
    %c0_22 = arith.constant 0 : index
    %46 = vector.load %arg6[%c0_20, %c0_21, %c0_22] : memref<4x8x32xbf16, #tpu.memory_space<vmem>>, vector<1x8x32xbf16>
    %47 = vector.shape_cast %46 : vector<1x8x32xbf16> to vector<8x32xbf16>
    %cst_23 = arith.constant dense<0.000000e+00> : vector<64x32xf32>
    %48 = tpu.matmul %45, %47, %cst_23 {dimension_numbers = #tpu.dot_dimension_numbers<[1], [0], [0], [1], [0, 0, 1, 1], [], []>} : vector<64x8xbf16>, vector<8x32xbf16>, vector<64x32xf32> -> vector<64x32xf32>
    %49 = arith.addf %21, %48 : vector<64x32xf32>
    %50 = vector.extract_strided_slice %20 {offsets = [0, 8], sizes = [64, 8], strides = [1, 1]} : vector<64x96xf32> to vector<64x8xf32>
    %51 = arith.truncf %50 : vector<64x8xf32> to vector<64x8xbf16>
    %52 = vector.shape_cast %51 : vector<64x8xbf16> to vector<2x32x8xbf16>
    %53 = vector.extract_strided_slice %20 {offsets = [0, 40], sizes = [64, 8], strides = [1, 1]} : vector<64x96xf32> to vector<64x8xf32>
    %54 = arith.truncf %53 : vector<64x8xf32> to vector<64x8xbf16>
    %55 = vector.shape_cast %54 : vector<64x8xbf16> to vector<2x32x8xbf16>
    %56 = vector.extract_strided_slice %20 {offsets = [0, 72], sizes = [64, 8], strides = [1, 1]} : vector<64x96xf32> to vector<64x8xf32>
    %57 = arith.truncf %56 : vector<64x8xf32> to vector<64x8xbf16>
    %58 = vector.shape_cast %57 : vector<64x8xbf16> to vector<2x32x8xbf16>
    "tpu.trace_start"() <{level = 10 : i32, message = "bqd,bkd->bqk"}> : () -> ()
    %cst_24 = arith.constant dense<0.000000e+00> : vector<2x32x32xf32>
    %59 = tpu.matmul %52, %55, %cst_24 {dimension_numbers = #tpu.dot_dimension_numbers<[2], [2], [1], [1], [0, 0, 0, 1, 1, 1], [0], [0]>} : vector<2x32x8xbf16>, vector<2x32x8xbf16>, vector<2x32x32xf32> -> vector<2x32x32xf32>
    "tpu.trace_stop"() : () -> ()
    %cst_25 = arith.constant dense<0xFF800000> : vector<2x32xf32>
    %60 = vector.multi_reduction <maximumf>, %59, %cst_25 [2] : vector<2x32x32xf32> to vector<2x32xf32>
    %61 = vector.shape_cast %60 : vector<2x32xf32> to vector<2x32x1xf32>
    %62 = vector.broadcast %61 : vector<2x32x1xf32> to vector<2x32x32xf32>
    %63 = arith.subf %59, %62 : vector<2x32x32xf32>
    %64 = math.exp %63 : vector<2x32x32xf32>
    %cst_26 = arith.constant dense<0.000000e+00> : vector<2x32xf32>
    %65 = vector.multi_reduction <add>, %64, %cst_26 [2] : vector<2x32x32xf32> to vector<2x32xf32>
    %66 = vector.shape_cast %65 : vector<2x32xf32> to vector<2x32x1xf32>
    %67 = arith.truncf %64 : vector<2x32x32xf32> to vector<2x32x32xbf16>
    "tpu.trace_start"() <{level = 10 : i32, message = "bqk,bkd->bqd"}> : () -> ()
    %cst_27 = arith.constant dense<0.000000e+00> : vector<2x32x8xf32>
    %68 = tpu.matmul %67, %58, %cst_27 {dimension_numbers = #tpu.dot_dimension_numbers<[2], [1], [1], [2], [0, 0, 0, 1, 1, 2], [0], [0]>} : vector<2x32x32xbf16>, vector<2x32x8xbf16>, vector<2x32x8xf32> -> vector<2x32x8xf32>
    "tpu.trace_stop"() : () -> ()
    %69 = tpu.reciprocal %66 {approx = true} : vector<2x32x1xf32> -> vector<2x32x1xf32>
    %70 = vector.broadcast %69 : vector<2x32x1xf32> to vector<2x32x8xf32>
    %71 = arith.mulf %68, %70 : vector<2x32x8xf32>
    %72 = vector.shape_cast %71 : vector<2x32x8xf32> to vector<64x8xf32>
    %73 = arith.truncf %72 : vector<64x8xf32> to vector<64x8xbf16>
    %c1 = arith.constant 1 : index
    %c0_28 = arith.constant 0 : index
    %c0_29 = arith.constant 0 : index
    %74 = vector.load %arg6[%c1, %c0_28, %c0_29] : memref<4x8x32xbf16, #tpu.memory_space<vmem>>, vector<1x8x32xbf16>
    %75 = vector.shape_cast %74 : vector<1x8x32xbf16> to vector<8x32xbf16>
    %cst_30 = arith.constant dense<0.000000e+00> : vector<64x32xf32>
    %76 = tpu.matmul %73, %75, %cst_30 {dimension_numbers = #tpu.dot_dimension_numbers<[1], [0], [0], [1], [0, 0, 1, 1], [], []>} : vector<64x8xbf16>, vector<8x32xbf16>, vector<64x32xf32> -> vector<64x32xf32>
    %77 = arith.addf %49, %76 : vector<64x32xf32>
    %78 = vector.extract_strided_slice %20 {offsets = [0, 16], sizes = [64, 8], strides = [1, 1]} : vector<64x96xf32> to vector<64x8xf32>
    %79 = arith.truncf %78 : vector<64x8xf32> to vector<64x8xbf16>
    %80 = vector.shape_cast %79 : vector<64x8xbf16> to vector<2x32x8xbf16>
    %81 = vector.extract_strided_slice %20 {offsets = [0, 48], sizes = [64, 8], strides = [1, 1]} : vector<64x96xf32> to vector<64x8xf32>
    %82 = arith.truncf %81 : vector<64x8xf32> to vector<64x8xbf16>
    %83 = vector.shape_cast %82 : vector<64x8xbf16> to vector<2x32x8xbf16>
    %84 = vector.extract_strided_slice %20 {offsets = [0, 80], sizes = [64, 8], strides = [1, 1]} : vector<64x96xf32> to vector<64x8xf32>
    %85 = arith.truncf %84 : vector<64x8xf32> to vector<64x8xbf16>
    %86 = vector.shape_cast %85 : vector<64x8xbf16> to vector<2x32x8xbf16>
    "tpu.trace_start"() <{level = 10 : i32, message = "bqd,bkd->bqk"}> : () -> ()
    %cst_31 = arith.constant dense<0.000000e+00> : vector<2x32x32xf32>
    %87 = tpu.matmul %80, %83, %cst_31 {dimension_numbers = #tpu.dot_dimension_numbers<[2], [2], [1], [1], [0, 0, 0, 1, 1, 1], [0], [0]>} : vector<2x32x8xbf16>, vector<2x32x8xbf16>, vector<2x32x32xf32> -> vector<2x32x32xf32>
    "tpu.trace_stop"() : () -> ()
    %cst_32 = arith.constant dense<0xFF800000> : vector<2x32xf32>
    %88 = vector.multi_reduction <maximumf>, %87, %cst_32 [2] : vector<2x32x32xf32> to vector<2x32xf32>
    %89 = vector.shape_cast %88 : vector<2x32xf32> to vector<2x32x1xf32>
    %90 = vector.broadcast %89 : vector<2x32x1xf32> to vector<2x32x32xf32>
    %91 = arith.subf %87, %90 : vector<2x32x32xf32>
    %92 = math.exp %91 : vector<2x32x32xf32>
    %cst_33 = arith.constant dense<0.000000e+00> : vector<2x32xf32>
    %93 = vector.multi_reduction <add>, %92, %cst_33 [2] : vector<2x32x32xf32> to vector<2x32xf32>
    %94 = vector.shape_cast %93 : vector<2x32xf32> to vector<2x32x1xf32>
    %95 = arith.truncf %92 : vector<2x32x32xf32> to vector<2x32x32xbf16>
    "tpu.trace_start"() <{level = 10 : i32, message = "bqk,bkd->bqd"}> : () -> ()
    %cst_34 = arith.constant dense<0.000000e+00> : vector<2x32x8xf32>
    %96 = tpu.matmul %95, %86, %cst_34 {dimension_numbers = #tpu.dot_dimension_numbers<[2], [1], [1], [2], [0, 0, 0, 1, 1, 2], [0], [0]>} : vector<2x32x32xbf16>, vector<2x32x8xbf16>, vector<2x32x8xf32> -> vector<2x32x8xf32>
    "tpu.trace_stop"() : () -> ()
    %97 = tpu.reciprocal %94 {approx = true} : vector<2x32x1xf32> -> vector<2x32x1xf32>
    %98 = vector.broadcast %97 : vector<2x32x1xf32> to vector<2x32x8xf32>
    %99 = arith.mulf %96, %98 : vector<2x32x8xf32>
    %100 = vector.shape_cast %99 : vector<2x32x8xf32> to vector<64x8xf32>
    %101 = arith.truncf %100 : vector<64x8xf32> to vector<64x8xbf16>
    %c2 = arith.constant 2 : index
    %c0_35 = arith.constant 0 : index
    %c0_36 = arith.constant 0 : index
    %102 = vector.load %arg6[%c2, %c0_35, %c0_36] : memref<4x8x32xbf16, #tpu.memory_space<vmem>>, vector<1x8x32xbf16>
    %103 = vector.shape_cast %102 : vector<1x8x32xbf16> to vector<8x32xbf16>
    %cst_37 = arith.constant dense<0.000000e+00> : vector<64x32xf32>
    %104 = tpu.matmul %101, %103, %cst_37 {dimension_numbers = #tpu.dot_dimension_numbers<[1], [0], [0], [1], [0, 0, 1, 1], [], []>} : vector<64x8xbf16>, vector<8x32xbf16>, vector<64x32xf32> -> vector<64x32xf32>
    %105 = arith.addf %77, %104 : vector<64x32xf32>
    %106 = vector.extract_strided_slice %20 {offsets = [0, 24], sizes = [64, 8], strides = [1, 1]} : vector<64x96xf32> to vector<64x8xf32>
    %107 = arith.truncf %106 : vector<64x8xf32> to vector<64x8xbf16>
    %108 = vector.shape_cast %107 : vector<64x8xbf16> to vector<2x32x8xbf16>
    %109 = vector.extract_strided_slice %20 {offsets = [0, 56], sizes = [64, 8], strides = [1, 1]} : vector<64x96xf32> to vector<64x8xf32>
    %110 = arith.truncf %109 : vector<64x8xf32> to vector<64x8xbf16>
    %111 = vector.shape_cast %110 : vector<64x8xbf16> to vector<2x32x8xbf16>
    %112 = vector.extract_strided_slice %20 {offsets = [0, 88], sizes = [64, 8], strides = [1, 1]} : vector<64x96xf32> to vector<64x8xf32>
    %113 = arith.truncf %112 : vector<64x8xf32> to vector<64x8xbf16>
    %114 = vector.shape_cast %113 : vector<64x8xbf16> to vector<2x32x8xbf16>
    "tpu.trace_start"() <{level = 10 : i32, message = "bqd,bkd->bqk"}> : () -> ()
    %cst_38 = arith.constant dense<0.000000e+00> : vector<2x32x32xf32>
    %115 = tpu.matmul %108, %111, %cst_38 {dimension_numbers = #tpu.dot_dimension_numbers<[2], [2], [1], [1], [0, 0, 0, 1, 1, 1], [0], [0]>} : vector<2x32x8xbf16>, vector<2x32x8xbf16>, vector<2x32x32xf32> -> vector<2x32x32xf32>
    "tpu.trace_stop"() : () -> ()
    %cst_39 = arith.constant dense<0xFF800000> : vector<2x32xf32>
    %116 = vector.multi_reduction <maximumf>, %115, %cst_39 [2] : vector<2x32x32xf32> to vector<2x32xf32>
    %117 = vector.shape_cast %116 : vector<2x32xf32> to vector<2x32x1xf32>
    %118 = vector.broadcast %117 : vector<2x32x1xf32> to vector<2x32x32xf32>
    %119 = arith.subf %115, %118 : vector<2x32x32xf32>
    %120 = math.exp %119 : vector<2x32x32xf32>
    %cst_40 = arith.constant dense<0.000000e+00> : vector<2x32xf32>
    %121 = vector.multi_reduction <add>, %120, %cst_40 [2] : vector<2x32x32xf32> to vector<2x32xf32>
    %122 = vector.shape_cast %121 : vector<2x32xf32> to vector<2x32x1xf32>
    %123 = arith.truncf %120 : vector<2x32x32xf32> to vector<2x32x32xbf16>
    "tpu.trace_start"() <{level = 10 : i32, message = "bqk,bkd->bqd"}> : () -> ()
    %cst_41 = arith.constant dense<0.000000e+00> : vector<2x32x8xf32>
    %124 = tpu.matmul %123, %114, %cst_41 {dimension_numbers = #tpu.dot_dimension_numbers<[2], [1], [1], [2], [0, 0, 0, 1, 1, 2], [0], [0]>} : vector<2x32x32xbf16>, vector<2x32x8xbf16>, vector<2x32x8xf32> -> vector<2x32x8xf32>
    "tpu.trace_stop"() : () -> ()
    %125 = tpu.reciprocal %122 {approx = true} : vector<2x32x1xf32> -> vector<2x32x1xf32>
    %126 = vector.broadcast %125 : vector<2x32x1xf32> to vector<2x32x8xf32>
    %127 = arith.mulf %124, %126 : vector<2x32x8xf32>
    %128 = vector.shape_cast %127 : vector<2x32x8xf32> to vector<64x8xf32>
    %129 = arith.truncf %128 : vector<64x8xf32> to vector<64x8xbf16>
    %c3 = arith.constant 3 : index
    %c0_42 = arith.constant 0 : index
    %c0_43 = arith.constant 0 : index
    %130 = vector.load %arg6[%c3, %c0_42, %c0_43] : memref<4x8x32xbf16, #tpu.memory_space<vmem>>, vector<1x8x32xbf16>
    %131 = vector.shape_cast %130 : vector<1x8x32xbf16> to vector<8x32xbf16>
    %cst_44 = arith.constant dense<0.000000e+00> : vector<64x32xf32>
    %132 = tpu.matmul %129, %131, %cst_44 {dimension_numbers = #tpu.dot_dimension_numbers<[1], [0], [0], [1], [0, 0, 1, 1], [], []>} : vector<64x8xbf16>, vector<8x32xbf16>, vector<64x32xf32> -> vector<64x32xf32>
    %133 = arith.addf %105, %132 : vector<64x32xf32>
    %c0_45 = arith.constant 0 : index
    %c0_46 = arith.constant 0 : index
    %134 = vector.load %arg7[%c0_45, %c0_46] : memref<1x32xf32, #tpu.memory_space<vmem>>, vector<1x32xf32>
    %135 = vector.broadcast %134 : vector<1x32xf32> to vector<64x32xf32>
    %136 = arith.addf %133, %135 : vector<64x32xf32>
    %137 = arith.addf %14, %136 : vector<64x32xf32>
    %c0_47 = arith.constant 0 : index
    %c0_48 = arith.constant 0 : index
    %138 = vector.load %arg12[%c0_47, %c0_48] : memref<1x32xf32, #tpu.memory_space<vmem>>, vector<1x32xf32>
    %c0_49 = arith.constant 0 : index
    %c0_50 = arith.constant 0 : index
    %139 = vector.load %arg13[%c0_49, %c0_50] : memref<1x32xf32, #tpu.memory_space<vmem>>, vector<1x32xf32>
    %cst_51 = arith.constant dense<0.000000e+00> : vector<64xf32>
    %140 = vector.multi_reduction <add>, %137, %cst_51 [1] : vector<64x32xf32> to vector<64xf32>
    %141 = vector.shape_cast %140 : vector<64xf32> to vector<64x1xf32>
    %cst_52 = arith.constant 3.200000e+01 : f32
    %142 = vector.broadcast %cst_52 : f32 to vector<64x1xf32>
    %143 = arith.divf %141, %142 : vector<64x1xf32>
    %144 = vector.broadcast %143 : vector<64x1xf32> to vector<64x32xf32>
    %145 = arith.subf %137, %144 : vector<64x32xf32>
    %146 = arith.mulf %145, %145 : vector<64x32xf32>
    %cst_53 = arith.constant dense<0.000000e+00> : vector<64xf32>
    %147 = vector.multi_reduction <add>, %146, %cst_53 [1] : vector<64x32xf32> to vector<64xf32>
    %148 = vector.shape_cast %147 : vector<64xf32> to vector<64x1xf32>
    %cst_54 = arith.constant 3.200000e+01 : f32
    %149 = vector.broadcast %cst_54 : f32 to vector<64x1xf32>
    %150 = arith.divf %148, %149 : vector<64x1xf32>
    %151 = vector.broadcast %143 : vector<64x1xf32> to vector<64x32xf32>
    %152 = arith.subf %137, %151 : vector<64x32xf32>
    %cst_55 = arith.constant 9.99999974E-6 : f32
    %153 = vector.broadcast %cst_55 : f32 to vector<64x1xf32>
    %154 = arith.addf %150, %153 : vector<64x1xf32>
    %155 = math.rsqrt %154 : vector<64x1xf32>
    %156 = vector.broadcast %155 : vector<64x1xf32> to vector<64x32xf32>
    %157 = arith.mulf %152, %156 : vector<64x32xf32>
    %158 = vector.broadcast %138 : vector<1x32xf32> to vector<64x32xf32>
    %159 = arith.mulf %157, %158 : vector<64x32xf32>
    %160 = vector.broadcast %139 : vector<1x32xf32> to vector<64x32xf32>
    %161 = arith.addf %159, %160 : vector<64x32xf32>
    %162 = arith.truncf %161 : vector<64x32xf32> to vector<64x32xbf16>
    %c0_56 = arith.constant 0 : index
    %c0_57 = arith.constant 0 : index
    %163 = vector.load %arg8[%c0_56, %c0_57] : memref<32x64xbf16, #tpu.memory_space<vmem>>, vector<32x64xbf16>
    %cst_58 = arith.constant dense<0.000000e+00> : vector<64x64xf32>
    %164 = tpu.matmul %162, %163, %cst_58 {dimension_numbers = #tpu.dot_dimension_numbers<[1], [0], [0], [1], [0, 0, 1, 1], [], []>} : vector<64x32xbf16>, vector<32x64xbf16>, vector<64x64xf32> -> vector<64x64xf32>
    %c0_59 = arith.constant 0 : index
    %c0_60 = arith.constant 0 : index
    %165 = vector.load %arg9[%c0_59, %c0_60] : memref<1x64xf32, #tpu.memory_space<vmem>>, vector<1x64xf32>
    %166 = vector.broadcast %165 : vector<1x64xf32> to vector<64x64xf32>
    %167 = arith.addf %164, %166 : vector<64x64xf32>
    %cst_61 = arith.constant 0.000000e+00 : f32
    %168 = vector.broadcast %cst_61 : f32 to vector<64x64xf32>
    %169 = arith.maximumf %167, %168 : vector<64x64xf32>
    %170 = arith.truncf %169 : vector<64x64xf32> to vector<64x64xbf16>
    %c0_62 = arith.constant 0 : index
    %c0_63 = arith.constant 0 : index
    %171 = vector.load %arg10[%c0_62, %c0_63] : memref<64x32xbf16, #tpu.memory_space<vmem>>, vector<64x32xbf16>
    %cst_64 = arith.constant dense<0.000000e+00> : vector<64x32xf32>
    %172 = tpu.matmul %170, %171, %cst_64 {dimension_numbers = #tpu.dot_dimension_numbers<[1], [0], [0], [1], [0, 0, 1, 1], [], []>} : vector<64x64xbf16>, vector<64x32xbf16>, vector<64x32xf32> -> vector<64x32xf32>
    %c0_65 = arith.constant 0 : index
    %c0_66 = arith.constant 0 : index
    %173 = vector.load %arg11[%c0_65, %c0_66] : memref<1x32xf32, #tpu.memory_space<vmem>>, vector<1x32xf32>
    %174 = vector.broadcast %173 : vector<1x32xf32> to vector<64x32xf32>
    %175 = arith.addf %172, %174 : vector<64x32xf32>
    %176 = arith.addf %161, %175 : vector<64x32xf32>
    %c0_67 = arith.constant 0 : index
    %c0_68 = arith.constant 0 : index
    %177 = vector.load %arg14[%c0_67, %c0_68] : memref<1x32xf32, #tpu.memory_space<vmem>>, vector<1x32xf32>
    %c0_69 = arith.constant 0 : index
    %c0_70 = arith.constant 0 : index
    %178 = vector.load %arg15[%c0_69, %c0_70] : memref<1x32xf32, #tpu.memory_space<vmem>>, vector<1x32xf32>
    %cst_71 = arith.constant dense<0.000000e+00> : vector<64xf32>
    %179 = vector.multi_reduction <add>, %176, %cst_71 [1] : vector<64x32xf32> to vector<64xf32>
    %180 = vector.shape_cast %179 : vector<64xf32> to vector<64x1xf32>
    %cst_72 = arith.constant 3.200000e+01 : f32
    %181 = vector.broadcast %cst_72 : f32 to vector<64x1xf32>
    %182 = arith.divf %180, %181 : vector<64x1xf32>
    %183 = vector.broadcast %182 : vector<64x1xf32> to vector<64x32xf32>
    %184 = arith.subf %176, %183 : vector<64x32xf32>
    %185 = arith.mulf %184, %184 : vector<64x32xf32>
    %cst_73 = arith.constant dense<0.000000e+00> : vector<64xf32>
    %186 = vector.multi_reduction <add>, %185, %cst_73 [1] : vector<64x32xf32> to vector<64xf32>
    %187 = vector.shape_cast %186 : vector<64xf32> to vector<64x1xf32>
    %cst_74 = arith.constant 3.200000e+01 : f32
    %188 = vector.broadcast %cst_74 : f32 to vector<64x1xf32>
    %189 = arith.divf %187, %188 : vector<64x1xf32>
    %190 = vector.broadcast %182 : vector<64x1xf32> to vector<64x32xf32>
    %191 = arith.subf %176, %190 : vector<64x32xf32>
    %cst_75 = arith.constant 9.99999974E-6 : f32
    %192 = vector.broadcast %cst_75 : f32 to vector<64x1xf32>
    %193 = arith.addf %189, %192 : vector<64x1xf32>
    %194 = math.rsqrt %193 : vector<64x1xf32>
    %195 = vector.broadcast %194 : vector<64x1xf32> to vector<64x32xf32>
    %196 = arith.mulf %191, %195 : vector<64x32xf32>
    %197 = vector.broadcast %177 : vector<1x32xf32> to vector<64x32xf32>
    %198 = arith.mulf %196, %197 : vector<64x32xf32>
    %199 = vector.broadcast %178 : vector<1x32xf32> to vector<64x32xf32>
    %200 = arith.addf %198, %199 : vector<64x32xf32>
    %201 = vector.shape_cast %200 : vector<64x32xf32> to vector<2x32x32xf32>
    %202 = vector.extract_strided_slice %201 {offsets = [0, 0, 0], sizes = [2, 8, 32], strides = [1, 1, 1]} : vector<2x32x32xf32> to vector<2x8x32xf32>
    %c0_76 = arith.constant 0 : index
    %c0_77 = arith.constant 0 : index
    %c0_78 = arith.constant 0 : index
    %c0_79 = arith.constant 0 : index
    %c0_80 = arith.constant 0 : index
    %c0_81 = arith.constant 0 : index
    %203 = vector.load %arg18[%c0_76, %c0_77, %c0_78, %c0_79, %c0_80, %c0_81] : memref<1x1x4x2x8x32xf32, #tpu.memory_space<vmem>>, vector<1x1x1x2x8x32xf32>
    %204 = vector.shape_cast %203 : vector<1x1x1x2x8x32xf32> to vector<2x8x32xf32>
    %205 = vector.shape_cast %202 : vector<2x8x32xf32> to vector<1x1x1x2x8x32xf32>
    tpu.vector_store %arg18[%c0_76, %c0_77, %c0_78, %c0_79, %c0_80, %c0_81], %205 {strides = array<i32>} : memref<1x1x4x2x8x32xf32, #tpu.memory_space<vmem>>, vector<1x1x1x2x8x32xf32>,
    %206 = vector.extract_strided_slice %201 {offsets = [0, 8, 0], sizes = [2, 8, 32], strides = [1, 1, 1]} : vector<2x32x32xf32> to vector<2x8x32xf32>
    %c0_82 = arith.constant 0 : index
    %c0_83 = arith.constant 0 : index
    %c1_84 = arith.constant 1 : index
    %c0_85 = arith.constant 0 : index
    %c0_86 = arith.constant 0 : index
    %c0_87 = arith.constant 0 : index
    %207 = vector.load %arg18[%c0_82, %c0_83, %c1_84, %c0_85, %c0_86, %c0_87] : memref<1x1x4x2x8x32xf32, #tpu.memory_space<vmem>>, vector<1x1x1x2x8x32xf32>
    %208 = vector.shape_cast %207 : vector<1x1x1x2x8x32xf32> to vector<2x8x32xf32>
    %209 = vector.shape_cast %206 : vector<2x8x32xf32> to vector<1x1x1x2x8x32xf32>
    tpu.vector_store %arg18[%c0_82, %c0_83, %c1_84, %c0_85, %c0_86, %c0_87], %209 {strides = array<i32>} : memref<1x1x4x2x8x32xf32, #tpu.memory_space<vmem>>, vector<1x1x1x2x8x32xf32>,
    %210 = vector.extract_strided_slice %201 {offsets = [0, 16, 0], sizes = [2, 8, 32], strides = [1, 1, 1]} : vector<2x32x32xf32> to vector<2x8x32xf32>
    %c0_88 = arith.constant 0 : index
    %c0_89 = arith.constant 0 : index
    %c2_90 = arith.constant 2 : index
    %c0_91 = arith.constant 0 : index
    %c0_92 = arith.constant 0 : index
    %c0_93 = arith.constant 0 : index
    %211 = vector.load %arg18[%c0_88, %c0_89, %c2_90, %c0_91, %c0_92, %c0_93] : memref<1x1x4x2x8x32xf32, #tpu.memory_space<vmem>>, vector<1x1x1x2x8x32xf32>
    %212 = vector.shape_cast %211 : vector<1x1x1x2x8x32xf32> to vector<2x8x32xf32>
    %213 = vector.shape_cast %210 : vector<2x8x32xf32> to vector<1x1x1x2x8x32xf32>
    tpu.vector_store %arg18[%c0_88, %c0_89, %c2_90, %c0_91, %c0_92, %c0_93], %213 {strides = array<i32>} : memref<1x1x4x2x8x32xf32, #tpu.memory_space<vmem>>, vector<1x1x1x2x8x32xf32>,
    %214 = vector.extract_strided_slice %201 {offsets = [0, 24, 0], sizes = [2, 8, 32], strides = [1, 1, 1]} : vector<2x32x32xf32> to vector<2x8x32xf32>
    %c0_94 = arith.constant 0 : index
    %c0_95 = arith.constant 0 : index
    %c3_96 = arith.constant 3 : index
    %c0_97 = arith.constant 0 : index
    %c0_98 = arith.constant 0 : index
    %c0_99 = arith.constant 0 : index
    %215 = vector.load %arg18[%c0_94, %c0_95, %c3_96, %c0_97, %c0_98, %c0_99] : memref<1x1x4x2x8x32xf32, #tpu.memory_space<vmem>>, vector<1x1x1x2x8x32xf32>
    %216 = vector.shape_cast %215 : vector<1x1x1x2x8x32xf32> to vector<2x8x32xf32>
    %217 = vector.shape_cast %214 : vector<2x8x32xf32> to vector<1x1x1x2x8x32xf32>
    tpu.vector_store %arg18[%c0_94, %c0_95, %c3_96, %c0_97, %c0_98, %c0_99], %217 {strides = array<i32>} : memref<1x1x4x2x8x32xf32, #tpu.memory_space<vmem>>, vector<1x1x1x2x8x32xf32>,
    return
  }
  func.func @transform_0(%arg0: i32, %arg1: i32) -> (i32, i32, i32, i32, i32, i32) {
    %c0_i32 = arith.constant 0 : i32
    %c0_i32_0 = arith.constant 0 : i32
    %c0_i32_1 = arith.constant 0 : i32
    %c0_i32_2 = arith.constant 0 : i32
    %c0_i32_3 = arith.constant 0 : i32
    return %arg0, %arg1, %c0_i32, %c0_i32_0, %c0_i32_1, %c0_i32_2 : i32, i32, i32, i32, i32, i32
  }
  func.func @transform_1(%arg0: i32, %arg1: i32) -> (i32, i32, i32, i32, i32, i32) {
    %c0_i32 = arith.constant 0 : i32
    %c0_i32_0 = arith.constant 0 : i32
    %c0_i32_1 = arith.constant 0 : i32
    %c0_i32_2 = arith.constant 0 : i32
    %c0_i32_3 = arith.constant 0 : i32
    return %arg0, %arg1, %c0_i32, %c0_i32_0, %c0_i32_1, %c0_i32_2 : i32, i32, i32, i32, i32, i32
  }
  func.func @transform_2(%arg0: i32, %arg1: i32) -> (i32, i32) {
    %c0_i32 = arith.constant 0 : i32
    %c0_i32_0 = arith.constant 0 : i32
    %c0_i32_1 = arith.constant 0 : i32
    return %c0_i32, %c0_i32_0 : i32, i32
  }
  func.func @transform_3(%arg0: i32, %arg1: i32) -> (i32, i32) {
    %c0_i32 = arith.constant 0 : i32
    %c0_i32_0 = arith.constant 0 : i32
    %c0_i32_1 = arith.constant 0 : i32
    return %c0_i32, %c0_i32_0 : i32, i32
  }
  func.func @transform_4(%arg0: i32, %arg1: i32) -> (i32, i32, i32) {
    %c0_i32 = arith.constant 0 : i32
    %c0_i32_0 = arith.constant 0 : i32
    %c0_i32_1 = arith.constant 0 : i32
    %c0_i32_2 = arith.constant 0 : i32
    return %c0_i32, %c0_i32_0, %c0_i32_1 : i32, i32, i32
  }
  func.func @transform_5(%arg0: i32, %arg1: i32) -> (i32, i32) {
    %c0_i32 = arith.constant 0 : i32
    %c0_i32_0 = arith.constant 0 : i32
    %c0_i32_1 = arith.constant 0 : i32
    return %c0_i32, %c0_i32_0 : i32, i32
  }
  func.func @transform_6(%arg0: i32, %arg1: i32) -> (i32, i32) {
    %c0_i32 = arith.constant 0 : i32
    %c0_i32_0 = arith.constant 0 : i32
    %c0_i32_1 = arith.constant 0 : i32
    return %c0_i32, %c0_i32_0 : i32, i32
  }
  func.func @transform_7(%arg0: i32, %arg1: i32) -> (i32, i32) {
    %c0_i32 = arith.constant 0 : i32
    %c0_i32_0 = arith.constant 0 : i32
    %c0_i32_1 = arith.constant 0 : i32
    return %c0_i32, %c0_i32_0 : i32, i32
  }
  func.func @transform_8(%arg0: i32, %arg1: i32) -> (i32, i32) {
    %c0_i32 = arith.constant 0 : i32
    %c0_i32_0 = arith.constant 0 : i32
    %c0_i32_1 = arith.constant 0 : i32
    return %c0_i32, %c0_i32_0 : i32, i32
  }
  func.func @transform_9(%arg0: i32, %arg1: i32) -> (i32, i32) {
    %c0_i32 = arith.constant 0 : i32
    %c0_i32_0 = arith.constant 0 : i32
    %c0_i32_1 = arith.constant 0 : i32
    return %c0_i32, %c0_i32_0 : i32, i32
  }
  func.func @transform_10(%arg0: i32, %arg1: i32) -> (i32, i32) {
    %c0_i32 = arith.constant 0 : i32
    %c0_i32_0 = arith.constant 0 : i32
    %c0_i32_1 = arith.constant 0 : i32
    return %c0_i32, %c0_i32_0 : i32, i32
  }
  func.func @transform_11(%arg0: i32, %arg1: i32) -> (i32, i32) {
    %c0_i32 = arith.constant 0 : i32
    %c0_i32_0 = arith.constant 0 : i32
    %c0_i32_1 = arith.constant 0 : i32
    return %c0_i32, %c0_i32_0 : i32, i32
  }
  func.func @transform_12(%arg0: i32, %arg1: i32) -> (i32, i32) {
    %c0_i32 = arith.constant 0 : i32
    %c0_i32_0 = arith.constant 0 : i32
    %c0_i32_1 = arith.constant 0 : i32
    return %c0_i32, %c0_i32_0 : i32, i32
  }
  func.func @transform_13(%arg0: i32, %arg1: i32) -> (i32, i32) {
    %c0_i32 = arith.constant 0 : i32
    %c0_i32_0 = arith.constant 0 : i32
    %c0_i32_1 = arith.constant 0 : i32
    return %c0_i32, %c0_i32_0 : i32, i32
  }
  func.func @transform_14(%arg0: i32, %arg1: i32) -> (i32, i32) {
    %c0_i32 = arith.constant 0 : i32
    %c0_i32_0 = arith.constant 0 : i32
    %c0_i32_1 = arith.constant 0 : i32
    return %c0_i32, %c0_i32_0 : i32, i32
  }
  func.func @transform_15(%arg0: i32, %arg1: i32) -> (i32, i32) {
    %c0_i32 = arith.constant 0 : i32
    %c0_i32_0 = arith.constant 0 : i32
    %c0_i32_1 = arith.constant 0 : i32
    return %c0_i32, %c0_i32_0 : i32, i32
  }
  func.func @transform_16(%arg0: i32, %arg1: i32) -> (i32, i32, i32, i32, i32, i32) {
    %c0_i32 = arith.constant 0 : i32
    %c0_i32_0 = arith.constant 0 : i32
    %c0_i32_1 = arith.constant 0 : i32
    %c0_i32_2 = arith.constant 0 : i32
    %c0_i32_3 = arith.constant 0 : i32
    return %arg0, %arg1, %c0_i32, %c0_i32_0, %c0_i32_1, %c0_i32_2 : i32, i32, i32, i32, i32, i32
  }
}

</mosaic_0001>

<bundles_post_ra>
// kernel: tpu_custom_call.1
= control target key start
LH: loop header
LB: loop body
LE: loop exit
PB: predicated region body
PF: predicated region fallthrough
CT: control target
= control target key end

     0   :  { %6 = vsyncpa [#allocation3], 0  ;;  %s114_s0 = inlined_call_operand.hbm [shape: f32[8,128], index: 0, kind: input, shape index: {}]   ;;  %s115_s1 = inlined_call_operand.hbm [shape: f32[8,128], index: 1, kind: output, shape index: {}]  }
   0x1   :  { %7 = vsyncpa [#allocation4], 0  ;;  %s13_s8 = sshll.u32 %s114_s0, 4  ;;  %s96_s9 = smov [#allocation2]   ;;  %s14_s8 = int_to_ptr.hbm [resolvable:$true] %s13_s8 }
   0x2   :  { %s15_s10 = sshll.u32 %s96_s9, 4  ;;  %s16_s10 = int_to_ptr.vmem [resolvable:$true] %s15_s10 }
   0x3   :  { %18 = dma.hbm_to_vmem [thread:$0]  %s14_s8, 128, %s16_s10, [#allocation3]  }
   0x4   :  { %92 = dma.done.wait [#allocation3], 128  }
   0x5   :  { %93 = vsyncadd [#allocation3], 4294967168  ;;  %s97_s11 = smov [#allocation5]   ;;  %s32_s15 = sshll.u32 %s115_s1, 4  ;;  %v23_v0 = vld [vmem:[#allocation2] sm:$0xff]  ;;  %s33_s15 = int_to_ptr.hbm [resolvable:$true] %s32_s15 }
   0x6   :  { %s30_s12 = sshll.u32 %s97_s11, 4  ;;  %24 = vst [vmem:[#allocation5] sm:$0xff] %v23_v0  ;;  %s31_s12 = int_to_ptr.vmem [resolvable:$true] %s30_s12 }
   0x7   :  { %35 = dma.vmem_to_hbm [thread:$0]  %s31_s12, 128, %s33_s15, [#allocation4]  }
   0x8   :  { %94 = dma.done.wait [#allocation4], 128  }
   0x9   :  { %95 = vsyncadd [#allocation4], 4294967168 }
   0xa   :  { %40 = vsyncpa [#allocation3], 1 }
   0xb   :  { %41 = vsyncpa [#allocation4], 1 }

// kernel: tpu_custom_call.1
= control target key start
LH: loop header
LB: loop body
LE: loop exit
PB: predicated region body
PF: predicated region fallthrough
CT: control target
= control target key end

     0   :  { %s4373_s0 = inlined_call_operand.hbm [shape: f32[2,4,4,2,8,32], index: 0, kind: input, shape index: {}]   ;;  %s4374_s1 = inlined_call_operand.hbm [shape: f32[2,4,4,2,8,32], index: 1, kind: input, shape index: {}]   ;;  %s4375_s2 = inlined_call_operand.vmem [shape: bf16[32,96], index: 2, kind: input, shape index: {}]   ;;  %s4376_s3 = inlined_call_operand.vmem [shape: f32[1,96], index: 3, kind: input, shape index: {}]   ;;  %s4377_s4 = inlined_call_operand.vmem [shape: bf16[4,8,32], index: 4, kind: input, shape index: {}]   ;;  %s4378_s5 = inlined_call_operand.vmem [shape: f32[1,32], index: 5, kind: input, shape index: {}]   ;;  %s4379_s6 = inlined_call_operand.vmem [shape: bf16[32,64], index: 6, kind: input, shape index: {}]   ;;  %s4380_s7 = inlined_call_operand.vmem [shape: f32[1,64], index: 7, kind: input, shape index: {}]   ;;  %s4381_s8 = inlined_call_operand.vmem [shape: bf16[64,32], index: 8, kind: input, shape index: {}]   ;;  %s4382_s9 = inlined_call_operand.vmem [shape: f32[1,32], index: 9, kind: input, shape index: {}]   ;;  %s4383_s10 = inlined_call_operand.vmem [shape: f32[1,32], index: 10, kind: input, shape index: {}]   ;;  %s4384_s11 = inlined_call_operand.vmem [shape: f32[1,32], index: 11, kind: input, shape index: {}]   ;;  %s4385_s12 = inlined_call_operand.vmem [shape: f32[1,32], index: 12, kind: input, shape index: {}]   ;;  %s4386_s13 = inlined_call_operand.vmem [shape: f32[1,32], index: 13, kind: input, shape index: {}]   ;;  %s4387_s14 = inlined_call_operand.vmem [shape: f32[1,32], index: 14, kind: input, shape index: {}]   ;;  %s4388_s15 = inlined_call_operand.vmem [shape: f32[1,32], index: 15, kind: input, shape index: {}]   ;;  %s4389_s16 = inlined_call_operand.hbm [shape: f32[2,4,4,2,8,32], index: 16, kind: output, shape index: {}]  }
   0x1   :  { %4399 = sst [smem:[#allocation21_spill]] %s4373_s0 }
   0x2   :  { %4400 = sst [smem:[#allocation22_spill]] %s4382_s9 }
   0x3   :  { %4401 = sst [smem:[#allocation23_spill]] %s4385_s12 }
   0x4   :  { %4402 = sst [smem:[#allocation24_spill]] %s4386_s13 }
   0x5   :  { %4403 = sst [smem:[#allocation25_spill]] %s4389_s16 }
   0x6   :  { %21 = vsyncpa [#allocation3], 0 }
   0x7   :  { %23 = vsyncpa [#allocation3 + $0x1], 0 }
   0x8   :  { %24 = vsyncpa [#allocation6], 0 }
   0x9   :  { %26 = vsyncpa [#allocation6 + $0x1], 0 }
   0xa   :  { %27 = vsyncpa [#allocation4], 0 }
   0xb   :  { %29 = vsyncpa [#allocation4 + $0x1], 0  ;;  %s3362_s21 = smov 0   ;;  %s3364_s22 = smov 0  }
   0xc   :  { %s3366_s23 = smov 0   ;;  %s3368_s24 = smov 0  }
   0xd   :  { %s3370_s14 = smov 0   ;;  %s3372_s15 = smov 0  }
   0xe   :  { %s3374_s25 = smov 0   ;;  %s3376_s26 = smov 0  }
   0xf LB: > { %4404 = sst [smem:[#allocation11_spill]] %s3231_s21  ;;  %s2693_s27 = sadd.s32 4294967295, %s3259_s26   ;;  %s3259_s26 = sphi %s3376_s26, %s35_s26   ;;  %s3255_s25 = sphi %s3374_s25, %s4434_s25   ;;  %s3251_s15 = sphi %s3372_s15, %s4433_s15   ;;  %s3247_s14 = sphi %s3370_s14, %s4432_s14   ;;  %s3243_s24 = sphi %s3368_s24, %s4431_s24   ;;  %s3239_s23 = sphi %s3366_s23, %s4437_s23   ;;  %s3235_s22 = sphi %s3364_s22, %s4436_s22   ;;  %s3231_s21 = sphi %s3362_s21, %s4435_s21  }
  0x10   : > { %4405 = sst [smem:[#allocation12_spill]] %s3243_s24  ;;  %s2694_s28 = sadd.s32 4294967294, %s3259_s26  }
  0x11   : > { %4406 = sst [smem:[#allocation13_spill]] %s3247_s14  ;;  %s44_s29 = sadd.s32 1, %s3251_s15 }
  0x12   : > { %4407 = sst [smem:[#allocation14_spill]] %s3251_s15  ;;  %s47_s30 = sadd.s32 1, %s3255_s25 }
  0x13   : > { %4408 = sst [smem:[#allocation15_spill]] %s3255_s25  ;;  %p45_p0 = scmp.ge.s32.totalorder %s44_s29, 4 }
  0x14   : > { %s56_s0 = sadd.s32 1, %s3239_s23  ;;  %p63_p1 = scmp.ne.s32.totalorder %s3239_s23, %s3235_s22 }
  0x15   : > { %p64_p2 = scmp.eq.s32.totalorder %s3259_s26, 0  ;;  %s4439_s29 = smov (%p45_p0, %s44_s29), 0 }
  0x16   : > { %4409 = sst [smem:[#allocation16_spill]] %s4439_s29  ;;  %s4441_s30 = smov (!%p45_p0, %s47_s30), %s3255_s25 }
  0x17   : > { %s52_s17 = ssub.s32 %s3251_s15, %s4439_s29  ;;  %p3415_p3 = por %p64_p2, %p63_p1 }
  0x18   : > { %p49_p4 = scmp.ge.s32.totalorder %s4441_s30, 2  ;;  %p69_p5 = scmp.ne.s32.totalorder %s3235_s22, %s3231_s21 }
  0x19   : > { %p70_p6 = scmp.eq.s32.totalorder %s2693_s27, 0  ;;  %p417_p7 = scmp.eq.s32.totalorder %s2693_s27, 7 }
  0x1a   : > { %s4443_s30 = smov (%p49_p4, %s4441_s30), 0  ;;  %p423_p10 = scmp.eq.s32.totalorder %s2694_s28, 7 }
  0x1b   : > { %4411 = sst [smem:[#allocation17_spill]] %s4443_s30  ;;  %p3423_p8 = por %p70_p6, %p69_p5 }
  0x1c   : > { %p3427_p9 = por %p417_p7, %p63_p1  ;;  %s51_s29 = ssub.s32 %s3255_s25, %s4443_s30 }
  0x1d   : > { %s53_s16 = sor.u32 %s52_s17, %s51_s29  ;;  %p3433_p12 = por %p423_p10, %p69_p5 }
  0x1e   : > { %s4413_s20 = scalar_select %p3427_p9, 1, 0 }
  0x1f   : > { %p54_p11 = scmp.eq.s32.totalorder %s53_s16, 0  ;;  %p2845_p13 = scmp.lt.s32.totalorder %s3259_s26, 8 }
  0x20   : > { %4414 = sst [smem:[#allocation18_spill]] %s4413_s20  ;;  %s3439_s27 = sand.u32 1, %s3239_s23  }
  0x21   : > { %s4415_s21 = scalar_select %p3433_p12, 1, 0 }
  0x22   : > { %s3442_s14 = scalar_select %p54_p11, %s3239_s23, %s56_s0  }
  0x23   : > { %4416 = sst [smem:[#allocation19_spill]] %s4415_s21  ;;  %s2697_s24 = sshll.u32 %s3439_s27, 6 }
  0x24   : > { %4417 = sst [smem:[#allocation20_spill]] %s3442_s14  ;;  %s2698_s13 = sshll.u32 %s3251_s15, 3 }
  0x25   : > { %s2699_s30 = sshll.u32 %s3255_s25, 5  ;;  %s489_s20 = scalar_lea.vmem [#allocation2], %s2697_s24 }
  0x26   : > { %s499_s28 = sshll.u32 %s489_s20, 4  ;;  %s494_s29 = sadd.s32 %s2699_s30, %s2698_s13  ;;  %s500_s28 = int_to_ptr.vmem [resolvable:$true] %s499_s28 }
  0x27   : > { %s2700_s16 = sshll.u32 %s494_s29, 3  ;;  %p3449_p0 = pnand %p2845_p13, %p3415_p3 }
  0x28   : > { %s4419_s9 = sld [smem:[#allocation21_spill]]  ;;  %s486_s25 = scalar_lea.sflag [#allocation3], %s3439_s27 }
  0x29   : > { %s3261_s15 = smov 128   ;;  %s3262_s20 = smov 8  }
  0x2a   : > { %p2705_p1 = scmp.ge.s32.totalorder %s3259_s26, 1  ;;  %p531_p2 = scmp.lt.s32.totalorder %s3259_s26, 9 }
  0x2b   : > { %s520_s18 = scalar_lea.hbm %s4374_s1, %s2700_s16  ;;  %s513_s12 = scalar_lea.vmem [#allocation5], %s2697_s24 }
  0x2c   : > { %p532_p3 = pnand %p2705_p1, %p531_p2  ;;  %s521_s29 = sshll.u32 %s520_s18, 4  ;;  %s522_s29 = int_to_ptr.hbm [resolvable:$true] %s521_s29 }
  0x2d   : > { %s523_s21 = sshll.u32 %s513_s12, 4  ;;  %s524_s21 = int_to_ptr.vmem [resolvable:$true] %s523_s21 }
  0x2e   : > { %s496_s0 = scalar_lea.hbm %s4419_s9, %s2700_s16  ;;  %s510_s9 = scalar_lea.sflag [#allocation6], %s3439_s27 }
  0x2f   : > { %s497_s14 = sshll.u32 %s496_s0, 4  ;;  %535 = sbr.rel (%p532_p3) target bundleno = 2600 (0xa28), region = 84  ;;  %s498_s14 = int_to_ptr.hbm [resolvable:$true] %s497_s14 }
  0x30   : > { %2837 = dma.hbm_to_vmem [thread:$0]  (!%p3449_p0), %s498_s14, 1024, %s500_s28, %s486_s25, %s3261_s15, %s3261_s15, %s3262_s20  }
  0x31   : > { %2840 = dma.hbm_to_vmem [thread:$0]  (!%p3449_p0), %s522_s29, 1024, %s524_s21, %s510_s9, %s3261_s15, %s3261_s15, %s3262_s20  }
  0x32   : > { %s3468_s0 = sand.u32 (!%p532_p3), 1, %s3235_s22  }
  0x33   : > { %s3471_s14 = sshll.u32 (!%p532_p3), %s3468_s0, 6  ;;  %s538_s25 = scalar_lea.sflag (!%p532_p3), [#allocation3], %s3468_s0 }
  0x34   : > { %s3475_s28 = scalar_lea.vmem [#allocation2], %s3471_s14 }
  0x35   : > { %3218 = dma.done.wait (%p3423_p8), %s538_s25, 1024  }
  0x36   : > { %3220 = vsyncadd (%p3423_p8), %s538_s25, 4294966272  ;;  %s548_s24 = scalar_lea.sflag [#allocation6], %s3468_s0  ;;  %s3483_s15 = scalar_lea.vmem [#allocation5], %s3471_s14 }
  0x37   : > { %3222 = dma.done.wait (%p3423_p8), %s548_s24, 1024  }
  0x38   : > { %3224 = vsyncadd (%p3423_p8), %s548_s24, 4294966272  ;;  %v2817_v0 = vld [vmem:[%s4375_s2 + $0x8] sm:$0xff]  ;;  %v607_v1 = vld [vmem:[%s3475_s28] sm:$0xff]  ;;  %vm655_vm0 = vcmask 261120   ;;  %s3263_s30 = smov 120   ;;  %s3264_s18 = smov 88  }
  0x39   : > { %v609_v2 = vld [vmem:[%s3475_s28 + $0x10] sm:$0xff]  ;;  %v615_v3 = vld [vmem:[%s3483_s15] sm:$0xff]  ;;  %674 = vmatpush.bf16.msra.mxu0 %v2817_v0  ;;  %v608_v16 = vld [vmem:[%s3475_s28 + $0x8] sm:$0xff]  ;;  %s3265_s29 = smov 96   ;;  %s3266_s12 = smov 64   ;;  %vm719_vm1 = vcmask 64512  }
  0x3a   : > { %v617_v4 = vld [vmem:[%s3483_s15 + $0x10] sm:$0xff]  ;;  %v2816_v5 = vld [vmem:[%s4375_s2] sm:$0xff]  ;;  %v3499_v6 = vadd.f32 %v615_v3, %v607_v1  ;;  %v610_v17 = vld [vmem:[%s3475_s28 + $0x18] sm:$0xff]  ;;  %s3267_s21 = smov 112   ;;  %s3268_s9 = smov 56   ;;  %vm1253_vm2 = vcmask 1043456  }
  0x3b   : > { %v3501_v7 = vadd.f32 %v617_v4, %v609_v2  ;;  %v611_v9 = vld [vmem:[%s3475_s28 + $0x20] sm:$0xff]  ;;  %v613_v10 = vld [vmem:[%s3475_s28 + $0x30] sm:$0xff]  ;;  %v616_v18 = vld [vmem:[%s3483_s15 + $0x8] sm:$0xff]  ;;  %s3269_s25 = smov 80   ;;  %s3271_s27 = smov 48  }
  0x3c   : > { %v619_v11 = vld [vmem:[%s3483_s15 + $0x20] sm:$0xff]  ;;  %v621_v12 = vld [vmem:[%s3483_s15 + $0x30] sm:$0xff]  ;;  %v618_v19 = vld [vmem:[%s3483_s15 + $0x18] sm:$0xff]  ;;  %v3521_v20 = vadd.f32 %v616_v18, %v608_v16  ;;  %s3272_s16 = smov 104   ;;  %s3273_s17 = smov 40  }
  0x3d   : > { %v631_v8 = vpack.c.bf16 %v3501_v7, %v3499_v6  ;;  %675 = vmatpush.bf16.msra.mxu0 %v2816_v5  ;;  %v3510_v13 = vadd.f32 %v619_v11, %v611_v9  ;;  %v3512_v14 = vadd.f32 %v621_v12, %v613_v10  ;;  %v3523_v21 = vadd.f32 %v618_v19, %v610_v17  ;;  %v612_v23 = vld [vmem:[%s3475_s28 + $0x28] sm:$0xff]  ;;  %v614_v24 = vld [vmem:[%s3475_s28 + $0x38] sm:$0xff]  ;;  %v2927_v31 = vld [vmem:[%s4376_s3] ss:$0 sm:$0xff]  ;;  %s4422_s13 = sld [smem:[#allocation24_spill]]  ;;  %s2560_s20 = scalar_lea.sflag [#allocation4], %s3468_s0 }
  0x3e   : > { %v620_v25 = vld [vmem:[%s3483_s15 + $0x28] sm:$0xff]  ;;  %v622_v26 = vld [vmem:[%s3483_s15 + $0x38] sm:$0xff]  ;;  %s3270_s15 = smov 72   ;;  %s4425_s24 = sld [smem:[#allocation25_spill]] }
  0x3f   : > { %v632_v15 = vpack.c.bf16 %v3512_v14, %v3510_v13  ;;  %v633_v22 = vpack.c.bf16 %v3523_v21, %v3521_v20  ;;  %v3532_v27 = vadd.f32 %v620_v25, %v612_v23  ;;  %v3534_v28 = vadd.f32 %v622_v26, %v614_v24 }
  0x40   : > { %2717 = vmatmul.msk.bf16.vlgmr.msra.gmra.mxu0 %vm655_vm0, %v631_v8 }
  0x41   : > { %v634_v29 = vpack.c.bf16 %v3534_v28, %v3532_v27 }
  0x50   : > { %2718 = vmatmul.msk.bf16.gmra.mxu0 %vm655_vm0, %v632_v15 }
  0x60   : > { %2719 = vmatmul.msk.bf16.gmra.mxu0 %vm655_vm0, %v633_v22 }
  0x70   : > { %2720 = vmatmul.msk.bf16.gmra.mxu0 %vm655_vm0, %v634_v29 }
  0xbd   : > { %v677_v30 = vpop.f32.mrf.mxu0 }
  0xbe   : > { %v678_v32 = vadd.f32 %v2927_v31, %v677_v30 }
  0xc0   : > { %v697_v34 = vpack.c.bf16 %v678_v32, %v678_v32 }
  0xc2   : > { %v709_v37 = vunpack.c.l.b16 %v697_v34 }
  0xc5   : > { %v679_v33 = vpop.f32.mrf.mxu0 }
  0xc6   : > { %v680_v35 = vadd.f32 %v2927_v31, %v679_v33 }
  0xc8   : > { %v698_v36 = vpack.c.bf16 %v680_v35, %v680_v35 }
  0xca   : > { %v710_v38 = vunpack.c.l.b16 %v698_v36 }
  0xcc   : > { %v3542_v39 = vpack.c.b16 %v710_v38, %v709_v37 }
  0xcd   : > { %v682_v40 = vpop.f32.mrf.mxu0 }
  0xce   : > { %979 = vrot.lane.b32.xlu2 %v3542_v39, %s3263_s30  ;;  %v683_v41 = vadd.f32 %v2927_v31, %v682_v40 }
  0xd0   : > { %v699_v43 = vpack.c.bf16 %v683_v41, %v683_v41 }
  0xd2   : > { %v711_v46 = vunpack.c.l.b16 %v699_v43 }
  0xd5   : > { %v684_v42 = vpop.f32.mrf.mxu0 }
  0xd6   : > { %v685_v44 = vadd.f32 %v2927_v31, %v684_v42 }
  0xd8   : > { %v700_v45 = vpack.c.bf16 %v685_v44, %v685_v44 }
  0xda   : > { %v712_v47 = vunpack.c.l.b16 %v700_v45 }
  0xdc   : > { %v3546_v48 = vpack.c.b16 %v712_v47, %v711_v46 }
  0xdd   : > { %v687_v49 = vpop.f32.mrf.mxu0 }
  0xde   : > { %985 = vrot.lane.b32.xlu1 %v3546_v48, %s3264_s18  ;;  %717 = vrot.lane.b32.xlu0 %v3546_v48, %s3265_s29  ;;  %v688_v50 = vadd.f32 %v2927_v31, %v687_v49 }
  0xe0   : > { %v701_v51 = vpack.c.bf16 %v688_v50, %v688_v50 }
  0xe2   : > { %v755_v54 = vunpack.c.l.b16 %v701_v51 }
  0xe5   : > { %v689_v52 = vpop.f32.mrf.mxu0 }
  0xe6   : > { %v690_v53 = vadd.f32 %v2927_v31, %v689_v52  ;;  %983 = vrot.lane.b32.xlu1 %v3542_v39, %s3264_s18  ;;  %715 = vrot.lane.b32.xlu0 %v3542_v39, %s3265_s29 }
  0xe8   : > { %v702_v55 = vpack.c.bf16 %v690_v53, %v690_v53 }
  0xea   : > { %v756_v56 = vunpack.c.l.b16 %v702_v55 }
  0xec   : > { %v3552_v57 = vpack.c.b16 %v756_v56, %v755_v54 }
  0xed   : > { %v692_v58 = vpop.f32.mrf.mxu0 }
  0xee   : > { %761 = vrot.lane.b32.xlu0 %v3552_v57, %s3265_s29  ;;  %v693_v59 = vadd.f32 %v2927_v31, %v692_v58 }
  0xf0   : > { %v703_v60 = vpack.c.bf16 %v693_v59, %v693_v59 }
  0xf2   : > { %v757_v63 = vunpack.c.l.b16 %v703_v60 }
  0xf5   : > { %v694_v61 = vpop.f32.mrf.mxu0 }
  0xf6   : > { %888 = vrot.lane.b32.xlu0 %v3546_v48, %s3266_s12  ;;  %v695_v62 = vadd.f32 %v2927_v31, %v694_v61 }
  0xf8   : > { %v704_v0 = vpack.c.bf16 %v695_v62, %v695_v62 }
  0xfa   : > { %v758_v1 = vunpack.c.l.b16 %v704_v0 }
  0xfc   : > { %v3557_v2 = vpack.c.b16 %v758_v1, %v757_v63 }
  0xfe   : > { %886 = vrot.lane.b32.xlu0 %v3542_v39, %s3266_s12  ;;  %763 = vrot.lane.b32.xlu2 %v3557_v2, %s3265_s29 }
 0x106   : > { %1024 = vrot.lane.b32.xlu0 %v3557_v2, %s3264_s18 }
 0x10e   : > { %1022 = vrot.lane.b32.xlu0 %v3552_v57, %s3264_s18  ;;  %s4424_s18 = sld [smem:[#allocation13_spill]] }
 0x116   : > { %1018 = vrot.lane.b32.xlu0 %v3552_v57, %s3263_s30 }
 0x128   : > { %v980_v5 = vpop.permute.xlu2 %979 }
 0x150   : > { %v986_v3 = vpop.permute.xlu1 %985  ;;  %v718_v4 = vpop.permute.xlu0 %717 }
 0x151   : > { %v730_v8 = vsel %vm719_vm1, %v718_v4, 0  ;;  %v997_v9 = vsel %vm719_vm1, %v986_v3, 0 }
 0x152   : > { %738 = vmatpush.bf16.xpose.msra.mxu2 %v730_v8  ;;  %1005 = vmatpush.bf16.xpose.msra.mxu1 %v997_v9 }
 0x158   : > { %v984_v10 = vpop.permute.xlu1 %983  ;;  %v716_v11 = vpop.permute.xlu0 %715 }
 0x159   : > { %v727_v12 = vsel %vm719_vm1, %v716_v11, 0  ;;  %v994_v15 = vsel %vm719_vm1, %v984_v10, 0  ;;  %v764_v16 = vpop.permute.xlu2 %763 }
 0x15a   : > { %739 = vmatpush.bf16.xpose.msra.mxu2 %v727_v12  ;;  %1006 = vmatpush.bf16.xpose.msra.mxu1 %v994_v15  ;;  %v775_v17 = vsel %vm719_vm1, %v764_v16, 0 }
 0x160   : > { %v762_v18 = vpop.permute.xlu0 %761 }
 0x161   : > { %2721 = vmatmul.msk.bf16.vlgmr.msra.gmra.mxu2 %vm719_vm1, %v3542_v39  ;;  %2729 = vmatmul.msk.bf16.vlgmr.msra.gmra.mxu1 %vm719_vm1, %v980_v5  ;;  %v772_v19 = vsel %vm719_vm1, %v762_v18, 0 }
 0x162   : > { %783 = vmatpush.bf16.xpose.msrb.mxu2 %v775_v17 }
 0x168   : > { %v889_v22 = vpop.permute.xlu0 %888 }
 0x169   : > { %2824 = vmatpush.bf16.msra.mxu3 %v889_v22 }
 0x16a   : > { %784 = vmatpush.bf16.xpose.msrb.mxu2 %v772_v19 }
 0x170   : > { %v887_v23 = vpop.permute.xlu0 %886 }
 0x171   : > { %2722 = vmatmul.msk.bf16.gmra.mxu2 %vm719_vm1, %v3546_v48  ;;  %2825 = vmatpush.bf16.msra.mxu3 %v887_v23 }
 0x172   : > { %904 = vmatpush.bf16.msra.mxu2 %v889_v22 }
 0x176   : > { %905 = vmatpush.bf16.msra.mxu2 %v887_v23 }
 0x178   : > { %v1025_v24 = vpop.permute.xlu0 %1024 }
 0x179   : > { %v1036_v25 = vsel %vm719_vm1, %v1025_v24, 0 }
 0x180   : > { %v1023_v26 = vpop.permute.xlu0 %1022 }
 0x181   : > { %2723 = vmatmul.msk.bf16.vlgmr.msrb.gmra.mxu2 %vm719_vm1, %v3552_v57  ;;  %v1033_v29 = vsel %vm719_vm1, %v1023_v26, 0 }
 0x182   : > { %1044 = vmatpush.bf16.xpose.msrb.mxu2 %v1036_v25 }
 0x188   : > { %v1019_v51 = vpop.permute.xlu0 %1018 }
 0x18a   : > { %1045 = vmatpush.bf16.xpose.msrb.mxu2 %v1033_v29 }
 0x191   : > { %2724 = vmatmul.msk.bf16.gmra.mxu2 %vm719_vm1, %v3557_v2 }
 0x1de   : > { %v1008_v30 = vpop.f32.mrf.mxu1 }
 0x1df   : > { %v1057_v36 = vsel %vm655_vm0, %v1008_v30, -inf }
 0x1e4   : > { %v741_v31 = vpop.f32.mrf.mxu2 }
 0x1e5   : > { %v796_v32 = vsel %vm655_vm0, %v741_v31, -inf }
 0x1e6   : > { %v1010_v33 = vpop.f32.mrf.mxu1  ;;  %797 = vmax.xlane.f32.xlu1 %v796_v32 }
 0x1e7   : > { %v1060_v34 = vsel %vm655_vm0, %v1010_v33, -inf }
 0x1e8   : > { %1061 = vmax.xlane.f32.xlu0 %v1060_v34 }
 0x1ec   : > { %v743_v35 = vpop.f32.mrf.mxu2 }
 0x1ed   : > { %v799_v37 = vsel %vm655_vm0, %v743_v35, -inf }
 0x1ee   : > { %1058 = vmax.xlane.f32.xlu1 %v1057_v36  ;;  %800 = vmax.xlane.f32.xlu2 %v799_v37 }
 0x1f4   : > { %v3589_v38 = vpop.f32.mrf.mxu2 }
 0x1f5   : > { %v802_v49 = vsel %vm655_vm0, %v3589_v38, -inf }
 0x1fc   : > { %1330 = vrot.lane.b32.xlu0 %v3542_v39, %s3267_s21  ;;  %v3597_v40 = vpop.f32.mrf.mxu2 }
 0x1fd   : > { %v805_v50 = vsel %vm655_vm0, %v3597_v40, -inf }
 0x204   : > { %1190 = vrot.lane.b32.xlu0 %v3557_v2, %s3268_s9  ;;  %v3602_v41 = vpop.f32.mrf.mxu2 }
 0x205   : > { %v808_v47 = vsel %vm655_vm0, %v3602_v41, -inf }
 0x206   : > { %1020 = vrot.lane.b32.xlu2 %v3557_v2, %s3263_s30 }
 0x207   : > { %1147 = vrot.lane.b32.xlu1 %v3542_v39, %s3268_s9 }
 0x20c   : > { %v3607_v42 = vpop.f32.mrf.mxu2 }
 0x20d   : > { %v811_v44 = vsel %vm655_vm0, %v3607_v42, -inf }
 0x20e   : > { %1149 = vrot.lane.b32.xlu2 %v3546_v48, %s3268_s9 }
 0x20f   : > { %1334 = vrot.lane.b32.xlu1 %v3542_v39, %s3269_s25 }
 0x214   : > { %v3611_v43 = vpop.f32.mrf.mxu2 }
 0x215   : > { %v814_v52 = vsel %vm655_vm0, %v3611_v43, -inf }
 0x216   : > { %1336 = vrot.lane.b32.xlu2 %v3546_v48, %s3269_s25 }
 0x217   : > { %929 = vrot.lane.b32.xlu1 %v3557_v2, %s3266_s12 }
 0x21c   : > { %v3615_v45 = vpop.f32.mrf.mxu2 }
 0x21d   : > { %v817_v46 = vsel %vm655_vm0, %v3615_v45, -inf }
 0x21f   : > { %927 = vrot.lane.b32.xlu1 %v3552_v57, %s3266_s12  ;;  %s2812_s12 = sshll.u32 %s4424_s18, 5 }
 0x22e   : > { %812 = vmax.xlane.f32.xlu0 %v811_v44 }
 0x236   : > { %818 = vmax.xlane.f32.xlu0 %v817_v46 }
 0x23f   : > { %809 = vmax.xlane.f32.xlu2 %v808_v47 }
 0x249   : > { %803 = vmax.xlane.f32.xlu1 %v802_v49 }
 0x24a   : > { %1373 = vrot.lane.b32.xlu0 %v3552_v57, %s3269_s25 }
 0x251   : > { %806 = vmax.xlane.f32.xlu1 %v805_v50 }
 0x257   : > { %1332 = vrot.lane.b32.xlu2 %v3546_v48, %s3267_s21 }
 0x259   : > { %v798_v53 = vpop.xlane.xlu1 %797  ;;  %815 = vmax.xlane.f32.xlu1 %v814_v52 }
 0x25a   : > { %v820_v54 = vsub.f32 %v741_v31, %v798_v53 }
 0x25b   : > { %v1062_v56 = vpop.xlane.xlu0 %1061 }
 0x25c   : > { %v828_v55 = vmul.f32 1.442695, %v820_v54  ;;  %v1082_v62 = vsub.f32 %v1010_v33, %v1062_v56 }
 0x25e   : > { %2935 = vpow2.f32 %v828_v55  ;;  %v1091_v1 = vmul.f32 1.442695, %v1082_v62 }
 0x25f   : > { %1375 = vrot.lane.b32.xlu2 %v3557_v2, %s3269_s25 }
 0x261   : > { %v1059_v58 = vpop.xlane.xlu1 %1058  ;;  %v801_v59 = vpop.xlane.xlu2 %800 }
 0x262   : > { %v1081_v60 = vsub.f32 %v1008_v30, %v1059_v58  ;;  %v821_v61 = vsub.f32 %v743_v35, %v801_v59 }
 0x264   : > { %v830_v63 = vmul.f32 1.442695, %v821_v61  ;;  %v1089_v0 = vmul.f32 1.442695, %v1081_v60  ;;  %v2936_v3 = vpop.eup %2935 }
 0x265   : > { %v868_v5 = vpack.c.bf16 %v2936_v3, %v2936_v3  ;;  %v844_v19 = vsel %vm655_vm0, %v2936_v3, 0.0 }
 0x266   : > { %2937 = vpow2.f32 %v830_v63 }
 0x267   : > { %2939 = vpow2.f32 %v1089_v0  ;;  %v880_v11 = vunpack.c.l.b16 %v868_v5 }
 0x268   : > { %2941 = vpow2.f32 %v1091_v1 }
 0x269   : > { %v1021_v4 = vpop.permute.xlu2 %1020 }
 0x26c   : > { %v2938_v8 = vpop.eup %2937 }
 0x26d   : > { %v869_v9 = vpack.c.bf16 %v2938_v8, %v2938_v8  ;;  %v3631_v10 = vpop.eup %2939  ;;  %v847_v37 = vsel %vm655_vm0, %v2938_v8, 0.0 }
 0x26e   : > { %v3633_v16 = vpop.eup %2941  ;;  %v1129_v18 = vpack.c.bf16 %v3631_v10, %v3631_v10  ;;  %v1331_v34 = vpop.permute.xlu0 %1330 }
 0x26f   : > { %v881_v12 = vunpack.c.l.b16 %v869_v9  ;;  %v1130_v22 = vpack.c.bf16 %v3633_v16, %v3633_v16 }
 0x270   : > { %v1141_v23 = vunpack.c.l.b16 %v1129_v18 }
 0x271   : > { %v1150_v15 = vpop.permute.xlu2 %1149  ;;  %v884_v17 = vpack.c.b16 %v881_v12, %v880_v11  ;;  %v1142_v24 = vunpack.c.l.b16 %v1130_v22 }
 0x272   : > { %1165 = vmatpush.bf16.msrb.mxu0 %v1150_v15  ;;  %2826 = vmatpush.bf16.msrb.mxu1 %v1150_v15 }
 0x273   : > { %1188 = vrot.lane.b32.xlu1 %v3552_v57, %s3268_s9  ;;  %2725 = vmatmul.msk.bf16.vlgmr.msra.gmra.mxu2 %vm655_vm0, %v884_v17  ;;  %v1145_v30 = vpack.c.b16 %v1142_v24, %v1141_v23 }
 0x274   : > { %845 = vadd.xlane.f32.xlu0 %v844_v19 }
 0x276   : > { %v1191_v36 = vpop.permute.xlu0 %1190 }
 0x279   : > { %v1148_v25 = vpop.permute.xlu1 %1147  ;;  %v1337_v26 = vpop.permute.xlu2 %1336 }
 0x27a   : > { %v1348_v29 = vsel %vm719_vm1, %v1337_v26, 0  ;;  %1166 = vmatpush.bf16.msrb.mxu0 %v1148_v25  ;;  %2827 = vmatpush.bf16.msrb.mxu1 %v1148_v25 }
 0x27d   : > { %2733 = vmatmul.msk.bf16.vlgmr.msrb.gmra.mxu0 %vm655_vm0, %v1145_v30 }
 0x27e   : > { %1356 = vmatpush.bf16.xpose.msra.mxu0 %v1348_v29 }
 0x281   : > { %v1335_v31 = vpop.permute.xlu1 %1334 }
 0x282   : > { %v1345_v32 = vsel %vm719_vm1, %v1335_v31, 0 }
 0x283   : > { %2731 = vmatmul.msk.bf16.vlgmr.msrb.gmra.mxu2 %vm719_vm1, %v1019_v51 }
 0x286   : > { %1357 = vmatpush.bf16.xpose.msra.mxu0 %v1345_v32 }
 0x289   : > { %v930_v33 = vpop.permute.xlu1 %929 }
 0x28a   : > { %945 = vmatpush.bf16.msrb.mxu3 %v930_v33 }
 0x28d   : > { %2746 = vmatmul.msk.bf16.vlgmr.msra.gmra.mxu0 %vm719_vm1, %v1331_v34 }
 0x291   : > { %v928_v35 = vpop.permute.xlu1 %927 }
 0x292   : > { %946 = vmatpush.bf16.msrb.mxu3 %v928_v35 }
 0x293   : > { %2732 = vmatmul.msk.bf16.gmra.mxu2 %vm719_vm1, %v1021_v4 }
 0x29d   : > { %848 = vadd.xlane.f32.xlu1 %v847_v37 }
 0x2a1   : > { %v813_v44 = vpop.xlane.xlu0 %812 }
 0x2a2   : > { %v825_v46 = vsub.f32 %v3607_v42, %v813_v44  ;;  %v978_v44 = vld [vmem:[%s4377_s4] sm:$0xf] }
 0x2a4   : > { %v838_v47 = vmul.f32 1.442695, %v825_v46  ;;  %v1299_v46 = vsel %vm1253_vm2, %v978_v44, 0 }
 0x2a5   : > { %1308 = vmatpush.bf16.msra.mxu2 %v1299_v46 }
 0x2a6   : > { %2943 = vpow2.f32 %v838_v47 }
 0x2a9   : > { %v819_v9 = vpop.xlane.xlu0 %818 }
 0x2aa   : > { %v827_v15 = vsub.f32 %v3615_v45, %v819_v9 }
 0x2ac   : > { %v2944_v49 = vpop.eup %2943  ;;  %v842_v22 = vmul.f32 1.442695, %v827_v15 }
 0x2ad   : > { %v859_v50 = vsel %vm655_vm0, %v2944_v49, 0.0  ;;  %v873_v17 = vpack.c.bf16 %v2944_v49, %v2944_v49 }
 0x2ae   : > { %860 = vadd.xlane.f32.xlu0 %v859_v50 }
 0x2af   : > { %v922_v23 = vunpack.c.l.b16 %v873_v17 }
 0x2b2   : > { %v810_v51 = vpop.xlane.xlu2 %809 }
 0x2b3   : > { %v824_v55 = vsub.f32 %v3602_v41, %v810_v51 }
 0x2b5   : > { %v836_v58 = vmul.f32 1.442695, %v824_v55 }
 0x2ba   : > { %v1333_v52 = vpop.permute.xlu2 %1332 }
 0x2bb   : > { %2747 = vmatmul.msk.bf16.gmra.mxu0 %vm719_vm1, %v1333_v52 }
 0x2bc   : > { %v804_v53 = vpop.xlane.xlu1 %803  ;;  %v1374_v31 = vpop.permute.xlu0 %1373 }
 0x2bd   : > { %v822_v54 = vsub.f32 %v3589_v38, %v804_v53  ;;  %v1384_v32 = vsel %vm719_vm1, %v1374_v31, 0 }
 0x2bf   : > { %v832_v56 = vmul.f32 1.442695, %v822_v54 }
 0x2c1   : > { %2945 = vpow2.f32 %v832_v56 }
 0x2c2   : > { %2947 = vpow2.f32 %v836_v58  ;;  %v1376_v24 = vpop.permute.xlu2 %1375 }
 0x2c3   : > { %v1387_v29 = vsel %vm719_vm1, %v1376_v24, 0 }
 0x2c4   : > { %v807_v59 = vpop.xlane.xlu1 %806 }
 0x2c5   : > { %v823_v42 = vsub.f32 %v3597_v40, %v807_v59 }
 0x2c7   : > { %v2946_v60 = vpop.eup %2945  ;;  %v834_v61 = vmul.f32 1.442695, %v823_v42 }
 0x2c8   : > { %v850_v62 = vsel %vm655_vm0, %v2946_v60, 0.0  ;;  %v2948_v63 = vpop.eup %2947  ;;  %v870_v0 = vpack.c.bf16 %v2946_v60, %v2946_v60 }
 0x2c9   : > { %2949 = vpow2.f32 %v834_v61  ;;  %851 = vadd.xlane.f32.xlu2 %v850_v62  ;;  %v856_v38 = vsel %vm655_vm0, %v2948_v63, 0.0  ;;  %v872_v12 = vpack.c.bf16 %v2948_v63, %v2948_v63 }
 0x2ca   : > { %v882_v4 = vunpack.c.l.b16 %v870_v0 }
 0x2cb   : > { %v921_v19 = vunpack.c.l.b16 %v872_v12 }
 0x2cc   : > { %v816_v8 = vpop.xlane.xlu1 %815 }
 0x2cd   : > { %v826_v11 = vsub.f32 %v3611_v43, %v816_v8  ;;  %v925_v26 = vpack.c.b16 %v922_v23, %v921_v19 }
 0x2cf   : > { %v2950_v1 = vpop.eup %2949  ;;  %v840_v18 = vmul.f32 1.442695, %v826_v11 }
 0x2d0   : > { %v853_v41 = vsel %vm655_vm0, %v2950_v1, 0.0  ;;  %v871_v3 = vpack.c.bf16 %v2950_v1, %v2950_v1 }
 0x2d1   : > { %857 = vadd.xlane.f32.xlu2 %v856_v38  ;;  %854 = vadd.xlane.f32.xlu1 %v853_v41  ;;  %2951 = vpow2.f32 %v840_v18 }
 0x2d2   : > { %v883_v5 = vunpack.c.l.b16 %v871_v3  ;;  %2953 = vpow2.f32 %v842_v22 }
 0x2d4   : > { %v885_v40 = vpack.c.b16 %v883_v5, %v882_v4 }
 0x2d6   : > { %2726 = vmatmul.msk.bf16.vlgmr.msra.gmra.mxu3 %vm655_vm0, %v885_v40 }
 0x2d7   : > { %1206 = vmatpush.bf16.msra.mxu3 %v1191_v36  ;;  %v2952_v43 = vpop.eup %2951 }
 0x2d8   : > { %v2954_v30 = vpop.eup %2953  ;;  %v874_v45 = vpack.c.bf16 %v2952_v43, %v2952_v43  ;;  %v862_v41 = vsel %vm655_vm0, %v2952_v43, 0.0 }
 0x2d9   : > { %v875_v33 = vpack.c.bf16 %v2954_v30, %v2954_v30  ;;  %v865_v11 = vsel %vm655_vm0, %v2954_v30, 0.0 }
 0x2da   : > { %v923_v34 = vunpack.c.l.b16 %v874_v45 }
 0x2db   : > { %v924_v35 = vunpack.c.l.b16 %v875_v33 }
 0x2dd   : > { %v926_v36 = vpack.c.b16 %v924_v35, %v923_v34 }
 0x2e5   : > { %v1189_v25 = vpop.permute.xlu1 %1188 }
 0x2e6   : > { %1207 = vmatpush.bf16.msra.mxu3 %v1189_v25 }
 0x2e7   : > { %2727 = vmatmul.msk.bf16.vlgmr.msrb.gmra.mxu3 %vm655_vm0, %v925_v26  ;;  %v846_v51 = vpop.xlane.xlu0 %845 }
 0x2e8   : > { %2955 = vrcp.f32 %v846_v51 }
 0x2ea   : > { %1395 = vmatpush.bf16.xpose.msrb.mxu3 %v1387_v29 }
 0x2ee   : > { %v2956_v55 = vpop.eup %2955 }
 0x2f2   : > { %1396 = vmatpush.bf16.xpose.msrb.mxu3 %v1384_v32 }
 0x2f6   : > { %v907_v37 = vpop.f32.mrf.mxu2 }
 0x2f7   : > { %2728 = vmatmul.msk.bf16.gmra.mxu3 %vm655_vm0, %v926_v36  ;;  %v966_v59 = vmul.f32 %v2956_v55, %v907_v37 }
 0x2fa   : > { %v3693_v0 = vpop.f32.mrf.mxu0 }
 0x2fe   : > { %v909_v47 = vpop.f32.mrf.mxu2 }
 0x302   : > { %v3697_v1 = vpop.f32.mrf.mxu0 }
 0x306   : > { %v3670_v49 = vpop.f32.mrf.mxu2 }
 0x307   : > { %v1069_v50 = vsel %vm655_vm0, %v3670_v49, -inf }
 0x308   : > { %1070 = vmax.xlane.f32.xlu2 %v1069_v50 }
 0x30a   : > { %v3699_v38 = vpop.f32.mrf.mxu0 }
 0x30b   : > { %v1408_v18 = vsel %vm655_vm0, %v3699_v38, -inf }
 0x30e   : > { %v3674_v52 = vpop.f32.mrf.mxu2 }
 0x30f   : > { %v1072_v54 = vsel %vm655_vm0, %v3674_v52, -inf }
 0x310   : > { %v849_v53 = vpop.xlane.xlu1 %848  ;;  %1073 = vmax.xlane.f32.xlu1 %v1072_v54 }
 0x311   : > { %2957 = vrcp.f32 %v849_v53 }
 0x312   : > { %v3702_v3 = vpop.f32.mrf.mxu0 }
 0x313   : > { %v1411_v8 = vsel %vm655_vm0, %v3702_v3, -inf }
 0x316   : > { %v3678_v58 = vpop.f32.mrf.mxu2 }
 0x317   : > { %v2958_v56 = vpop.eup %2957  ;;  %v1075_v60 = vsel %vm655_vm0, %v3678_v58, -inf }
 0x318   : > { %v967_v42 = vmul.f32 %v2958_v56, %v909_v47  ;;  %1076 = vmax.xlane.f32.xlu2 %v1075_v60 }
 0x31a   : > { %v974_v61 = vpack.c.bf16 %v967_v42, %v966_v59 }
 0x31c   : > { %2742 = vmatmul.msk.bf16.vlgmr.msra.gmra.mxu2 %vm719_vm1, %v974_v61 }
 0x31e   : > { %v3683_v62 = vpop.f32.mrf.mxu2 }
 0x31f   : > { %v1078_v63 = vsel %vm655_vm0, %v3683_v62, -inf }
 0x320   : > { %1079 = vmax.xlane.f32.xlu0 %v1078_v63 }
 0x321   : > { %v861_v25 = vpop.xlane.xlu0 %860 }
 0x329   : > { %981 = vrot.lane.b32.xlu1 %v3546_v48, %s3263_s30  ;;  %s4285_s30 = scalar_lea.vmem [#allocation7], %s3471_s14  ;;  %s4423_s14 = sld [smem:[#allocation12_spill]] }
 0x32f   : > { %s2811_s29 = sshll.u32 %s4423_s14, 3 }
 0x330   : > { %1371 = vrot.lane.b32.xlu2 %v3557_v2, %s3267_s21 }
 0x334   : > { %1369 = vrot.lane.b32.xlu0 %v3552_v57, %s3267_s21  ;;  %s2571_s21 = sadd.s32 %s2812_s12, %s2811_s29 }
 0x335   : > { %s2813_s9 = sshll.u32 %s2571_s21, 3 }
 0x338   : > { %1650 = vrot.lane.b32.xlu2 %v3546_v48, %s3270_s15  ;;  %v3706_v9 = vpop.f32.mrf.mxu0 }
 0x33c   : > { %v852_v4 = vpop.xlane.xlu2 %851 }
 0x33d   : > { %2959 = vrcp.f32 %v852_v4 }
 0x340   : > { %v3711_v24 = vpop.f32.mrf.mxu0 }
 0x341   : > { %v1417_v29 = vsel %vm655_vm0, %v3711_v24, -inf }
 0x343   : > { %v2960_v12 = vpop.eup %2959 }
 0x344   : > { %v855_v5 = vpop.xlane.xlu1 %854  ;;  %v858_v26 = vpop.xlane.xlu2 %857 }
 0x345   : > { %2961 = vrcp.f32 %v855_v5 }
 0x346   : > { %2963 = vrcp.f32 %v861_v25 }
 0x347   : > { %2965 = vrcp.f32 %v858_v26 }
 0x34b   : > { %v2962_v15 = vpop.eup %2961 }
 0x34c   : > { %v2964_v30 = vpop.eup %2963 }
 0x34d   : > { %v2966_v31 = vpop.eup %2965 }
 0x353   : > { %863 = vadd.xlane.f32.xlu1 %v862_v41 }
 0x359   : > { %v912_v40 = vpop.f32.mrf.mxu3 }
 0x35a   : > { %v968_v19 = vmul.f32 %v2960_v12, %v912_v40 }
 0x35b   : > { %1412 = vmax.xlane.f32.xlu1 %v1411_v8  ;;  %v1414_v8 = vsel %vm655_vm0, %v3706_v9, -inf }
 0x35e   : > { %866 = vadd.xlane.f32.xlu0 %v865_v11 }
 0x361   : > { %v914_v17 = vpop.f32.mrf.mxu3  ;;  %1409 = vmax.xlane.f32.xlu2 %v1408_v18 }
 0x362   : > { %v969_v22 = vmul.f32 %v2962_v15, %v914_v17 }
 0x364   : > { %v975_v23 = vpack.c.bf16 %v969_v22, %v968_v19 }
 0x366   : > { %2743 = vmatmul.msk.bf16.gmra.mxu2 %vm719_vm1, %v975_v23 }
 0x369   : > { %1418 = vmax.xlane.f32.xlu2 %v1417_v29 }
 0x36a   : > { %v948_v43 = vpop.f32.mrf.mxu3 }
 0x36b   : > { %v970_v32 = vmul.f32 %v2966_v31, %v948_v43 }
 0x372   : > { %v950_v45 = vpop.f32.mrf.mxu3  ;;  %1648 = vrot.lane.b32.xlu0 %v3542_v39, %s3270_s15 }
 0x373   : > { %v971_v33 = vmul.f32 %v2964_v30, %v950_v45 }
 0x374   : > { %1500 = vrot.lane.b32.xlu1 %v3546_v48, %s3271_s27 }
 0x375   : > { %v976_v34 = vpack.c.bf16 %v971_v33, %v970_v32 }
 0x377   : > { %2744 = vmatmul.msk.bf16.gmra.mxu2 %vm719_vm1, %v976_v34 }
 0x37a   : > { %1644 = vrot.lane.b32.xlu0 %v3542_v39, %s3272_s16  ;;  %v953_v23 = vpop.f32.mrf.mxu3 }
 0x37b   : > { %v1071_v35 = vpop.xlane.xlu2 %1070 }
 0x37c   : > { %v1085_v36 = vsub.f32 %v3670_v49, %v1071_v35 }
 0x37e   : > { %v1097_v37 = vmul.f32 1.442695, %v1085_v36 }
 0x380   : > { %2967 = vpow2.f32 %v1097_v37 }
 0x381   : > { %1689 = vrot.lane.b32.xlu2 %v3557_v2, %s3270_s15 }
 0x382   : > { %1498 = vrot.lane.b32.xlu0 %v3542_v39, %s3271_s27  ;;  %v955_v43 = vpop.f32.mrf.mxu3 }
 0x383   : > { %v1074_v44 = vpop.xlane.xlu1 %1073 }
 0x384   : > { %v1086_v46 = vsub.f32 %v3674_v52, %v1074_v44 }
 0x386   : > { %v1099_v47 = vmul.f32 1.442695, %v1086_v46  ;;  %v3729_v50 = vpop.eup %2967 }
 0x387   : > { %v1133_v53 = vpack.c.bf16 %v3729_v50, %v3729_v50 }
 0x388   : > { %2969 = vpow2.f32 %v1099_v47 }
 0x389   : > { %v1182_v52 = vunpack.c.l.b16 %v1133_v53 }
 0x38a   : > { %1646 = vrot.lane.b32.xlu0 %v3546_v48, %s3272_s16 }
 0x38b   : > { %v1077_v51 = vpop.xlane.xlu2 %1076 }
 0x38c   : > { %v1087_v49 = vsub.f32 %v3678_v58, %v1077_v51 }
 0x38e   : > { %v3736_v54 = vpop.eup %2969  ;;  %v1101_v56 = vmul.f32 1.442695, %v1087_v49 }
 0x38f   : > { %v1134_v55 = vpack.c.bf16 %v3736_v54, %v3736_v54 }
 0x390   : > { %2971 = vpow2.f32 %v1101_v56 }
 0x391   : > { %v1183_v59 = vunpack.c.l.b16 %v1134_v55 }
 0x392   : > { %1687 = vrot.lane.b32.xlu0 %v3552_v57, %s3270_s15  ;;  %s4420_s15 = sld [smem:[#allocation22_spill]] }
 0x393   : > { %v1186_v42 = vpack.c.b16 %v1183_v59, %v1182_v52  ;;  %v1372_v60 = vpop.permute.xlu2 %1371  ;;  %v1080_v61 = vpop.xlane.xlu0 %1079 }
 0x394   : > { %v1088_v58 = vsub.f32 %v3683_v62, %v1080_v61 }
 0x395   : > { %2735 = vmatmul.msk.bf16.vlgmr.msra.gmra.mxu3 %vm655_vm0, %v1186_v42 }
 0x396   : > { %v1103_v63 = vmul.f32 1.442695, %v1088_v58  ;;  %v3744_v41 = vpop.eup %2971 }
 0x397   : > { %v1135_v62 = vpack.c.bf16 %v3744_v41, %v3744_v41 }
 0x398   : > { %2973 = vpow2.f32 %v1103_v63 }
 0x399   : > { %v1184_v15 = vunpack.c.l.b16 %v1135_v62 }
 0x39a   : > { %1683 = vrot.lane.b32.xlu0 %v3552_v57, %s3272_s16 }
 0x39b   : > { %v982_v4 = vpop.permute.xlu1 %981  ;;  %v1651_v5 = vpop.permute.xlu2 %1650 }
 0x39c   : > { %v1662_v40 = vsel %vm719_vm1, %v1651_v5, 0  ;;  %2730 = vmatmul.msk.bf16.gmra.mxu1 %vm719_vm1, %v982_v4 }
 0x39d   : > { %1670 = vmatpush.bf16.xpose.msrb.mxu2 %v1662_v40 }
 0x39e   : > { %v3754_v11 = vpop.eup %2973  ;;  %1415 = vmax.xlane.f32.xlu1 %v1414_v8 }
 0x39f   : > { %v1136_v12 = vpack.c.bf16 %v3754_v11, %v3754_v11 }
 0x3a1   : > { %v1185_v17 = vunpack.c.l.b16 %v1136_v12 }
 0x3a2   : > { %1685 = vrot.lane.b32.xlu0 %v3557_v2, %s3272_s16 }
 0x3a3   : > { %v1187_v18 = vpack.c.b16 %v1185_v17, %v1184_v15 }
 0x3a5   : > { %2736 = vmatmul.msk.bf16.gmra.mxu3 %vm655_vm0, %v1187_v18 }
 0x3a6   : > { %v1370_v19 = vpop.permute.xlu0 %1369 }
 0x3b5   : > { %2748 = vmatmul.msk.bf16.vlgmr.msrb.gmra.mxu3 %vm719_vm1, %v1370_v19 }
 0x3b7   : > { %1541 = vrot.lane.b32.xlu1 %v3557_v2, %s3271_s27 }
 0x3c5   : > { %2749 = vmatmul.msk.bf16.gmra.mxu3 %vm719_vm1, %v1372_v60 }
 0x3c6   : > { %v864_v22 = vpop.xlane.xlu1 %863 }
 0x3c7   : > { %2975 = vrcp.f32 %v864_v22 }
 0x3cd   : > { %v2976_v26 = vpop.eup %2975 }
 0x3ce   : > { %v972_v30 = vmul.f32 %v2976_v26, %v953_v23  ;;  %v1413_v33 = vpop.xlane.xlu1 %1412 }
 0x3cf   : > { %v1433_v35 = vsub.f32 %v3702_v3, %v1413_v33 }
 0x3d1   : > { %v867_v25 = vpop.xlane.xlu0 %866  ;;  %v1442_v37 = vmul.f32 1.442695, %v1433_v35 }
 0x3d2   : > { %2977 = vrcp.f32 %v867_v25 }
 0x3d4   : > { %v1410_v45 = vpop.xlane.xlu2 %1409 }
 0x3d5   : > { %v1432_v34 = vsub.f32 %v3699_v38, %v1410_v45 }
 0x3d7   : > { %v1440_v36 = vmul.f32 1.442695, %v1432_v34 }
 0x3d8   : > { %v2978_v29 = vpop.eup %2977 }
 0x3d9   : > { %v973_v31 = vmul.f32 %v2978_v29, %v955_v43  ;;  %2979 = vpow2.f32 %v1440_v36 }
 0x3da   : > { %2981 = vpow2.f32 %v1442_v37 }
 0x3db   : > { %v977_v32 = vpack.c.bf16 %v973_v31, %v972_v30  ;;  %v3799_v31 = vpop.f32.mrf.mxu2 }
 0x3dc   : > { %v1419_v51 = vpop.xlane.xlu2 %1418 }
 0x3dd   : > { %2745 = vmatmul.msk.bf16.gmra.mxu2 %vm719_vm1, %v977_v32  ;;  %v1435_v5 = vsub.f32 %v3711_v24, %v1419_v51 }
 0x3df   : > { %v3769_v49 = vpop.eup %2979  ;;  %v1446_v40 = vmul.f32 1.442695, %v1435_v5 }
 0x3e0   : > { %v3771_v55 = vpop.eup %2981  ;;  %v1480_v38 = vpack.c.bf16 %v3769_v49, %v3769_v49 }
 0x3e1   : > { %v1481_v3 = vpack.c.bf16 %v3771_v55, %v3771_v55  ;;  %2983 = vpow2.f32 %v1446_v40 }
 0x3e2   : > { %v1492_v56 = vunpack.c.l.b16 %v1480_v38 }
 0x3e3   : > { %v1493_v59 = vunpack.c.l.b16 %v1481_v3  ;;  %v3805_v34 = vpop.f32.mrf.mxu2 }
 0x3e4   : > { %v1649_v44 = vpop.permute.xlu0 %1648  ;;  %v1690_v52 = vpop.permute.xlu2 %1689 }
 0x3e5   : > { %v1659_v46 = vsel %vm719_vm1, %v1649_v44, 0  ;;  %v1701_v60 = vsel %vm719_vm1, %v1690_v52, 0  ;;  %v1496_v61 = vpack.c.b16 %v1493_v59, %v1492_v56 }
 0x3e6   : > { %v1501_v47 = vpop.permute.xlu1 %1500  ;;  %1671 = vmatpush.bf16.xpose.msrb.mxu2 %v1659_v46 }
 0x3e7   : > { %1516 = vmatpush.bf16.msrb.mxu0 %v1501_v47  ;;  %v3784_v15 = vpop.eup %2983 }
 0x3e8   : > { %v1483_v22 = vpack.c.bf16 %v3784_v15, %v3784_v15 }
 0x3eb   : > { %v3811_v44 = vpop.f32.mrf.mxu2 }
 0x3ec   : > { %v1645_v53 = vpop.permute.xlu0 %1644 }
 0x3ed   : > { %2759 = vmatmul.msk.bf16.vlgmr.msrb.gmra.mxu2 %vm719_vm1, %v1645_v53 }
 0x3f3   : > { %v3817_v53 = vpop.f32.mrf.mxu2 }
 0x3f4   : > { %v1499_v42 = vpop.permute.xlu0 %1498 }
 0x3f5   : > { %1517 = vmatpush.bf16.msrb.mxu0 %v1499_v42 }
 0x3f8   : > { %2750 = vmatmul.msk.bf16.vlgmr.msrb.gmra.mxu0 %vm655_vm0, %v1496_v61 }
 0x3f9   : > { %1709 = vmatpush.bf16.xpose.msra.mxu0 %v1701_v60 }
 0x3fb   : > { %v3819_v38 = vpop.f32.mrf.mxu2 }
 0x3fc   : > { %v1647_v58 = vpop.permute.xlu0 %1646 }
 0x3fd   : > { %2760 = vmatmul.msk.bf16.gmra.mxu2 %vm719_vm1, %v1647_v58 }
 0x403   : > { %v3821_v3 = vpop.f32.mrf.mxu2 }
 0x404   : > { %v1688_v63 = vpop.permute.xlu0 %1687 }
 0x405   : > { %v1698_v4 = vsel %vm719_vm1, %v1688_v63, 0 }
 0x406   : > { %1710 = vmatpush.bf16.xpose.msra.mxu0 %v1698_v4 }
 0x40c   : > { %v1684_v35 = vpop.permute.xlu0 %1683 }
 0x411   : > { %v1416_v8 = vpop.xlane.xlu1 %1415 }
 0x412   : > { %v1434_v62 = vsub.f32 %v3706_v9, %v1416_v8  ;;  %v1495_v9 = vunpack.c.l.b16 %v1483_v22 }
 0x414   : > { %v1444_v12 = vmul.f32 1.442695, %v1434_v62  ;;  %v1686_v51 = vpop.permute.xlu0 %1685 }
 0x416   : > { %2985 = vpow2.f32 %v1444_v12 }
 0x418   : > { %v3786_v17 = vpop.f32.mrf.mxu3 }
 0x419   : > { %v1013_v18 = vpop.f32.mrf.mxu1 }
 0x41a   : > { %v1063_v19 = vsel %vm655_vm0, %v1013_v18, -inf }
 0x41b   : > { %1064 = vmax.xlane.f32.xlu2 %v1063_v19 }
 0x41c   : > { %v3791_v23 = vpop.eup %2985 }
 0x41d   : > { %v1482_v24 = vpack.c.bf16 %v3791_v23, %v3791_v23 }
 0x41f   : > { %v1494_v25 = vunpack.c.l.b16 %v1482_v24 }
 0x420   : > { %v3795_v26 = vpop.f32.mrf.mxu3 }
 0x421   : > { %v1015_v29 = vpop.f32.mrf.mxu1  ;;  %v1497_v43 = vpack.c.b16 %v1495_v9, %v1494_v25 }
 0x422   : > { %v1066_v30 = vsel %vm655_vm0, %v1015_v29, -inf }
 0x423   : > { %1067 = vmax.xlane.f32.xlu0 %v1066_v30  ;;  %2751 = vmatmul.msk.bf16.gmra.mxu0 %vm655_vm0, %v1497_v43 }
 0x428   : > { %v3801_v45 = vpop.f32.mrf.mxu3 }
 0x429   : > { %v1542_v32 = vpop.permute.xlu1 %1541 }
 0x42a   : > { %1557 = vmatpush.bf16.msra.mxu3 %v1542_v32 }
 0x430   : > { %v3803_v33 = vpop.f32.mrf.mxu3 }
 0x433   : > { %1539 = vrot.lane.b32.xlu2 %v3552_v57, %s3271_s27  ;;  %2761 = vmatmul.msk.bf16.vlgmr.msra.gmra.mxu0 %vm719_vm1, %v1684_v35  ;;  %s4426_s27 = smov %s4425_s24 }
 0x434   : > { %s3177_s12 = scalar_lea.hbm %s4426_s27, 512 }
 0x438   : > { %v1398_v36 = vpop.f32.mrf.mxu3 }
 0x439   : > { %v1420_v37 = vsel %vm655_vm0, %v1398_v36, -inf }
 0x43a   : > { %1421 = vmax.xlane.f32.xlu1 %v1420_v37 }
 0x43b   : > { %1814 = vrot.lane.b32.xlu2 %v3546_v48, %s3273_s17 }
 0x440   : > { %v1400_v46 = vpop.f32.mrf.mxu3 }
 0x441   : > { %v1423_v47 = vsel %vm655_vm0, %v1400_v46, -inf }
 0x442   : > { %1424 = vmax.xlane.f32.xlu1 %v1423_v47 }
 0x443   : > { %2762 = vmatmul.msk.bf16.gmra.mxu0 %vm719_vm1, %v1686_v51 }
 0x448   : > { %v3835_v61 = vpop.f32.mrf.mxu3 }
 0x449   : > { %v1426_v63 = vsel %vm655_vm0, %v3835_v61, -inf }
 0x460   : > { %v3823_v56 = vpop.f32.mrf.mxu2 }
 0x468   : > { %v3825_v52 = vpop.f32.mrf.mxu2 }
 0x470   : > { %v3827_v59 = vpop.f32.mrf.mxu2 }
 0x471   : > { %v1722_v48 = vsel %vm655_vm0, %v3827_v59, -inf }
 0x472   : > { %1723 = vmax.xlane.f32.xlu0 %v1722_v48 }
 0x475   : > { %v3843_v5 = vpop.f32.mrf.mxu0 }
 0x478   : > { %v3831_v42 = vpop.f32.mrf.mxu2 }
 0x479   : > { %v1725_v60 = vsel %vm655_vm0, %v3831_v42, -inf }
 0x47a   : > { %1726 = vmax.xlane.f32.xlu0 %v1725_v60 }
 0x47d   : > { %v3847_v24 = vpop.f32.mrf.mxu0 }
 0x480   : > { %v3837_v58 = vpop.f32.mrf.mxu2 }
 0x481   : > { %v1728_v4 = vsel %vm655_vm0, %v3837_v58, -inf }
 0x482   : > { %1427 = vmax.xlane.f32.xlu0 %v1426_v63  ;;  %1729 = vmax.xlane.f32.xlu2 %v1728_v4 }
 0x48e   : > { %v1065_v40 = vpop.xlane.xlu2 %1064 }
 0x48f   : > { %v1083_v8 = vsub.f32 %v1013_v18, %v1065_v40 }
 0x491   : > { %v1093_v62 = vmul.f32 1.442695, %v1083_v8 }
 0x493   : > { %2987 = vpow2.f32 %v1093_v62 }
 0x496   : > { %v1540_v12 = vpop.permute.xlu2 %1539  ;;  %1812 = vrot.lane.b32.xlu0 %v3542_v39, %s3273_s17  ;;  %v1068_v19 = vpop.xlane.xlu0 %1067 }
 0x497   : > { %v1084_v22 = vsub.f32 %v1015_v29, %v1068_v19  ;;  %1558 = vmatpush.bf16.msra.mxu3 %v1540_v12 }
 0x499   : > { %v1095_v25 = vmul.f32 1.442695, %v1084_v22  ;;  %v2988_v9 = vpop.eup %2987  ;;  %v3868_v22 = vpop.f32.mrf.mxu3 }
 0x49a   : > { %1853 = vrot.lane.b32.xlu2 %v3552_v57, %s3273_s17  ;;  %v1131_v18 = vpack.c.bf16 %v2988_v9, %v2988_v9 }
 0x49b   : > { %2989 = vpow2.f32 %v1095_v25 }
 0x49c   : > { %v1143_v39 = vunpack.c.l.b16 %v1131_v18 }
 0x49e   : > { %v1815_v43 = vpop.permute.xlu2 %1814 }
 0x49f   : > { %1830 = vmatpush.bf16.msrb.mxu3 %v1815_v43 }
 0x4a0   : > { %v3851_v30 = vpop.f32.mrf.mxu0 }
 0x4a1   : > { %v2990_v32 = vpop.eup %2989 }
 0x4a2   : > { %v1132_v35 = vpack.c.bf16 %v2990_v32, %v2990_v32 }
 0x4a4   : > { %v1144_v37 = vunpack.c.l.b16 %v1132_v35  ;;  %v1429_v35 = vsel %vm655_vm0, %v3868_v22, -inf }
 0x4a6   : > { %v1146_v47 = vpack.c.b16 %v1144_v37, %v1143_v39  ;;  %v1105_v39 = vsel %vm655_vm0, %v3631_v10, 0.0  ;;  %v1111_v10 = vsel %vm655_vm0, %v2988_v9, 0.0  ;;  %v1120_v9 = vsel %vm655_vm0, %v3736_v54, 0.0 }
 0x4a8   : > { %2734 = vmatmul.msk.bf16.vlgmr.msrb.gmra.mxu1 %vm655_vm0, %v1146_v47  ;;  %v3854_v29 = vpop.f32.mrf.mxu0 }
 0x4ad   : > { %v1422_v51 = vpop.xlane.xlu1 %1421 }
 0x4ae   : > { %v1436_v48 = vsub.f32 %v1398_v36, %v1422_v51  ;;  %v3866_v36 = vpop.f32.mrf.mxu2 }
 0x4b0   : > { %v3856_v60 = vpop.f32.mrf.mxu0  ;;  %v1448_v63 = vmul.f32 1.442695, %v1436_v48 }
 0x4b1   : > { %v1734_v57 = vsel %vm655_vm0, %v3856_v60, -inf }
 0x4b2   : > { %1735 = vmax.xlane.f32.xlu1 %v1734_v57  ;;  %2991 = vpow2.f32 %v1448_v63  ;;  %v1456_v63 = vsel %vm655_vm0, %v3769_v49, 0.0  ;;  %v1117_v49 = vsel %vm655_vm0, %v3729_v50, 0.0  ;;  %v1126_v50 = vsel %vm655_vm0, %v3754_v11, 0.0 }
 0x4b5   : > { %v1425_v4 = vpop.xlane.xlu1 %1424 }
 0x4b6   : > { %v1437_v40 = vsub.f32 %v1400_v46, %v1425_v4  ;;  %v1731_v46 = vsel %vm655_vm0, %v3866_v36, -inf  ;;  %v1108_v4 = vsel %vm655_vm0, %v3633_v16, 0.0 }
 0x4b8   : > { %v1450_v8 = vmul.f32 1.442695, %v1437_v40  ;;  %v3860_v62 = vpop.f32.mrf.mxu0  ;;  %v3864_v19 = vpop.eup %2991  ;;  %v1114_v40 = vsel %vm655_vm0, %v2990_v32, 0.0 }
 0x4b9   : > { %v1737_v12 = vsel %vm655_vm0, %v3860_v62, -inf  ;;  %v1484_v25 = vpack.c.bf16 %v3864_v19, %v3864_v19 }
 0x4ba   : > { %2993 = vpow2.f32 %v1450_v8  ;;  %1738 = vmax.xlane.f32.xlu1 %v1737_v12 }
 0x4bb   : > { %v1533_v37 = vunpack.c.l.b16 %v1484_v25 }
 0x4c0   : > { %v3874_v43 = vpop.eup %2993  ;;  %1732 = vmax.xlane.f32.xlu0 %v1731_v46  ;;  %v3882_v51 = vpop.f32.mrf.mxu0 }
 0x4c1   : > { %v1485_v18 = vpack.c.bf16 %v3874_v43, %v3874_v43  ;;  %v1740_v57 = vsel %vm655_vm0, %v3882_v51, -inf }
 0x4c2   : > { %1430 = vmax.xlane.f32.xlu1 %v1429_v35 }
 0x4c3   : > { %v1534_v47 = vunpack.c.l.b16 %v1485_v18  ;;  %1106 = vadd.xlane.f32.xlu2 %v1105_v39 }
 0x4c5   : > { %v1537_v48 = vpack.c.b16 %v1534_v47, %v1533_v37 }
 0x4c7   : > { %2752 = vmatmul.msk.bf16.vlgmr.msra.gmra.mxu3 %vm655_vm0, %v1537_v48 }
 0x4c8   : > { %1741 = vmax.xlane.f32.xlu0 %v1740_v57 }
 0x4cb   : > { %1457 = vadd.xlane.f32.xlu2 %v1456_v63 }
 0x4d0   : > { %1109 = vadd.xlane.f32.xlu0 %v1108_v4 }
 0x4d8   : > { %1112 = vadd.xlane.f32.xlu0 %v1111_v10  ;;  %v3915_v10 = vpop.f32.mrf.mxu0 }
 0x4db   : > { %1855 = vrot.lane.b32.xlu1 %v3557_v2, %s3273_s17  ;;  %s4421_s17 = sld [smem:[#allocation23_spill]] }
 0x4e0   : > { %1115 = vadd.xlane.f32.xlu0 %v1114_v40 }
 0x4e5   : > { %v1724_v8 = vpop.xlane.xlu0 %1723 }
 0x4e6   : > { %v1746_v12 = vsub.f32 %v3827_v59, %v1724_v8 }
 0x4e8   : > { %1118 = vadd.xlane.f32.xlu0 %v1117_v49  ;;  %v1754_v25 = vmul.f32 1.442695, %v1746_v12  ;;  %v1743_v12 = vsel %vm655_vm0, %v3915_v10, -inf  ;;  %v1465_v49 = vsel %vm655_vm0, %v3784_v15, 0.0  ;;  %v1459_v15 = vsel %vm655_vm0, %v3771_v55, 0.0 }
 0x4ea   : > { %2995 = vpow2.f32 %v1754_v25 }
 0x4ed   : > { %v1727_v46 = vpop.xlane.xlu0 %1726 }
 0x4ee   : > { %v1747_v16 = vsub.f32 %v3831_v42, %v1727_v46  ;;  %v1123_v46 = vsel %vm655_vm0, %v3744_v41, 0.0  ;;  %v2737_v41 = vld [vmem:[%s4377_s4 + $0x4] sm:$0xf] }
 0x4f0   : > { %v1756_v18 = vmul.f32 1.442695, %v1747_v16  ;;  %1121 = vadd.xlane.f32.xlu0 %v1120_v9  ;;  %v2996_v2 = vpop.eup %2995  ;;  %v1468_v9 = vsel %vm655_vm0, %v3864_v19, 0.0 }
 0x4f1   : > { %v1794_v59 = vpack.c.bf16 %v2996_v2, %v2996_v2  ;;  %v1770_v63 = vsel %vm655_vm0, %v2996_v2, 0.0 }
 0x4f2   : > { %2997 = vpow2.f32 %v1756_v18 }
 0x4f3   : > { %v3905_v54 = vunpack.c.l.b16 %v1794_v59 }
 0x4f5   : > { %v1730_v32 = vpop.xlane.xlu2 %1729 }
 0x4f6   : > { %v1748_v35 = vsub.f32 %v3837_v58, %v1730_v32  ;;  %v1428_v58 = vpop.xlane.xlu0 %1427  ;;  %v1255_v32 = vsel %vm1253_vm2, %v2737_v41, 0 }
 0x4f7   : > { %v1438_v11 = vsub.f32 %v3835_v61, %v1428_v58  ;;  %v1471_v61 = vsel %vm655_vm0, %v3874_v43, 0.0  ;;  %v1462_v43 = vsel %vm655_vm0, %v3791_v23, 0.0  ;;  %1264 = vmatpush.bf16.msra.mxu1 %v1255_v32 }
 0x4f8   : > { %v2998_v39 = vpop.eup %2997  ;;  %v1758_v37 = vmul.f32 1.442695, %v1748_v35  ;;  %1127 = vadd.xlane.f32.xlu0 %v1126_v50 }
 0x4f9   : > { %v1795_v47 = vpack.c.bf16 %v2998_v39, %v2998_v39  ;;  %v1773_v42 = vsel %vm655_vm0, %v2998_v39, 0.0  ;;  %v1452_v8 = vmul.f32 1.442695, %v1438_v11 }
 0x4fa   : > { %2999 = vpow2.f32 %v1758_v37  ;;  %1774 = vadd.xlane.f32.xlu2 %v1773_v42 }
 0x4fb   : > { %v3907_v48 = vunpack.c.l.b16 %v1795_v47  ;;  %3001 = vpow2.f32 %v1452_v8 }
 0x4fd   : > { %v1810_v57 = vpack.c.b16 %v3907_v48, %v3905_v54  ;;  %v1854_v42 = vpop.permute.xlu2 %1853 }
 0x500   : > { %v3912_v4 = vpop.eup %2999  ;;  %1771 = vadd.xlane.f32.xlu0 %v1770_v63 }
 0x501   : > { %v1776_v40 = vsel %vm655_vm0, %v3912_v4, 0.0  ;;  %v3002_v16 = vpop.eup %3001 }
 0x502   : > { %1777 = vadd.xlane.f32.xlu2 %v1776_v40  ;;  %v1474_v18 = vsel %vm655_vm0, %v3002_v16, 0.0 }
 0x505   : > { %1744 = vmax.xlane.f32.xlu1 %v1743_v12 }
 0x508   : > { %1466 = vadd.xlane.f32.xlu0 %v1465_v49  ;;  %v1813_v25 = vpop.permute.xlu0 %1812 }
 0x509   : > { %1831 = vmatpush.bf16.msrb.mxu3 %v1813_v25  ;;  %v1486_v25 = vpack.c.bf16 %v3002_v16, %v3002_v16 }
 0x50a   : > { %1472 = vadd.xlane.f32.xlu2 %v1471_v61 }
 0x50d   : > { %1124 = vadd.xlane.f32.xlu1 %v1123_v46 }
 0x510   : > { %1469 = vadd.xlane.f32.xlu0 %v1468_v9  ;;  %v1535_v9 = vunpack.c.l.b16 %v1486_v25 }
 0x512   : > { %1475 = vadd.xlane.f32.xlu2 %v1474_v18 }
 0x515   : > { %1460 = vadd.xlane.f32.xlu1 %v1459_v15 }
 0x51d   : > { %1463 = vadd.xlane.f32.xlu1 %v1462_v43 }
 0x525   : > { %v1736_v2 = vpop.xlane.xlu1 %1735 }
 0x526   : > { %v1750_v23 = vsub.f32 %v3856_v60, %v1736_v2 }
 0x528   : > { %v1762_v40 = vmul.f32 1.442695, %v1750_v23 }
 0x52d   : > { %v1739_v19 = vpop.xlane.xlu1 %1738 }
 0x52e   : > { %v1751_v35 = vsub.f32 %v3860_v62, %v1739_v19 }
 0x530   : > { %v1764_v59 = vmul.f32 1.442695, %v1751_v35 }
 0x532   : > { %3003 = vpow2.f32 %v1764_v59 }
 0x533   : > { %v1733_v50 = vpop.xlane.xlu0 %1732 }
 0x534   : > { %v1749_v55 = vsub.f32 %v3866_v36, %v1733_v50 }
 0x535   : > { %v1431_v39 = vpop.xlane.xlu1 %1430 }
 0x536   : > { %v1760_v37 = vmul.f32 1.442695, %v1749_v55  ;;  %v1439_v47 = vsub.f32 %v3868_v22, %v1431_v39  ;;  %v1107_v49 = vpop.xlane.xlu2 %1106 }
 0x538   : > { %v3004_v58 = vpop.eup %3003  ;;  %3005 = vpow2.f32 %v1760_v37  ;;  %v1454_v63 = vmul.f32 1.442695, %v1439_v47 }
 0x539   : > { %v1785_v11 = vsel %vm655_vm0, %v3004_v58, 0.0  ;;  %v1799_v19 = vpack.c.bf16 %v3004_v58, %v3004_v58 }
 0x53a   : > { %3007 = vpow2.f32 %v1454_v63  ;;  %1786 = vadd.xlane.f32.xlu0 %v1785_v11  ;;  %v1173_v63 = vpop.f32.mrf.mxu1 }
 0x53b   : > { %v1742_v62 = vpop.xlane.xlu0 %1741  ;;  %3009 = vpow2.f32 %v1762_v40  ;;  %v1848_v37 = vunpack.c.l.b16 %v1799_v19 }
 0x53c   : > { %v1752_v8 = vsub.f32 %v3882_v51, %v1742_v62 }
 0x53e   : > { %v3006_v12 = vpop.eup %3005  ;;  %v1766_v36 = vmul.f32 1.442695, %v1752_v8 }
 0x53f   : > { %v1779_v60 = vsel %vm655_vm0, %v3006_v12, 0.0  ;;  %v1797_v25 = vpack.c.bf16 %v3006_v12, %v3006_v12 }
 0x540   : > { %v3008_v22 = vpop.eup %3007  ;;  %3011 = vpow2.f32 %v1766_v36  ;;  %1780 = vadd.xlane.f32.xlu1 %v1779_v60 }
 0x541   : > { %v1487_v61 = vpack.c.bf16 %v3008_v22, %v3008_v22  ;;  %3013 = vrcp.f32 %v1107_v49  ;;  %v3010_v15 = vpop.eup %3009  ;;  %v1477_v47 = vsel %vm655_vm0, %v3008_v22, 0.0  ;;  %v1809_v22 = vunpack.c.l.b16 %v1797_v25 }
 0x542   : > { %v1782_v51 = vsel %vm655_vm0, %v3010_v15, 0.0  ;;  %v1798_v55 = vpack.c.bf16 %v3010_v15, %v3010_v15  ;;  %v1175_v62 = vpop.f32.mrf.mxu1 }
 0x543   : > { %v1110_v46 = vpop.xlane.xlu0 %1109  ;;  %v1536_v18 = vunpack.c.l.b16 %v1487_v61 }
 0x544   : > { %3015 = vrcp.f32 %v1110_v46  ;;  %v1847_v11 = vunpack.c.l.b16 %v1798_v55 }
 0x545   : > { %v1538_v43 = vpack.c.b16 %v1536_v18, %v1535_v9 }
 0x546   : > { %v3945_v2 = vpop.eup %3011  ;;  %v1851_v58 = vpack.c.b16 %v1848_v37, %v1847_v11  ;;  %v1458_v11 = vpop.xlane.xlu2 %1457 }
 0x547   : > { %2753 = vmatmul.msk.bf16.gmra.mxu3 %vm655_vm0, %v1538_v43  ;;  %v1788_v16 = vsel %vm655_vm0, %v3945_v2, 0.0  ;;  %v3014_v41 = vpop.eup %3013 }
 0x548   : > { %1783 = vadd.xlane.f32.xlu1 %v1782_v51  ;;  %1789 = vadd.xlane.f32.xlu0 %v1788_v16  ;;  %v1227_v35 = vmul.f32 %v3014_v41, %v3693_v0 }
 0x54a   : > { %v3016_v32 = vpop.eup %3015 }
 0x54b   : > { %v1228_v59 = vmul.f32 %v3016_v32, %v3697_v1  ;;  %v1113_v50 = vpop.xlane.xlu0 %1112 }
 0x54c   : > { %3017 = vrcp.f32 %v1113_v50 }
 0x54d   : > { %v1235_v39 = vpack.c.bf16 %v1228_v59, %v1227_v35  ;;  %v1856_v23 = vpop.permute.xlu1 %1855 }
 0x54e   : > { %1871 = vmatpush.bf16.msra.mxu2 %v1856_v23 }
 0x54f   : > { %2738 = vmatmul.msk.bf16.vlgmr.msra.gmra.mxu1 %vm719_vm1, %v1235_v39 }
 0x550   : > { %1478 = vadd.xlane.f32.xlu1 %v1477_v47 }
 0x552   : > { %1872 = vmatpush.bf16.msra.mxu2 %v1854_v42  ;;  %v3018_v0 = vpop.eup %3017  ;;  %v1796_v42 = vpack.c.bf16 %v3912_v4, %v3912_v4  ;;  %v2754_v4 = vld [vmem:[%s4377_s4 + $0x8] sm:$0xf] }
 0x553   : > { %v1116_v40 = vpop.xlane.xlu0 %1115  ;;  %v1229_v36 = vmul.f32 %v3018_v0, %v1173_v63  ;;  %v1605_v15 = vsel %vm1253_vm2, %v2754_v4, 0 }
 0x554   : > { %3019 = vrcp.f32 %v1116_v40  ;;  %v1808_v46 = vunpack.c.l.b16 %v1796_v42  ;;  %1614 = vmatpush.bf16.msrb.mxu1 %v1605_v15 }
 0x555   : > { %2765 = vmatmul.msk.bf16.vlgmr.msra.gmra.mxu2 %vm655_vm0, %v1851_v58 }
 0x556   : > { %v1811_v54 = vpack.c.b16 %v1809_v22, %v1808_v46 }
 0x557   : > { %2763 = vmatmul.msk.bf16.vlgmr.msrb.gmra.mxu3 %vm655_vm0, %v1810_v57 }
 0x55a   : > { %v3020_v1 = vpop.eup %3019 }
 0x55b   : > { %v1119_v8 = vpop.xlane.xlu0 %1118  ;;  %v1230_v49 = vmul.f32 %v3020_v1, %v1175_v62 }
 0x55c   : > { %3021 = vrcp.f32 %v1119_v8 }
 0x55d   : > { %v1236_v60 = vpack.c.bf16 %v1230_v49, %v1229_v36 }
 0x55f   : > { %2739 = vmatmul.msk.bf16.gmra.mxu1 %vm719_vm1, %v1236_v60  ;;  %v2767_v60 = vld [vmem:[%s4377_s4 + $0xc] sm:$0xf] }
 0x560   : > { %v1919_v42 = vsel %vm1253_vm2, %v2767_v60, 0 }
 0x561   : > { %1928 = vmatpush.bf16.msrb.mxu0 %v1919_v42 }
 0x562   : > { %v3022_v48 = vpop.eup %3021 }
 0x563   : > { %v1122_v61 = vpop.xlane.xlu0 %1121  ;;  %v1231_v9 = vmul.f32 %v3022_v48, %v3786_v17 }
 0x564   : > { %3023 = vrcp.f32 %v1122_v61 }
 0x567   : > { %2764 = vmatmul.msk.bf16.gmra.mxu3 %vm655_vm0, %v1811_v54  ;;  %v1560_v54 = vpop.f32.mrf.mxu3 }
 0x56a   : > { %v3024_v57 = vpop.eup %3023 }
 0x56b   : > { %v1232_v18 = vmul.f32 %v3024_v57, %v3795_v26  ;;  %v1128_v41 = vpop.xlane.xlu0 %1127  ;;  %v1800_v26 = vpack.c.bf16 %v3945_v2, %v3945_v2 }
 0x56d   : > { %v1237_v12 = vpack.c.bf16 %v1232_v18, %v1231_v9  ;;  %v1849_v50 = vunpack.c.l.b16 %v1800_v26  ;;  %v1775_v62 = vpop.xlane.xlu2 %1774 }
 0x56f   : > { %2740 = vmatmul.msk.bf16.gmra.mxu1 %vm719_vm1, %v1237_v12  ;;  %v1562_v12 = vpop.f32.mrf.mxu3 }
 0x573   : > { %v1772_v2 = vpop.xlane.xlu0 %1771 }
 0x575   : > { %v1778_v36 = vpop.xlane.xlu2 %1777 }
 0x578   : > { %v1745_v43 = vpop.xlane.xlu1 %1744 }
 0x579   : > { %v1753_v51 = vsub.f32 %v3915_v10, %v1745_v43 }
 0x57b   : > { %v1768_v16 = vmul.f32 1.442695, %v1753_v51 }
 0x57d   : > { %3025 = vpow2.f32 %v1768_v16  ;;  %v1473_v46 = vpop.xlane.xlu2 %1472 }
 0x57e   : > { %3027 = vrcp.f32 %v1128_v41 }
 0x580   : > { %v1125_v17 = vpop.xlane.xlu1 %1124 }
 0x581   : > { %3029 = vrcp.f32 %v1125_v17 }
 0x583   : > { %v3026_v32 = vpop.eup %3025 }
 0x584   : > { %v1801_v19 = vpack.c.bf16 %v3026_v32, %v3026_v32  ;;  %v1791_v35 = vsel %vm655_vm0, %v3026_v32, 0.0  ;;  %v3028_v59 = vpop.eup %3027 }
 0x585   : > { %1792 = vadd.xlane.f32.xlu2 %v1791_v35  ;;  %v1234_v37 = vmul.f32 %v3028_v59, %v3803_v33  ;;  %v1467_v33 = vpop.xlane.xlu0 %1466  ;;  %v1476_v43 = vpop.xlane.xlu2 %1475 }
 0x586   : > { %v1850_v55 = vunpack.c.l.b16 %v1801_v19 }
 0x587   : > { %v3030_v39 = vpop.eup %3029 }
 0x588   : > { %v1852_v23 = vpack.c.b16 %v1850_v55, %v1849_v50  ;;  %v1233_v10 = vmul.f32 %v3030_v39, %v3801_v45  ;;  %v1461_v47 = vpop.xlane.xlu1 %1460 }
 0x589   : > { %3031 = vrcp.f32 %v1461_v47 }
 0x58a   : > { %2766 = vmatmul.msk.bf16.gmra.mxu2 %vm655_vm0, %v1852_v23  ;;  %v1238_v63 = vpack.c.bf16 %v1234_v37, %v1233_v10  ;;  %3033 = vrcp.f32 %v1458_v11 }
 0x58c   : > { %2741 = vmatmul.msk.bf16.gmra.mxu1 %vm719_vm1, %v1238_v63 }
 0x58d   : > { %v1470_v22 = vpop.xlane.xlu0 %1469 }
 0x58f   : > { %v3032_v58 = vpop.eup %3031 }
 0x590   : > { %v3034_v40 = vpop.eup %3033  ;;  %v1579_v0 = vmul.f32 %v3032_v58, %v3847_v24  ;;  %v1464_v8 = vpop.xlane.xlu1 %1463 }
 0x591   : > { %v1578_v1 = vmul.f32 %v3034_v40, %v3843_v5  ;;  %3035 = vrcp.f32 %v1464_v8 }
 0x592   : > { %3037 = vrcp.f32 %v1467_v33 }
 0x593   : > { %v1586_v45 = vpack.c.bf16 %v1579_v0, %v1578_v1  ;;  %3039 = vrcp.f32 %v1470_v22 }
 0x594   : > { %3041 = vrcp.f32 %v1473_v46 }
 0x595   : > { %3043 = vrcp.f32 %v1476_v43 }
 0x597   : > { %v3036_v49 = vpop.eup %3035 }
 0x598   : > { %v3038_v25 = vpop.eup %3037  ;;  %v1580_v24 = vmul.f32 %v3036_v49, %v3851_v30 }
 0x599   : > { %v1581_v5 = vmul.f32 %v3038_v25, %v3854_v29  ;;  %v3040_v48 = vpop.eup %3039 }
 0x59a   : > { %v3042_v57 = vpop.eup %3041  ;;  %v1582_v18 = vmul.f32 %v3040_v48, %v1560_v54 }
 0x59b   : > { %v1587_v61 = vpack.c.bf16 %v1581_v5, %v1580_v24  ;;  %v1583_v4 = vmul.f32 %v3042_v57, %v1562_v12  ;;  %v3044_v16 = vpop.eup %3043 }
 0x59c   : > { %2755 = vmatmul.msk.bf16.vlgmr.msrb.gmra.mxu1 %vm719_vm1, %v1586_v45 }
 0x59d   : > { %v1588_v15 = vpack.c.bf16 %v1583_v4, %v1582_v18 }
 0x5ac   : > { %2756 = vmatmul.msk.bf16.gmra.mxu1 %vm719_vm1, %v1587_v61 }
 0x5b3   : > { %v1781_v9 = vpop.xlane.xlu1 %1780 }
 0x5bb   : > { %v1784_v30 = vpop.xlane.xlu1 %1783 }
 0x5bc   : > { %2757 = vmatmul.msk.bf16.gmra.mxu1 %vm719_vm1, %v1588_v15 }
 0x5c3   : > { %v1479_v29 = vpop.xlane.xlu1 %1478 }
 0x5c4   : > { %3045 = vrcp.f32 %v1479_v29 }
 0x5c5   : > { %3047 = vrcp.f32 %v1775_v62  ;;  %v1787_v62 = vpop.xlane.xlu0 %1786 }
 0x5c6   : > { %3049 = vrcp.f32 %v1772_v2 }
 0x5c7   : > { %3051 = vrcp.f32 %v1778_v36 }
 0x5c8   : > { %3053 = vrcp.f32 %v1781_v9 }
 0x5c9   : > { %3055 = vrcp.f32 %v1787_v62 }
 0x5ca   : > { %v1565_v51 = vpop.f32.mrf.mxu3  ;;  %v3046_v41 = vpop.eup %3045  ;;  %3057 = vrcp.f32 %v1784_v30 }
 0x5cb   : > { %v1584_v26 = vmul.f32 %v3044_v16, %v1565_v51  ;;  %v3048_v59 = vpop.eup %3047 }
 0x5cc   : > { %v3050_v50 = vpop.eup %3049  ;;  %v1266_v36 = vpop.f32.mrf.mxu1 }
 0x5cd   : > { %v3052_v47 = vpop.eup %3051  ;;  %v1790_v25 = vpop.xlane.xlu0 %1789  ;;  %v1311_v51 = vadd.f32 %v3799_v31, %v1266_v36 }
 0x5ce   : > { %v3054_v63 = vpop.eup %3053  ;;  %3059 = vrcp.f32 %v1790_v25 }
 0x5cf   : > { %v3056_v45 = vpop.eup %3055 }
 0x5d0   : > { %v3058_v33 = vpop.eup %3057 }
 0x5d2   : > { %v1567_v17 = vpop.f32.mrf.mxu3 }
 0x5d3   : > { %v1585_v32 = vmul.f32 %v3046_v41, %v1567_v17  ;;  %v4001_v41 = vld [vmem:[%s4378_s5] ss:$0 sm:$0xff] }
 0x5d4   : > { %v1268_v5 = vpop.f32.mrf.mxu1  ;;  %v3060_v22 = vpop.eup %3059 }
 0x5d5   : > { %v1589_v19 = vpack.c.bf16 %v1585_v32, %v1584_v26 }
 0x5d7   : > { %2758 = vmatmul.msk.bf16.gmra.mxu1 %vm719_vm1, %v1589_v19  ;;  %v1313_v19 = vadd.f32 %v3805_v34, %v1268_v5 }
 0x5d8   : > { %v1874_v0 = vpop.f32.mrf.mxu2 }
 0x5d9   : > { %v1896_v49 = vmul.f32 %v3058_v33, %v1874_v0 }
 0x5da   : > { %v1833_v35 = vpop.f32.mrf.mxu3 }
 0x5db   : > { %v1892_v39 = vmul.f32 %v3050_v50, %v1833_v35 }
 0x5dc   : > { %v1271_v9 = vpop.f32.mrf.mxu1 }
 0x5e0   : > { %v1876_v2 = vpop.f32.mrf.mxu2 }
 0x5e1   : > { %v1897_v8 = vmul.f32 %v3056_v45, %v1876_v2 }
 0x5e2   : > { %v1835_v55 = vpop.f32.mrf.mxu3 }
 0x5e3   : > { %v1893_v23 = vmul.f32 %v3048_v59, %v1835_v55  ;;  %v1902_v60 = vpack.c.bf16 %v1897_v8, %v1896_v49 }
 0x5e4   : > { %v1273_v18 = vpop.f32.mrf.mxu1 }
 0x5e5   : > { %v1900_v10 = vpack.c.bf16 %v1893_v23, %v1892_v39 }
 0x5e7   : > { %2768 = vmatmul.msk.bf16.vlgmr.msrb.gmra.mxu0 %vm719_vm1, %v1900_v10  ;;  %v1316_v10 = vadd.f32 %v3811_v44, %v1271_v9 }
 0x5ea   : > { %v1838_v37 = vpop.f32.mrf.mxu3 }
 0x5eb   : > { %v1894_v58 = vmul.f32 %v3052_v47, %v1838_v37 }
 0x5ec   : > { %v1276_v12 = vpop.f32.mrf.mxu1 }
 0x5ed   : > { %v1321_v8 = vadd.f32 %v3819_v38, %v1276_v12 }
 0x5f2   : > { %v1840_v11 = vpop.f32.mrf.mxu3 }
 0x5f3   : > { %v1895_v40 = vmul.f32 %v3054_v63, %v1840_v11 }
 0x5f4   : > { %v1278_v4 = vpop.f32.mrf.mxu1 }
 0x5f5   : > { %v1901_v1 = vpack.c.bf16 %v1895_v40, %v1894_v58  ;;  %v1318_v40 = vadd.f32 %v3817_v53, %v1273_v18 }
 0x5f7   : > { %2769 = vmatmul.msk.bf16.gmra.mxu0 %vm719_vm1, %v1901_v1 }
 0x5f8   : > { %v1793_v42 = vpop.xlane.xlu2 %1792 }
 0x5f9   : > { %3061 = vrcp.f32 %v1793_v42  ;;  %v1323_v42 = vadd.f32 %v3821_v3, %v1278_v4 }
 0x5ff   : > { %v3062_v61 = vpop.eup %3061 }
 0x607   : > { %2770 = vmatmul.msk.bf16.gmra.mxu0 %vm719_vm1, %v1902_v60 }
 0x609   : > { %v1281_v15 = vpop.f32.mrf.mxu1 }
 0x60d   : > { %v1879_v24 = vpop.f32.mrf.mxu2 }
 0x60e   : > { %v1898_v54 = vmul.f32 %v3060_v22, %v1879_v24 }
 0x611   : > { %v3995_v30 = vpop.f32.mrf.mxu1 }
 0x612   : > { %v1328_v4 = vadd.f32 %v3825_v52, %v3995_v30 }
 0x615   : > { %v1881_v46 = vpop.f32.mrf.mxu2 }
 0x616   : > { %v1899_v48 = vmul.f32 %v3062_v61, %v1881_v46 }
 0x618   : > { %v1903_v57 = vpack.c.bf16 %v1899_v48, %v1898_v54 }
 0x619   : > { %v1616_v43 = vpop.f32.mrf.mxu1 }
 0x61a   : > { %2771 = vmatmul.msk.bf16.gmra.mxu0 %vm719_vm1, %v1903_v57  ;;  %v1636_v16 = vadd.f32 %v1616_v43, %v1311_v51  ;;  %v1326_v57 = vadd.f32 %v3823_v56, %v1281_v15  ;;  %v3274_v15 = vmov 32.0  }
 0x61b   : > { %3063 = vrcp.f32 %v3274_v15 }
 0x621   : > { %v1618_v29 = vpop.f32.mrf.mxu1 }
 0x622   : > { %v1637_v50 = vadd.f32 %v1618_v29, %v1313_v19 }
 0x629   : > { %v1621_v59 = vpop.f32.mrf.mxu1 }
 0x62a   : > { %v1638_v47 = vadd.f32 %v1621_v59, %v1316_v10 }
 0x631   : > { %v1623_v34 = vpop.f32.mrf.mxu1 }
 0x632   : > { %v1639_v1 = vadd.f32 %v1623_v34, %v1318_v40 }
 0x639   : > { %v1626_v2 = vpop.f32.mrf.mxu1 }
 0x63a   : > { %v1640_v49 = vadd.f32 %v1626_v2, %v1321_v8 }
 0x641   : > { %v1628_v25 = vpop.f32.mrf.mxu1 }
 0x642   : > { %v1641_v5 = vadd.f32 %v1628_v25, %v1323_v42 }
 0x654   : > { %v1631_v46 = vpop.f32.mrf.mxu1 }
 0x655   : > { %v1642_v3 = vadd.f32 %v1631_v46, %v1326_v57  ;;  %v2818_v46 = vld [vmem:[%s4379_s6] sm:$0xff] }
 0x65c   : > { %v1633_v12 = vpop.f32.mrf.mxu1 }
 0x65d   : > { %v1643_v29 = vadd.f32 %v1633_v12, %v1328_v4 }
 0x664   : > { %v1930_v17 = vpop.f32.mrf.mxu0 }
 0x665   : > { %v1950_v26 = vadd.f32 %v1930_v17, %v1636_v16  ;;  %v3064_v17 = vpop.eup %3063 }
 0x666   : > { %vm2009_vm3 = vweird.f32 %v3064_v17 }
 0x667   : > { %v1962_v32 = vadd.f32 %v4001_v41, %v1950_v26  ;;  %v2005_v26 = vmul.f32 32.0, %v3064_v17 }
 0x669   : > { %v4006_v35 = vadd.f32 %v1962_v32, %v3499_v6  ;;  %v2006_v32 = vsub.f32 1.0, %v2005_v26 }
 0x66b   : > { %v1980_v31 = vsel %vm655_vm0, %v4006_v35, 0.0  ;;  %v2007_v19 = vmul.f32 %v3064_v17, %v2006_v32 }
 0x66c   : > { %1981 = vadd.xlane.f32.xlu1 %v1980_v31  ;;  %v1932_v55 = vpop.f32.mrf.mxu0 }
 0x66d   : > { %v1951_v39 = vadd.f32 %v1932_v55, %v1637_v50  ;;  %v2008_v59 = vadd.f32 %v3064_v17, %v2007_v19 }
 0x66f   : > { %v1963_v23 = vadd.f32 %v4001_v41, %v1951_v39  ;;  %v4048_v50 = vsel %vm2009_vm3, %v3064_v17, %v2008_v59 }
 0x671   : > { %v4013_v37 = vadd.f32 %v1963_v23, %v3501_v7 }
 0x673   : > { %v1983_v6 = vsel %vm655_vm0, %v4013_v37, 0.0 }
 0x674   : > { %1984 = vadd.xlane.f32.xlu0 %v1983_v6  ;;  %v1935_v63 = vpop.f32.mrf.mxu0 }
 0x675   : > { %v1952_v11 = vadd.f32 %v1935_v63, %v1638_v47 }
 0x677   : > { %v1964_v58 = vadd.f32 %v4001_v41, %v1952_v11 }
 0x679   : > { %v4020_v0 = vadd.f32 %v1964_v58, %v3510_v13 }
 0x67b   : > { %v1986_v7 = vsel %vm655_vm0, %v4020_v0, 0.0 }
 0x67c   : > { %v1937_v44 = vpop.f32.mrf.mxu0  ;;  %1987 = vadd.xlane.f32.xlu2 %v1986_v7 }
 0x67d   : > { %v1953_v62 = vadd.f32 %v1937_v44, %v1639_v1 }
 0x67f   : > { %v1965_v45 = vadd.f32 %v4001_v41, %v1953_v62 }
 0x681   : > { %v4027_v33 = vadd.f32 %v1965_v45, %v3512_v14 }
 0x683   : > { %v1989_v13 = vsel %vm655_vm0, %v4027_v33, 0.0 }
 0x684   : > { %1990 = vadd.xlane.f32.xlu1 %v1989_v13  ;;  %v1940_v53 = vpop.f32.mrf.mxu0 }
 0x685   : > { %v1954_v60 = vadd.f32 %v1940_v53, %v1640_v49 }
 0x687   : > { %v1966_v36 = vadd.f32 %v4001_v41, %v1954_v60 }
 0x689   : > { %v4034_v24 = vadd.f32 %v1966_v36, %v3521_v20 }
 0x68b   : > { %v1992_v14 = vsel %vm655_vm0, %v4034_v24, 0.0 }
 0x68c   : > { %1993 = vadd.xlane.f32.xlu0 %v1992_v14  ;;  %v1942_v38 = vpop.f32.mrf.mxu0  ;;  %v2819_v14 = vld [vmem:[%s4379_s6 + $0x8] sm:$0xff] }
 0x68d   : > { %v1955_v22 = vadd.f32 %v1942_v38, %v1641_v5  ;;  %2227 = vmatpush.bf16.msra.mxu3 %v2819_v14 }
 0x68f   : > { %v1967_v61 = vadd.f32 %v4001_v41, %v1955_v22 }
 0x691   : > { %v1975_v54 = vadd.f32 %v1967_v61, %v3523_v21  ;;  %2228 = vmatpush.bf16.msra.mxu3 %v2818_v46 }
 0x693   : > { %v1995_v48 = vsel %vm655_vm0, %v1975_v54, 0.0 }
 0x694   : > { %1996 = vadd.xlane.f32.xlu2 %v1995_v48 }
 0x697   : > { %v1945_v20 = vpop.f32.mrf.mxu0 }
 0x698   : > { %v1956_v9 = vadd.f32 %v1945_v20, %v1642_v3 }
 0x69a   : > { %v1968_v18 = vadd.f32 %v4001_v41, %v1956_v9 }
 0x69c   : > { %v1976_v43 = vadd.f32 %v1968_v18, %v3532_v27 }
 0x69e   : > { %v1998_v51 = vsel %vm655_vm0, %v1976_v43, 0.0 }
 0x69f   : > { %1999 = vadd.xlane.f32.xlu2 %v1998_v51  ;;  %v1947_v21 = vpop.f32.mrf.mxu0 }
 0x6a0   : > { %v1957_v16 = vadd.f32 %v1947_v21, %v1643_v29 }
 0x6a2   : > { %v1969_v56 = vadd.f32 %v4001_v41, %v1957_v16 }
 0x6a4   : > { %v1977_v10 = vadd.f32 %v1969_v56, %v3534_v28 }
 0x6df   : > { %v1982_v52 = vpop.xlane.xlu1 %1981 }
 0x6e0   : > { %v2011_v27 = vmul.f32 %v4048_v50, %v1982_v52 }
 0x6e2   : > { %v4052_v30 = vsub.f32 %v4006_v35, %v2011_v27  ;;  %v2001_v35 = vsel %vm655_vm0, %v1977_v10, 0.0 }
 0x6e4   : > { %v2027_v31 = vmul.f32 %v4052_v30, %v4052_v30 }
 0x6e6   : > { %v2035_v41 = vsel %vm655_vm0, %v2027_v31, 0.0 }
 0x6e7   : > { %2036 = vadd.xlane.f32.xlu1 %v2035_v41  ;;  %v1985_v55 = vpop.xlane.xlu0 %1984 }
 0x6e8   : > { %v2012_v39 = vmul.f32 %v4048_v50, %v1985_v55 }
 0x6ea   : > { %v4059_v23 = vsub.f32 %v4013_v37, %v2012_v39  ;;  %v4118_v39 = vld [vmem:[%s4383_s10] ss:$0 sm:$0xff] }
 0x6ec   : > { %v2028_v47 = vmul.f32 %v4059_v23, %v4059_v23 }
 0x6ee   : > { %v2038_v6 = vsel %vm655_vm0, %v2028_v47, 0.0 }
 0x6ef   : > { %v1988_v34 = vpop.xlane.xlu2 %1987  ;;  %2002 = vadd.xlane.f32.xlu1 %v2001_v35  ;;  %2039 = vadd.xlane.f32.xlu0 %v2038_v6 }
 0x6f0   : > { %v2013_v63 = vmul.f32 %v4048_v50, %v1988_v34 }
 0x6f2   : > { %v4068_v11 = vsub.f32 %v4020_v0, %v2013_v63 }
 0x6f4   : > { %v2029_v37 = vmul.f32 %v4068_v11, %v4068_v11 }
 0x6f6   : > { %v2041_v28 = vsel %vm655_vm0, %v2029_v37, 0.0  ;;  %v4124_v37 = vld [vmem:[%s4384_s11] ss:$0 sm:$0xff] }
 0x6f7   : > { %v1991_v58 = vpop.xlane.xlu1 %1990  ;;  %2042 = vadd.xlane.f32.xlu0 %v2041_v28 }
 0x6f8   : > { %v2014_v40 = vmul.f32 %v4048_v50, %v1991_v58 }
 0x6fa   : > { %v4075_v1 = vsub.f32 %v4027_v33, %v2014_v40 }
 0x6fc   : > { %v2030_v7 = vmul.f32 %v4075_v1, %v4075_v1 }
 0x6fe   : > { %v2044_v44 = vsel %vm655_vm0, %v2030_v7, 0.0 }
 0x6ff   : > { %2045 = vadd.xlane.f32.xlu2 %v2044_v44  ;;  %v1994_v0 = vpop.xlane.xlu0 %1993 }
 0x700   : > { %v2015_v62 = vmul.f32 %v4048_v50, %v1994_v0 }
 0x702   : > { %v4082_v2 = vsub.f32 %v4034_v24, %v2015_v62 }
 0x704   : > { %v2031_v45 = vmul.f32 %v4082_v2, %v4082_v2 }
 0x706   : > { %v2047_v8 = vsel %vm655_vm0, %v2031_v45, 0.0 }
 0x707   : > { %v1997_v49 = vpop.xlane.xlu2 %1996  ;;  %2048 = vadd.xlane.f32.xlu1 %v2047_v8 }
 0x708   : > { %v2016_v33 = vmul.f32 %v4048_v50, %v1997_v49 }
 0x70a   : > { %v4088_v13 = vsub.f32 %v1975_v54, %v2016_v33 }
 0x70c   : > { %v2032_v53 = vmul.f32 %v4088_v13, %v4088_v13 }
 0x70e   : > { %v2050_v60 = vsel %vm655_vm0, %v2032_v53, 0.0 }
 0x70f   : > { %2051 = vadd.xlane.f32.xlu0 %v2050_v60 }
 0x712   : > { %v2000_v36 = vpop.xlane.xlu2 %1999 }
 0x713   : > { %v2017_v25 = vmul.f32 %v4048_v50, %v2000_v36 }
 0x715   : > { %v4094_v42 = vsub.f32 %v1976_v43, %v2017_v25 }
 0x717   : > { %v2033_v24 = vmul.f32 %v4094_v42, %v4094_v42 }
 0x719   : > { %v2053_v5 = vsel %vm655_vm0, %v2033_v24, 0.0 }
 0x71a   : > { %2054 = vadd.xlane.f32.xlu2 %v2053_v5 }
 0x75a   : > { %v2037_v38 = vpop.xlane.xlu1 %2036 }
 0x75b   : > { %v2059_v22 = vmul.f32 %v2037_v38, %v4048_v50 }
 0x75d   : > { %v2067_v61 = vadd.f32 1e-05, %v2059_v22 }
 0x75f   : > { %3065 = vrsqrt.f32 %v2067_v61  ;;  %vm2081_vm5 = vweird.f32 %v2067_v61 }
 0x762   : > { %v2003_v54 = vpop.xlane.xlu1 %2002  ;;  %v2040_v48 = vpop.xlane.xlu0 %2039 }
 0x763   : > { %v2018_v57 = vmul.f32 %v4048_v50, %v2003_v54  ;;  %v2060_v3 = vmul.f32 %v2040_v48, %v4048_v50 }
 0x765   : > { %v3066_v20 = vpop.eup %3065  ;;  %v4108_v9 = vsub.f32 %v1977_v10, %v2018_v57  ;;  %v2068_v18 = vadd.f32 1e-05, %v2060_v3 }
 0x766   : > { %v2076_v12 = vmul.f32 %v3066_v20, %v2067_v61  ;;  %vm2082_vm4 = vweird.f32 %v3066_v20 }
 0x767   : > { %3067 = vrsqrt.f32 %v2068_v18  ;;  %v2034_v4 = vmul.f32 %v4108_v9, %v4108_v9  ;;  %vm2083_vm6 = vmor %vm2081_vm5, %vm2082_vm4  ;;  %vm2091_vm8 = vweird.f32 %v2068_v18 }
 0x768   : > { %v2077_v43 = vmul.f32 %v3066_v20, %v2076_v12 }
 0x769   : > { %v2056_v29 = vsel %vm655_vm0, %v2034_v4, 0.0 }
 0x76a   : > { %v2078_v51 = vmul.f32 0.5, %v2077_v43  ;;  %2057 = vadd.xlane.f32.xlu1 %v2056_v29  ;;  %v2043_v21 = vpop.xlane.xlu0 %2042 }
 0x76b   : > { %v2061_v16 = vmul.f32 %v2043_v21, %v4048_v50 }
 0x76c   : > { %v2079_v56 = vsub.f32 1.5, %v2078_v51 }
 0x76d   : > { %v3068_v15 = vpop.eup %3067  ;;  %v2069_v17 = vadd.f32 1e-05, %v2061_v16 }
 0x76e   : > { %v2080_v26 = vmul.f32 %v3066_v20, %v2079_v56  ;;  %v2086_v32 = vmul.f32 %v3068_v15, %v2068_v18  ;;  %vm2092_vm7 = vweird.f32 %v3068_v15 }
 0x76f   : > { %3069 = vrsqrt.f32 %v2069_v17  ;;  %vm2093_vm9 = vmor %vm2091_vm8, %vm2092_vm7  ;;  %vm2101_vm11 = vweird.f32 %v2069_v17 }
 0x770   : > { %v2087_v19 = vmul.f32 %v3068_v15, %v2086_v32  ;;  %v2084_v59 = vsel %vm2083_vm6, %v3066_v20, %v2080_v26 }
 0x771   : > { %v2155_v10 = vmul.f32 %v2084_v59, %v4052_v30 }
 0x772   : > { %v2088_v52 = vmul.f32 0.5, %v2087_v19  ;;  %v2046_v27 = vpop.xlane.xlu2 %2045 }
 0x773   : > { %v2062_v31 = vmul.f32 %v2046_v27, %v4048_v50  ;;  %v2166_v28 = vmul.f32 %v4118_v39, %v2155_v10 }
 0x774   : > { %v2089_v41 = vsub.f32 1.5, %v2088_v52 }
 0x775   : > { %v3070_v55 = vpop.eup %3069  ;;  %v2070_v47 = vadd.f32 1e-05, %v2062_v31  ;;  %v4131_v45 = vadd.f32 %v4124_v37, %v2166_v28 }
 0x776   : > { %v2090_v35 = vmul.f32 %v3068_v15, %v2089_v41  ;;  %v2096_v6 = vmul.f32 %v3070_v55, %v2069_v17  ;;  %vm2102_vm10 = vweird.f32 %v3070_v55 }
 0x777   : > { %3071 = vrsqrt.f32 %v2070_v47  ;;  %vm2103_vm12 = vmor %vm2101_vm11, %vm2102_vm10  ;;  %vm2111_vm14 = vweird.f32 %v2070_v47 }
 0x778   : > { %v2094_v34 = vsel %vm2093_vm9, %v3068_v15, %v2090_v35  ;;  %v2097_v63 = vmul.f32 %v3070_v55, %v2096_v6 }
 0x779   : > { %v2156_v58 = vmul.f32 %v2094_v34, %v4059_v23 }
 0x77a   : > { %v2098_v40 = vmul.f32 0.5, %v2097_v63  ;;  %v2049_v7 = vpop.xlane.xlu1 %2048 }
 0x77b   : > { %v2167_v30 = vmul.f32 %v4118_v39, %v2156_v58  ;;  %v2063_v44 = vmul.f32 %v2049_v7, %v4048_v50 }
 0x77c   : > { %v2099_v0 = vsub.f32 1.5, %v2098_v40  ;;  %v2823_v40 = vld [vmem:[%s4381_s8 + $0x18] sm:$0xff] }
 0x77d   : > { %v3072_v62 = vpop.eup %3071  ;;  %v4134_v8 = vadd.f32 %v4124_v37, %v2167_v30  ;;  %v2071_v49 = vadd.f32 1e-05, %v2063_v44  ;;  %2315 = vmatpush.bf16.msra.mxu1 %v2823_v40  ;;  %v2822_v30 = vld [vmem:[%s4381_s8 + $0x10] sm:$0xff] }
 0x77e   : > { %v2100_v33 = vmul.f32 %v3070_v55, %v2099_v0  ;;  %v2106_v53 = vmul.f32 %v3072_v62, %v2070_v47  ;;  %vm2112_vm13 = vweird.f32 %v3072_v62 }
 0x77f   : > { %3073 = vrsqrt.f32 %v2071_v49  ;;  %v2185_v23 = vpack.c.bf16 %v4134_v8, %v4131_v45  ;;  %vm2113_vm15 = vmor %vm2111_vm14, %vm2112_vm13  ;;  %vm2121_vm2 = vweird.f32 %v2071_v49  ;;  %vm2298_vm13 = vcmask 523264  }
 0x780   : > { %v2107_v60 = vmul.f32 %v3072_v62, %v2106_v53  ;;  %v2104_v36 = vsel %vm2103_vm12, %v3070_v55, %v2100_v33  ;;  %v2821_v33 = vld [vmem:[%s4381_s8 + $0x8] sm:$0xff] }
 0x781   : > { %2780 = vmatmul.msk.bf16.vlgmr.msra.gmra.mxu3 %vm655_vm0, %v2185_v23  ;;  %v2157_v22 = vmul.f32 %v2104_v36, %v4068_v11  ;;  %2316 = vmatpush.bf16.msra.mxu1 %v2822_v30  ;;  %v2820_v36 = vld [vmem:[%s4381_s8] sm:$0xff] }
 0x782   : > { %v2108_v25 = vmul.f32 0.5, %v2107_v60  ;;  %v2052_v24 = vpop.xlane.xlu0 %2051 }
 0x783   : > { %v2064_v5 = vmul.f32 %v2052_v24, %v4048_v50  ;;  %v2168_v20 = vmul.f32 %v4118_v39, %v2157_v22 }
 0x784   : > { %v2109_v14 = vsub.f32 1.5, %v2108_v25 }
 0x785   : > { %v3074_v38 = vpop.eup %3073  ;;  %v2072_v61 = vadd.f32 1e-05, %v2064_v5  ;;  %v4145_v29 = vadd.f32 %v4124_v37, %v2168_v20  ;;  %2317 = vmatpush.bf16.msra.mxu1 %v2821_v33 }
 0x786   : > { %v2110_v46 = vmul.f32 %v3072_v62, %v2109_v14  ;;  %v2116_v54 = vmul.f32 %v3074_v38, %v2071_v49  ;;  %vm2122_vm1 = vweird.f32 %v3074_v38 }
 0x787   : > { %3075 = vrsqrt.f32 %v2072_v61  ;;  %vm2123_vm3 = vmor %vm2121_vm2, %vm2122_vm1  ;;  %vm2131_vm5 = vweird.f32 %v2072_v61 }
 0x788   : > { %v2114_v48 = vsel %vm2113_vm15, %v3072_v62, %v2110_v46  ;;  %v2117_v57 = vmul.f32 %v3074_v38, %v2116_v54 }
 0x789   : > { %v2158_v3 = vmul.f32 %v2114_v48, %v4075_v1  ;;  %2318 = vmatpush.bf16.msra.mxu1 %v2820_v36 }
 0x78a   : > { %v2118_v18 = vmul.f32 0.5, %v2117_v57 }
 0x78b   : > { %v2169_v12 = vmul.f32 %v4118_v39, %v2158_v3 }
 0x78c   : > { %v2119_v4 = vsub.f32 1.5, %v2118_v18 }
 0x78d   : > { %v3076_v43 = vpop.eup %3075  ;;  %v4148_v11 = vadd.f32 %v4124_v37, %v2169_v12 }
 0x78e   : > { %v2120_v51 = vmul.f32 %v3074_v38, %v2119_v4  ;;  %v2126_v21 = vmul.f32 %v3076_v43, %v2072_v61  ;;  %vm2132_vm4 = vweird.f32 %v3076_v43 }
 0x78f   : > { %v2186_v16 = vpack.c.bf16 %v4148_v11, %v4145_v29  ;;  %vm2133_vm6 = vmor %vm2131_vm5, %vm2132_vm4 }
 0x790   : > { %v2127_v1 = vmul.f32 %v3076_v43, %v2126_v21  ;;  %v2124_v56 = vsel %vm2123_vm3, %v3074_v38, %v2120_v51 }
 0x791   : > { %2781 = vmatmul.msk.bf16.gmra.mxu3 %vm655_vm0, %v2186_v16  ;;  %v2159_v26 = vmul.f32 %v2124_v56, %v4082_v2  ;;  %v2055_v2 = vpop.xlane.xlu2 %2054 }
 0x792   : > { %v2128_v15 = vmul.f32 0.5, %v2127_v1  ;;  %v2065_v10 = vmul.f32 %v2055_v2, %v4048_v50 }
 0x793   : > { %v2170_v52 = vmul.f32 %v4118_v39, %v2159_v26 }
 0x794   : > { %v2129_v17 = vsub.f32 1.5, %v2128_v15  ;;  %v2073_v47 = vadd.f32 1e-05, %v2065_v10 }
 0x795   : > { %v4158_v31 = vadd.f32 %v4124_v37, %v2170_v52 }
 0x796   : > { %v2130_v32 = vmul.f32 %v3076_v43, %v2129_v17  ;;  %3077 = vrsqrt.f32 %v2073_v47  ;;  %vm2141_vm8 = vweird.f32 %v2073_v47 }
 0x798   : > { %v2134_v19 = vsel %vm2133_vm6, %v3076_v43, %v2130_v32 }
 0x799   : > { %v2160_v59 = vmul.f32 %v2134_v19, %v4088_v13 }
 0x79b   : > { %v2171_v27 = vmul.f32 %v4118_v39, %v2160_v59 }
 0x79c   : > { %v3078_v13 = vpop.eup %3077 }
 0x79d   : > { %v4161_v41 = vadd.f32 %v4124_v37, %v2171_v27  ;;  %v2136_v35 = vmul.f32 %v3078_v13, %v2073_v47  ;;  %vm2142_vm7 = vweird.f32 %v3078_v13 }
 0x79e   : > { %vm2143_vm9 = vmor %vm2141_vm8, %vm2142_vm7 }
 0x79f   : > { %v2187_v55 = vpack.c.bf16 %v4161_v41, %v4158_v31  ;;  %v2137_v6 = vmul.f32 %v3078_v13, %v2136_v35 }
 0x7a1   : > { %2782 = vmatmul.msk.bf16.gmra.mxu3 %vm655_vm0, %v2187_v55  ;;  %v2138_v58 = vmul.f32 0.5, %v2137_v6 }
 0x7a3   : > { %v2139_v7 = vsub.f32 1.5, %v2138_v58 }
 0x7a5   : > { %v2140_v0 = vmul.f32 %v3078_v13, %v2139_v7 }
 0x7a7   : > { %v2144_v53 = vsel %vm2143_vm9, %v3078_v13, %v2140_v0  ;;  %v2932_v13 = vld [vmem:[%s4420_s15] ss:$0 sm:$0xff]  ;;  %s2573_s15 = scalar_lea.hbm %s4425_s24, %s2813_s9 }
 0x7a8   : > { %v2161_v25 = vmul.f32 %v2144_v53, %v4094_v42  ;;  %s2576_s19 = sshll.u32 %s2573_s15, 4  ;;  %s2577_s19 = int_to_ptr.hbm [resolvable:$true] %s2576_s19 }
 0x7aa   : > { %v2172_v38 = vmul.f32 %v4118_v39, %v2161_v25 }
 0x7ac   : > { %v4185_v61 = vadd.f32 %v4124_v37, %v2172_v38 }
 0x7dd   : > { %v2058_v34 = vpop.xlane.xlu1 %2057 }
 0x7de   : > { %v2066_v63 = vmul.f32 %v2058_v34, %v4048_v50 }
 0x7e0   : > { %v2074_v28 = vadd.f32 1e-05, %v2066_v63 }
 0x7e2   : > { %3079 = vrsqrt.f32 %v2074_v28  ;;  %vm2151_vm11 = vweird.f32 %v2074_v28 }
 0x7e8   : > { %v3080_v44 = vpop.eup %3079 }
 0x7e9   : > { %v2146_v62 = vmul.f32 %v3080_v44, %v2074_v28  ;;  %vm2152_vm10 = vweird.f32 %v3080_v44 }
 0x7ea   : > { %vm2153_vm12 = vmor %vm2151_vm11, %vm2152_vm10 }
 0x7eb   : > { %v2147_v49 = vmul.f32 %v3080_v44, %v2146_v62 }
 0x7ed   : > { %v2148_v23 = vmul.f32 0.5, %v2147_v49 }
 0x7ef   : > { %v2149_v60 = vsub.f32 1.5, %v2148_v23 }
 0x7f1   : > { %v2150_v24 = vmul.f32 %v3080_v44, %v2149_v60 }
 0x7f3   : > { %v2154_v5 = vsel %vm2153_vm12, %v3080_v44, %v2150_v24 }
 0x7f4   : > { %v2162_v14 = vmul.f32 %v2154_v5, %v4108_v9  ;;  %v2931_v9 = vld [vmem:[%s4380_s7] ss:$0 sm:$0xff] }
 0x7f6   : > { %v2173_v22 = vmul.f32 %v4118_v39, %v2162_v14 }
 0x7f8   : > { %v4188_v46 = vadd.f32 %v4124_v37, %v2173_v22 }
 0x7fa   : > { %v2188_v42 = vpack.c.bf16 %v4188_v46, %v4185_v61 }
 0x7fc   : > { %2783 = vmatmul.msk.bf16.gmra.mxu3 %vm655_vm0, %v2188_v42 }
 0x804   : > { %v2230_v54 = vpop.f32.mrf.mxu3 }
 0x805   : > { %v2231_v48 = vadd.f32 %v2931_v9, %v2230_v54 }
 0x807   : > { %v2250_v39 = vmax.f32 %v2231_v48, 0.0 }
 0x80c   : > { %v2232_v57 = vpop.f32.mrf.mxu3 }
 0x80d   : > { %v2233_v3 = vadd.f32 %v2931_v9, %v2232_v57 }
 0x80f   : > { %v2251_v20 = vmax.f32 %v2233_v3, 0.0 }
 0x811   : > { %v2258_v18 = vpack.c.bf16 %v2251_v20, %v2250_v39 }
 0x813   : > { %2800 = vmatmul.msk.bf16.vlgmr.msra.gmra.mxu1 %vm2298_vm13, %v2258_v18 }
 0x814   : > { %v2235_v37 = vpop.f32.mrf.mxu3 }
 0x815   : > { %v2236_v12 = vadd.f32 %v2931_v9, %v2235_v37 }
 0x817   : > { %v2252_v51 = vmax.f32 %v2236_v12, 0.0 }
 0x81c   : > { %v2237_v4 = vpop.f32.mrf.mxu3 }
 0x81d   : > { %v2238_v43 = vadd.f32 %v2931_v9, %v2237_v4 }
 0x81f   : > { %v2253_v21 = vmax.f32 %v2238_v43, 0.0 }
 0x821   : > { %v2259_v16 = vpack.c.bf16 %v2253_v21, %v2252_v51 }
 0x823   : > { %2801 = vmatmul.msk.bf16.gmra.mxu1 %vm2298_vm13, %v2259_v16 }
 0x824   : > { %v2240_v1 = vpop.f32.mrf.mxu3 }
 0x825   : > { %v2241_v56 = vadd.f32 %v2931_v9, %v2240_v1 }
 0x827   : > { %v2254_v26 = vmax.f32 %v2241_v56, 0.0 }
 0x82c   : > { %v2242_v15 = vpop.f32.mrf.mxu3 }
 0x82d   : > { %v2243_v17 = vadd.f32 %v2931_v9, %v2242_v15 }
 0x82f   : > { %v2255_v32 = vmax.f32 %v2243_v17, 0.0 }
 0x831   : > { %v2260_v19 = vpack.c.bf16 %v2255_v32, %v2254_v26 }
 0x833   : > { %2802 = vmatmul.msk.bf16.gmra.mxu1 %vm2298_vm13, %v2260_v19 }
 0x87f   : > { %v2245_v59 = vpop.f32.mrf.mxu3 }
 0x880   : > { %v2246_v52 = vadd.f32 %v2931_v9, %v2245_v59 }
 0x882   : > { %v2256_v2 = vmax.f32 %v2246_v52, 0.0 }
 0x887   : > { %v2247_v27 = vpop.f32.mrf.mxu3 }
 0x888   : > { %v2248_v55 = vadd.f32 %v2931_v9, %v2247_v27 }
 0x88a   : > { %v2257_v10 = vmax.f32 %v2248_v55, 0.0 }
 0x88c   : > { %v2261_v47 = vpack.c.bf16 %v2257_v10, %v2256_v2 }
 0x88e   : > { %2803 = vmatmul.msk.bf16.gmra.mxu1 %vm2298_vm13, %v2261_v47 }
 0x890   : > { %v2320_v35 = vpop.f32.mrf.mxu1 }
 0x891   : > { %v2321_v6 = vadd.f32 %v2932_v13, %v2320_v35 }
 0x893   : > { %v2340_v34 = vadd.f32 %v2321_v6, %v4131_v45 }
 0x895   : > { %v2350_v63 = vsel %vm655_vm0, %v2340_v34, 0.0 }
 0x896   : > { %2351 = vadd.xlane.f32.xlu0 %v2350_v63 }
 0x898   : > { %v2322_v28 = vpop.f32.mrf.mxu1 }
 0x899   : > { %v2323_v58 = vadd.f32 %v2932_v13, %v2322_v28 }
 0x89b   : > { %v2341_v40 = vadd.f32 %v2323_v58, %v4134_v8 }
 0x89d   : > { %v2353_v7 = vsel %vm655_vm0, %v2341_v40, 0.0 }
 0x89e   : > { %2354 = vadd.xlane.f32.xlu2 %v2353_v7 }
 0x8a0   : > { %v2325_v30 = vpop.f32.mrf.mxu1 }
 0x8a1   : > { %v2326_v44 = vadd.f32 %v2932_v13, %v2325_v30 }
 0x8a3   : > { %v2342_v0 = vadd.f32 %v2326_v44, %v4145_v29 }
 0x8a5   : > { %v2356_v62 = vsel %vm655_vm0, %v2342_v0, 0.0 }
 0x8a6   : > { %2357 = vadd.xlane.f32.xlu1 %v2356_v62 }
 0x8a8   : > { %v2327_v49 = vpop.f32.mrf.mxu1 }
 0x8a9   : > { %v2328_v33 = vadd.f32 %v2932_v13, %v2327_v49 }
 0x8ab   : > { %v2343_v45 = vadd.f32 %v2328_v33, %v4148_v11 }
 0x8ad   : > { %v2359_v53 = vsel %vm655_vm0, %v2343_v45, 0.0 }
 0x8ae   : > { %2360 = vadd.xlane.f32.xlu0 %v2359_v53 }
 0x8b0   : > { %v2330_v23 = vpop.f32.mrf.mxu1 }
 0x8b1   : > { %v2331_v60 = vadd.f32 %v2932_v13, %v2330_v23 }
 0x8b3   : > { %v2344_v8 = vadd.f32 %v2331_v60, %v4158_v31 }
 0x8b5   : > { %v2362_v36 = vsel %vm655_vm0, %v2344_v8, 0.0 }
 0x8b6   : > { %2363 = vadd.xlane.f32.xlu2 %v2362_v36 }
 0x8b8   : > { %v2332_v25 = vpop.f32.mrf.mxu1 }
 0x8b9   : > { %v2333_v24 = vadd.f32 %v2932_v13, %v2332_v25 }
 0x8bb   : > { %v2345_v29 = vadd.f32 %v2333_v24, %v4161_v41 }
 0x8bd   : > { %v2365_v5 = vsel %vm655_vm0, %v2345_v29, 0.0 }
 0x8be   : > { %2366 = vadd.xlane.f32.xlu1 %v2365_v5 }
 0x909   : > { %v2352_v14 = vpop.xlane.xlu0 %2351 }
 0x90a   : > { %v2374_v11 = vmul.f32 %v2352_v14, %v4048_v50 }
 0x90b   : > { %v2335_v38 = vpop.f32.mrf.mxu1 }
 0x90c   : > { %v4216_v22 = vsub.f32 %v2340_v34, %v2374_v11  ;;  %v2336_v42 = vadd.f32 %v2932_v13, %v2335_v38  ;;  %v4273_v38 = vld [vmem:[%s4421_s17] ss:$0 sm:$0xff]  ;;  %s2574_s17 = sshll.u32 %s4285_s30, 4  ;;  %s2575_s17 = int_to_ptr.vmem [resolvable:$true] %s2574_s17 }
 0x90e   : > { %v2346_v54 = vadd.f32 %v2336_v42, %v4185_v61  ;;  %v2390_v31 = vmul.f32 %v4216_v22, %v4216_v22 }
 0x910   : > { %v2368_v9 = vsel %vm655_vm0, %v2346_v54, 0.0  ;;  %v2398_v48 = vsel %vm655_vm0, %v2390_v31, 0.0  ;;  %v4278_v31 = vld [vmem:[%s4422_s13] ss:$0 sm:$0xff]  ;;  %s3171_s13 = sshra.s32 %s2577_s19, 4  ;;  %s3172_s13 = int_to_ptr.hbm [resolvable:$true] %s3171_s13 }
 0x911   : > { %v2355_v41 = vpop.xlane.xlu2 %2354  ;;  %2369 = vadd.xlane.f32.xlu0 %v2368_v9  ;;  %2399 = vadd.xlane.f32.xlu1 %v2398_v48  ;;  %s3173_s14 = scalar_lea.hbm %s3172_s13, 64  ;;  %p3178_p7 = scmp.lt.s32.totalorder %s3172_s13, %s4426_s27 }
 0x912   : > { %v2375_v57 = vmul.f32 %v2355_v41, %v4048_v50  ;;  %p3174_p4 = scmp.ne.s32.totalorder %s3172_s13, %s3173_s14  ;;  %p3179_p8 = scmp.lt.s32.totalorder %s3177_s12, %s3173_s14 }
 0x913   : > { %v2337_v3 = vpop.f32.mrf.mxu1 }
 0x914   : > { %v4224_v39 = vsub.f32 %v2341_v40, %v2375_v57  ;;  %v2338_v20 = vadd.f32 %v2932_v13, %v2337_v3  ;;  %p3175_p5 = pnand %p3174_p4, %p3427_p9  ;;  %p3180_p10 = por %p3179_p8, %p3178_p7 }
 0x916   : > { %v2391_v18 = vmul.f32 %v4224_v39, %v4224_v39  ;;  %v2347_v61 = vadd.f32 %v2338_v20, %v4188_v46  ;;  %p3176_p6 = pneg %p3175_p5 }
 0x918   : > { %v2401_v37 = vsel %vm655_vm0, %v2391_v18, 0.0  ;;  %v2371_v12 = vsel %vm655_vm0, %v2347_v61, 0.0  ;;  %p3181_p11 = pnand %p3180_p10, %p3176_p6 }
 0x919   : > { %v2358_v4 = vpop.xlane.xlu1 %2357  ;;  %2402 = vadd.xlane.f32.xlu0 %v2401_v37  ;;  %2372 = vadd.xlane.f32.xlu2 %v2371_v12 }
 0x91a   : > { %v2376_v43 = vmul.f32 %v2358_v4, %v4048_v50 }
 0x91c   : > { %v4232_v51 = vsub.f32 %v2342_v0, %v2376_v43 }
 0x91e   : > { %v2392_v21 = vmul.f32 %v4232_v51, %v4232_v51 }
 0x920   : > { %v2404_v16 = vsel %vm655_vm0, %v2392_v21, 0.0 }
 0x921   : > { %2405 = vadd.xlane.f32.xlu2 %v2404_v16  ;;  %v2361_v1 = vpop.xlane.xlu0 %2360 }
 0x922   : > { %v2377_v46 = vmul.f32 %v2361_v1, %v4048_v50 }
 0x924   : > { %v4238_v56 = vsub.f32 %v2343_v45, %v2377_v46 }
 0x926   : > { %v2393_v15 = vmul.f32 %v4238_v56, %v4238_v56 }
 0x928   : > { %v2407_v17 = vsel %vm655_vm0, %v2393_v15, 0.0 }
 0x929   : > { %v2364_v26 = vpop.xlane.xlu2 %2363  ;;  %2408 = vadd.xlane.f32.xlu1 %v2407_v17 }
 0x92a   : > { %v2378_v32 = vmul.f32 %v2364_v26, %v4048_v50 }
 0x92c   : > { %v4244_v19 = vsub.f32 %v2344_v8, %v2378_v32 }
 0x92e   : > { %v2394_v59 = vmul.f32 %v4244_v19, %v4244_v19 }
 0x930   : > { %v2410_v52 = vsel %vm655_vm0, %v2394_v59, 0.0 }
 0x931   : > { %v2367_v27 = vpop.xlane.xlu1 %2366  ;;  %2411 = vadd.xlane.f32.xlu0 %v2410_v52 }
 0x932   : > { %v2379_v55 = vmul.f32 %v2367_v27, %v4048_v50 }
 0x934   : > { %v4250_v2 = vsub.f32 %v2345_v29, %v2379_v55 }
 0x936   : > { %v2395_v10 = vmul.f32 %v4250_v2, %v4250_v2 }
 0x938   : > { %v2413_v47 = vsel %vm655_vm0, %v2395_v10, 0.0 }
 0x939   : > { %2414 = vadd.xlane.f32.xlu2 %v2413_v47 }
 0x984   : > { %v2400_v13 = vpop.xlane.xlu1 %2399  ;;  %v2370_v35 = vpop.xlane.xlu0 %2369 }
 0x985   : > { %v2422_v6 = vmul.f32 %v2400_v13, %v4048_v50  ;;  %v2380_v34 = vmul.f32 %v2370_v35, %v4048_v50 }
 0x987   : > { %v2430_v63 = vadd.f32 1e-05, %v2422_v6  ;;  %v4257_v28 = vsub.f32 %v2346_v54, %v2380_v34 }
 0x989   : > { %3081 = vrsqrt.f32 %v2430_v63  ;;  %v2396_v58 = vmul.f32 %v4257_v28, %v4257_v28  ;;  %vm2444_vm15 = vweird.f32 %v2430_v63 }
 0x98b   : > { %v2416_v40 = vsel %vm655_vm0, %v2396_v58, 0.0 }
 0x98c   : > { %v2373_v7 = vpop.xlane.xlu2 %2372  ;;  %2417 = vadd.xlane.f32.xlu1 %v2416_v40  ;;  %v2403_v30 = vpop.xlane.xlu0 %2402 }
 0x98d   : > { %v2381_v44 = vmul.f32 %v2373_v7, %v4048_v50  ;;  %v2423_v0 = vmul.f32 %v2403_v30, %v4048_v50 }
 0x98f   : > { %v3082_v62 = vpop.eup %3081  ;;  %v4264_v49 = vsub.f32 %v2347_v61, %v2381_v44  ;;  %v2431_v33 = vadd.f32 1e-05, %v2423_v0 }
 0x990   : > { %v2439_v45 = vmul.f32 %v3082_v62, %v2430_v63  ;;  %vm2445_vm14 = vweird.f32 %v3082_v62 }
 0x991   : > { %3083 = vrsqrt.f32 %v2431_v33  ;;  %v2397_v53 = vmul.f32 %v4264_v49, %v4264_v49  ;;  %vm2446_vm1 = vmor %vm2444_vm15, %vm2445_vm14  ;;  %vm2454_vm3 = vweird.f32 %v2431_v33 }
 0x992   : > { %v2440_v23 = vmul.f32 %v3082_v62, %v2439_v45 }
 0x993   : > { %v2419_v60 = vsel %vm655_vm0, %v2397_v53, 0.0 }
 0x994   : > { %v2441_v8 = vmul.f32 0.5, %v2440_v23  ;;  %2420 = vadd.xlane.f32.xlu0 %v2419_v60  ;;  %v2406_v36 = vpop.xlane.xlu2 %2405 }
 0x995   : > { %v2424_v25 = vmul.f32 %v2406_v36, %v4048_v50 }
 0x996   : > { %v2442_v24 = vsub.f32 1.5, %v2441_v8 }
 0x997   : > { %v3084_v29 = vpop.eup %3083  ;;  %v2432_v5 = vadd.f32 1e-05, %v2424_v25 }
 0x998   : > { %v2443_v14 = vmul.f32 %v3082_v62, %v2442_v24  ;;  %v2449_v11 = vmul.f32 %v3084_v29, %v2431_v33  ;;  %vm2455_vm2 = vweird.f32 %v3084_v29 }
 0x999   : > { %3085 = vrsqrt.f32 %v2432_v5  ;;  %vm2456_vm4 = vmor %vm2454_vm3, %vm2455_vm2  ;;  %vm2464_vm6 = vweird.f32 %v2432_v5 }
 0x99a   : > { %v2447_v42 = vsel %vm2446_vm1, %v3082_v62, %v2443_v14  ;;  %v2450_v54 = vmul.f32 %v3084_v29, %v2449_v11 }
 0x99b   : > { %v2518_v9 = vmul.f32 %v2447_v42, %v4216_v22 }
 0x99c   : > { %v2451_v48 = vmul.f32 0.5, %v2450_v54  ;;  %v2409_v41 = vpop.xlane.xlu1 %2408 }
 0x99d   : > { %v2529_v57 = vmul.f32 %v4273_v38, %v2518_v9  ;;  %v2425_v3 = vmul.f32 %v2409_v41, %v4048_v50 }
 0x99e   : > { %v2452_v20 = vsub.f32 1.5, %v2451_v48 }
 0x99f   : > { %v3086_v18 = vpop.eup %3085  ;;  %v2540_v61 = vadd.f32 %v4278_v31, %v2529_v57  ;;  %v2433_v37 = vadd.f32 1e-05, %v2425_v3 }
 0x9a0   : > { %v2453_v12 = vmul.f32 %v3084_v29, %v2452_v20  ;;  %v2459_v4 = vmul.f32 %v3086_v18, %v2432_v5  ;;  %vm2465_vm5 = vweird.f32 %v3086_v18 }
 0x9a1   : > { %2548 = vst.msk [vmem:[%s4285_s30] sm:$0xff] %vm655_vm0, %v2540_v61  ;;  %3087 = vrsqrt.f32 %v2433_v37  ;;  %vm2466_vm7 = vmor %vm2464_vm6, %vm2465_vm5  ;;  %vm2474_vm9 = vweird.f32 %v2433_v37 }
 0x9a2   : > { %v2457_v22 = vsel %vm2456_vm4, %v3084_v29, %v2453_v12  ;;  %v2460_v43 = vmul.f32 %v3086_v18, %v2459_v4 }
 0x9a3   : > { %v2519_v21 = vmul.f32 %v2457_v22, %v4224_v39 }
 0x9a4   : > { %v2461_v16 = vmul.f32 0.5, %v2460_v43  ;;  %v2412_v1 = vpop.xlane.xlu0 %2411 }
 0x9a5   : > { %v2530_v46 = vmul.f32 %v4273_v38, %v2519_v21  ;;  %v2426_v15 = vmul.f32 %v2412_v1, %v4048_v50 }
 0x9a6   : > { %v2462_v17 = vsub.f32 1.5, %v2461_v16 }
 0x9a7   : > { %v3088_v26 = vpop.eup %3087  ;;  %v2541_v32 = vadd.f32 %v4278_v31, %v2530_v46  ;;  %v2434_v59 = vadd.f32 1e-05, %v2426_v15 }
 0x9a8   : > { %v2463_v52 = vmul.f32 %v3086_v18, %v2462_v17  ;;  %v2469_v27 = vmul.f32 %v3088_v26, %v2433_v37  ;;  %vm2475_vm8 = vweird.f32 %v3088_v26 }
 0x9a9   : > { %2804 = vst.msk [vmem:[%s4285_s30 + $0x10] sm:$0xff] %vm655_vm0, %v2541_v32  ;;  %3089 = vrsqrt.f32 %v2434_v59  ;;  %vm2476_vm10 = vmor %vm2474_vm9, %vm2475_vm8  ;;  %vm2484_vm12 = vweird.f32 %v2434_v59 }
 0x9aa   : > { %v2467_v39 = vsel %vm2466_vm7, %v3086_v18, %v2463_v52  ;;  %v2470_v55 = vmul.f32 %v3088_v26, %v2469_v27 }
 0x9ab   : > { %v2520_v10 = vmul.f32 %v2467_v39, %v4232_v51 }
 0x9ac   : > { %v2471_v47 = vmul.f32 0.5, %v2470_v55  ;;  %v2415_v13 = vpop.xlane.xlu2 %2414 }
 0x9ad   : > { %v2531_v35 = vmul.f32 %v4273_v38, %v2520_v10  ;;  %v2427_v6 = vmul.f32 %v2415_v13, %v4048_v50 }
 0x9ae   : > { %v2472_v34 = vsub.f32 1.5, %v2471_v47 }
 0x9af   : > { %v3090_v63 = vpop.eup %3089  ;;  %v2542_v58 = vadd.f32 %v4278_v31, %v2531_v35  ;;  %v2435_v40 = vadd.f32 1e-05, %v2427_v6 }
 0x9b0   : > { %v2473_v7 = vmul.f32 %v3088_v26, %v2472_v34  ;;  %v2479_v30 = vmul.f32 %v3090_v63, %v2434_v59  ;;  %vm2485_vm11 = vweird.f32 %v3090_v63 }
 0x9b1   : > { %2806 = vst.msk [vmem:[%s4285_s30 + $0x20] sm:$0xff] %vm655_vm0, %v2542_v58  ;;  %3091 = vrsqrt.f32 %v2435_v40  ;;  %vm2486_vm13 = vmor %vm2484_vm12, %vm2485_vm11  ;;  %vm2494_vm15 = vweird.f32 %v2435_v40 }
 0x9b2   : > { %v2477_v51 = vsel %vm2476_vm10, %v3088_v26, %v2473_v7  ;;  %v2480_v44 = vmul.f32 %v3090_v63, %v2479_v30 }
 0x9b3   : > { %v2521_v0 = vmul.f32 %v2477_v51, %v4238_v56 }
 0x9b4   : > { %v2481_v62 = vmul.f32 0.5, %v2480_v44 }
 0x9b5   : > { %v2532_v33 = vmul.f32 %v4273_v38, %v2521_v0 }
 0x9b6   : > { %v2482_v45 = vsub.f32 1.5, %v2481_v62 }
 0x9b7   : > { %v3092_v53 = vpop.eup %3091  ;;  %v2543_v23 = vadd.f32 %v4278_v31, %v2532_v33 }
 0x9b8   : > { %v2483_v60 = vmul.f32 %v3090_v63, %v2482_v45  ;;  %v2489_v8 = vmul.f32 %v3092_v53, %v2435_v40  ;;  %vm2495_vm14 = vweird.f32 %v3092_v53 }
 0x9b9   : > { %2808 = vst.msk [vmem:[%s4285_s30 + $0x30] sm:$0xff] %vm655_vm0, %v2543_v23  ;;  %vm2496_vm1 = vmor %vm2494_vm15, %vm2495_vm14 }
 0x9ba   : > { %v2487_v36 = vsel %vm2486_vm13, %v3090_v63, %v2483_v60  ;;  %v2490_v25 = vmul.f32 %v3092_v53, %v2489_v8 }
 0x9bb   : > { %v2522_v56 = vmul.f32 %v2487_v36, %v4244_v19 }
 0x9bc   : > { %v2491_v24 = vmul.f32 0.5, %v2490_v25 }
 0x9bd   : > { %v2533_v29 = vmul.f32 %v4273_v38, %v2522_v56 }
 0x9be   : > { %v2492_v5 = vsub.f32 1.5, %v2491_v24 }
 0x9bf   : > { %v2544_v14 = vadd.f32 %v4278_v31, %v2533_v29 }
 0x9c0   : > { %v2493_v11 = vmul.f32 %v3092_v53, %v2492_v5 }
 0x9c1   : > { %2549 = vst.msk [vmem:[%s4285_s30 + $0x8] sm:$0xff] %vm655_vm0, %v2544_v14 }
 0x9c2   : > { %v2497_v42 = vsel %vm2496_vm1, %v3092_v53, %v2493_v11 }
 0x9c3   : > { %v2523_v54 = vmul.f32 %v2497_v42, %v4250_v2 }
 0x9c5   : > { %v2534_v9 = vmul.f32 %v4273_v38, %v2523_v54 }
 0x9c7   : > { %v2545_v48 = vadd.f32 %v4278_v31, %v2534_v9 }
 0x9c9   : > { %2805 = vst.msk [vmem:[%s4285_s30 + $0x18] sm:$0xff] %vm655_vm0, %v2545_v48 }
 0x9ff   : > { %v2418_v19 = vpop.xlane.xlu1 %2417 }
 0xa00   : > { %v2428_v41 = vmul.f32 %v2418_v19, %v4048_v50 }
 0xa02   : > { %v2436_v57 = vadd.f32 1e-05, %v2428_v41 }
 0xa04   : > { %3093 = vrsqrt.f32 %v2436_v57  ;;  %vm2504_vm3 = vweird.f32 %v2436_v57 }
 0xa07   : > { %v2421_v3 = vpop.xlane.xlu0 %2420 }
 0xa08   : > { %v2429_v20 = vmul.f32 %v2421_v3, %v4048_v50 }
 0xa0a   : > { %v3094_v18 = vpop.eup %3093  ;;  %v2437_v61 = vadd.f32 1e-05, %v2429_v20 }
 0xa0b   : > { %v2499_v37 = vmul.f32 %v3094_v18, %v2436_v57  ;;  %vm2505_vm2 = vweird.f32 %v3094_v18 }
 0xa0c   : > { %3095 = vrsqrt.f32 %v2437_v61  ;;  %vm2506_vm4 = vmor %vm2504_vm3, %vm2505_vm2  ;;  %vm2514_vm6 = vweird.f32 %v2437_v61 }
 0xa0d   : > { %v2500_v2 = vmul.f32 %v3094_v18, %v2499_v37 }
 0xa0f   : > { %v2501_v12 = vmul.f32 0.5, %v2500_v2 }
 0xa11   : > { %v2502_v4 = vsub.f32 1.5, %v2501_v12 }
 0xa12   : > { %v3096_v22 = vpop.eup %3095 }
 0xa13   : > { %v2503_v43 = vmul.f32 %v3094_v18, %v2502_v4  ;;  %v2509_v21 = vmul.f32 %v3096_v22, %v2437_v61  ;;  %vm2515_vm5 = vweird.f32 %v3096_v22 }
 0xa14   : > { %vm2516_vm7 = vmor %vm2514_vm6, %vm2515_vm5 }
 0xa15   : > { %v2507_v16 = vsel %vm2506_vm4, %v3094_v18, %v2503_v43  ;;  %v2510_v1 = vmul.f32 %v3096_v22, %v2509_v21 }
 0xa16   : > { %v2524_v50 = vmul.f32 %v2507_v16, %v4257_v28 }
 0xa17   : > { %v2511_v46 = vmul.f32 0.5, %v2510_v1 }
 0xa18   : > { %v2535_v15 = vmul.f32 %v4273_v38, %v2524_v50 }
 0xa19   : > { %v2512_v17 = vsub.f32 1.5, %v2511_v46 }
 0xa1a   : > { %v2546_v26 = vadd.f32 %v4278_v31, %v2535_v15 }
 0xa1b   : > { %v2513_v32 = vmul.f32 %v3096_v22, %v2512_v17 }
 0xa1c   : > { %2807 = vst.msk [vmem:[%s4285_s30 + $0x28] sm:$0xff] %vm655_vm0, %v2546_v26 }
 0xa1d   : > { %v2517_v28 = vsel %vm2516_vm7, %v3096_v22, %v2513_v32 }
 0xa1e   : > { %v2525_v59 = vmul.f32 %v2517_v28, %v4264_v49 }
 0xa20   : > { %v2536_v52 = vmul.f32 %v4273_v38, %v2525_v59 }
 0xa22   : > { %v2547_v27 = vadd.f32 %v4278_v31, %v2536_v52 }
 0xa24   : > { %2809 = vst.msk [vmem:[%s4285_s30 + $0x38] sm:$0xff] %vm655_vm0, %v2547_v27 }
 0xa25   : > { %3184 = shalt.err (!%p3181_p11)
}
 0xa26   : > { %s3275_s0 = smov 128   ;;  %s3276_s30 = smov 8  }
 0xa27   : > { %2832 = dma.vmem_to_hbm [thread:$0]  (%p3427_p9), %s2575_s17, 1024, %s2577_s19, %s2560_s20, %s3275_s0, %s3275_s0, %s3276_s30  }
 0xa28 PF: > { %s4428_s25 = sld [smem:[#allocation11_spill]]  ;;  %p2846_p13 = scmp.ge.s32.totalorder %s3259_s26, 2 }
 0xa2a   : > { %p2842_p0 = pnand %p2846_p13, %p3433_p12 }
 0xa2c   : > { %p2843_p1 = pneg %p2842_p0 }
 0xa2e   : > { %s2591_s24 = sand.u32 1, %s4428_s25  }
 0xa2f   : > { %s2592_s15 = scalar_lea.sflag [#allocation4], %s2591_s24 }
 0xa30   : > { %3226 = dma.done.wait (%p2843_p1), %s2592_s15, 1024  }
 0xa31   : > { %3228 = vsyncadd (%p2843_p1), %s2592_s15, 4294966272  ;;  %s35_s26 = sadd.s32 1, %s3259_s26   ;;  %s4430_s13 = sld [smem:[#allocation20_spill]] }
 0xa32   : > { %p32_p2 = scmp.ge.s32.totalorder %s35_s26, 10   ;;  %s4431_s24 = sld [smem:[#allocation14_spill]] }
 0xa33   : > { %s4432_s14 = sld [smem:[#allocation15_spill]]  ;;  %s4435_s21 = smov %s3235_s22 }
 0xa34   : > { %s4433_s15 = sld [smem:[#allocation16_spill]]  ;;  %s4436_s22 = smov %s3239_s23 }
 0xa35   : > { %s4434_s25 = sld [smem:[#allocation17_spill]]  ;;  %34 = sbr.rel (!%p32_p2) target bundleno = 15 (0xf), region = 148 }
 0xa37   : > { %s4437_s23 = smov %s4430_s13 }
 0xa3a   :  { %2598 = vsyncpa [#allocation3], 1 }
 0xa3b   :  { %2600 = vsyncpa [#allocation3 + $0x1], 1 }
 0xa3c   :  { %2601 = vsyncpa [#allocation6], 1 }
 0xa3d   :  { %2603 = vsyncpa [#allocation6 + $0x1], 1 }
 0xa3e   :  { %2604 = vsyncpa [#allocation4], 1 }
 0xa3f   :  { %2606 = vsyncpa [#allocation4 + $0x1], 1 }

</bundles_post_ra>
